<compile_context>
chip_gen: v7x
topology: tpu7x:2x2x1
jax: 0.10.0
libtpu: 0.0.40
codegen_flags: <defaults>
</compile_context>

<pallas_src>
import numpy as np
import jax
import jax.numpy as jnp
from jax.experimental import pallas as pl
from jax.experimental.pallas import tpu as pltpu

EPS = 1e-5
# Matmul operand dtype.  jnp.bfloat16 recommended on v6e/v7x at production
# sizes (re-validate the reference tolerance before switching).
MATMUL_DTYPE = jnp.float32


# ------------------------- weight / constant preprocessing -------------------

def _band_conv3x3_weights(w_hwio, wdt):
    """(3,3,Cin,Cout) HWIO -> (3, W*Cin, W*Cout): one banded matrix per
    vertical tap dy.  Row index = w_in*Cin + ci, col index = w_out*Cout + co.
    The band encodes the 3 horizontal taps and the zero padding along W, so a
    3x3 SAME conv becomes 3 accumulated dots of row-shifted lane-dense inputs.
    """
    _, _, cin, cout = w_hwio.shape
    wi = jnp.arange(wdt)[:, None]                    # w_in
    wo = jnp.arange(wdt)[None, :]                    # w_out
    dx = wi - wo + 1                                 # horizontal tap index
    valid = ((dx >= 0) & (dx <= 2)).astype(w_hwio.dtype)
    sel = w_hwio[:, jnp.clip(dx, 0, 2), :, :]        # (3, W, W, Cin, Cout)
    sel = sel * valid[None, :, :, None, None]
    return jnp.transpose(sel, (0, 1, 3, 2, 4)).reshape(3, wdt * cin, wdt * cout)


def _banded_conv1x1_weight(w1x1, wdt):
    """(Cin, Cout) -> (W*Cin, W*Cout) block-diagonal matrix (1x1 conv)."""
    eye = jnp.eye(wdt, dtype=w1x1.dtype)
    cin, cout = w1x1.shape
    return jnp.einsum("uv,io->uivo", eye, w1x1).reshape(wdt * cin, wdt * cout)


def _fold_mats(c, wdt):
    """F: (W*C, C) sums the W groups inside the lane dim (per-channel stats).
       E = F.T: (C, W*C) tiles a per-channel row vector back onto the lanes."""
    f = jnp.tile(jnp.eye(c, dtype=jnp.float32), (wdt, 1))
    return f, f.T


# ----------------------------------- kernel ----------------------------------

def _make_kernel(metas, n, h, wdt):
    nh = n * h
    inv_m = 1.0 / float(n * h * wdt)                 # 1 / (N*H*W) for batch stats

    def kernel(*refs):
        o_ref = refs[-1]

        # H-boundary masks for the vertical conv taps (hoisted, reused by every
        # conv in every block).
        row_in_img = jax.lax.broadcasted_iota(jnp.int32, (nh, 1), 0) % h
        not_top = row_in_img != 0                    # row above exists in-image
        not_bot = row_in_img != (h - 1)              # row below exists in-image

        def bn(x2, g_ref, b_ref, f_ref, e_ref):
            # Training-mode BatchNorm2d: batch mean + biased variance over
            # (N, H, W).  Row sums on the XLU (sublane reduce), W-fold inside
            # lanes and per-channel scale/shift lane re-tile via 2 tiny MXU
            # dots.
            sx = jnp.sum(x2, axis=0, keepdims=True)              # (1, W*C)
            sxx = jnp.sum(x2 * x2, axis=0, keepdims=True)        # (1, W*C)
            s = jnp.dot(jnp.concatenate([sx, sxx], axis=0), f_ref[...],
                        preferred_element_type=jnp.float32)      # (2, C)
            mean = s[0:1, :] * inv_m
            var = s[1:2, :] * inv_m - mean * mean
            scale = g_ref[...] * jax.lax.rsqrt(var + EPS)
            shift = b_ref[...] - mean * scale
            sl = jnp.dot(jnp.concatenate([scale, shift], axis=0), e_ref[...],
                         preferred_element_type=jnp.float32)     # (2, W*C)
            return x2 * sl[0:1, :] + sl[1:2, :]

        def conv3x3(x2, band_ref):
            # x2: (N*H, W*Cin) lane-dense.  Vertical taps = XLU sublane rolls
            # + boundary mask (no padded-tensor copies, no lane concat);
            # horizontal taps + W padding live in the 3 banded sub-weights.
            up = jnp.where(not_top, pltpu.roll(x2, shift=1, axis=0), 0.0)
            dn = jnp.where(not_bot, pltpu.roll(x2, shift=nh - 1, axis=0), 0.0)
            acc = jnp.dot(up.astype(MATMUL_DTYPE), band_ref[0],
                          preferred_element_type=jnp.float32)
            acc = acc + jnp.dot(x2.astype(MATMUL_DTYPE), band_ref[1],
                                preferred_element_type=jnp.float32)
            acc = acc + jnp.dot(dn.astype(MATMUL_DTYPE), band_ref[2],
                                preferred_element_type=jnp.float32)
            return acc

        x = refs[0][...].astype(jnp.float32)                     # (N*H, W*Cin)
        # TODO(synk): replace this static unroll with a grid axis over blocks
        # (weight streaming) for deep production nets.
        for meta in metas:
            a = meta["arg"]
            out = bn(x, refs[a["g1"]], refs[a["b1"]],
                     refs[a["f_in"]], refs[a["e_in"]])
            out = conv3x3(out, refs[a["band1"]])
            out = bn(out, refs[a["g2"]], refs[a["b2"]],
                     refs[a["f_out"]], refs[a["e_out"]])
            alpha_l = refs[a["alpha_l"]][...]                    # precomputed
            out = jnp.where(out >= 0.0, out, alpha_l * out)      # PReLU
            out = conv3x3(out, refs[a["band2"]])
            out = bn(out, refs[a["g3"]], refs[a["b3"]],
                     refs[a["f_out"]], refs[a["e_out"]])
            if meta["has_ds"]:                                   # 1x1 conv + BN
                idn = jnp.dot(x.astype(MATMUL_DTYPE), refs[a["band_d"]][...],
                              preferred_element_type=jnp.float32)
                idn = bn(idn, refs[a["gd"]], refs[a["bd"]],
                         refs[a["f_out"]], refs[a["e_out"]])
            else:
                idn = x
            x = out + idn                                        # residual
        o_ref[...] = x.astype(o_ref.dtype)

    return kernel


# --------------------------------- wrapper ------------------------------------

@jax.jit
def feature_iresnet_forward(x_nchw, params):
    n, c0, h, wdt = x_nchw.shape
    # NCHW -> lane-dense (N*H, W*C)
    x2 = jnp.transpose(x_nchw, (0, 2, 3, 1)).reshape(n * h, wdt * c0)

    args = [x2]
    fold_cache = {}                                   # channel count -> (fi, ei)

    def _add(val):
        args.append(val)
        return len(args) - 1

    def _fold_idx(c):
        if c not in fold_cache:                       # dedupe per channel count
            f, e = _fold_mats(c, wdt)
            fold_cache[c] = (_add(f), _add(e))
        return fold_cache[c]

    metas = []
    for p in params:
        cin, planes = p["w1"].shape[2], p["w1"].shape[3]
        fi, ei = _fold_idx(cin)
        fo, eo = _fold_idx(planes)
        a = {"f_in": fi, "e_in": ei, "f_out": fo, "e_out": eo}
        a["g1"] = _add(p["g1"]); a["b1"] = _add(p["b1"])
        a["band1"] = _add(_band_conv3x3_weights(p["w1"], wdt).astype(MATMUL_DTYPE))
        a["g2"] = _add(p["g2"]); a["b2"] = _add(p["b2"])
        a["alpha_l"] = _add(jnp.tile(p["alpha"], (1, wdt)))      # lane-tiled PReLU
        a["band2"] = _add(_band_conv3x3_weights(p["w2"], wdt).astype(MATMUL_DTYPE))
        a["g3"] = _add(p["g3"]); a["b3"] = _add(p["b3"])
        has_ds = "wd" in p
        if has_ds:
            a["band_d"] = _add(_banded_conv1x1_weight(p["wd"], wdt).astype(MATMUL_DTYPE))
            a["gd"] = _add(p["gd"]); a["bd"] = _add(p["bd"])
        metas.append({"has_ds": has_ds, "planes": planes, "arg": a})

    planes_last = metas[-1]["planes"]
    vmem = pl.BlockSpec(memory_space=pltpu.MemorySpace.VMEM)
    out2 = pl.pallas_call(
        _make_kernel(metas, n, h, wdt),
        out_shape=jax.ShapeDtypeStruct((n * h, wdt * planes_last), jnp.float32),
        in_specs=[vmem] * len(args),
        out_specs=vmem,
        compiler_params=pltpu.CompilerParams(vmem_limit_bytes=32 * 1024 * 1024),
    )(*args)
    out = out2.reshape(n, h, wdt, planes_last)                   # NHWC
    return jnp.transpose(out, (0, 3, 1, 2))                      # NCHW


def init_params(key, blocks, inplanes):
    params = []
    cin = inplanes
    for planes, num_blocks in blocks:
        for _ in range(num_blocks):
            key, *ks = jax.random.split(key, 14)
            p = {
                "g1": 1.0 + 0.1 * jax.random.normal(ks[0], (1, cin), jnp.float32),
                "b1": 0.1 * jax.random.normal(ks[1], (1, cin), jnp.float32),
                "w1": 0.1 * jax.random.normal(ks[2], (3, 3, cin, planes), jnp.float32),
                "g2": 1.0 + 0.1 * jax.random.normal(ks[3], (1, planes), jnp.float32),
                "b2": 0.1 * jax.random.normal(ks[4], (1, planes), jnp.float32),
                "alpha": 0.25 + 0.01 * jax.random.normal(ks[5], (1, planes), jnp.float32),
                "w2": 0.1 * jax.random.normal(ks[6], (3, 3, planes, planes), jnp.float32),
                "g3": 1.0 + 0.1 * jax.random.normal(ks[7], (1, planes), jnp.float32),
                "b3": 0.1 * jax.random.normal(ks[8], (1, planes), jnp.float32),
            }
            if cin != planes:  # downsample branch
                p["wd"] = 0.1 * jax.random.normal(ks[9], (cin, planes), jnp.float32)
                p["gd"] = 1.0 + 0.1 * jax.random.normal(ks[10], (1, planes), jnp.float32)
                p["bd"] = 0.1 * jax.random.normal(ks[11], (1, planes), jnp.float32)
            params.append(p)
            cin = planes
    return params


# ------------------------- pure-JAX reference (check) -------------------------

def _ref_bn(x, gamma, beta):
    mean = jnp.mean(x, axis=(0, 1, 2), keepdims=True)
    var = jnp.mean(jnp.square(x - mean), axis=(0, 1, 2), keepdims=True)
    return (x - mean) * (gamma.reshape(1, 1, 1, -1) * jax.lax.rsqrt(var + EPS)) \
        + beta.reshape(1, 1, 1, -1)


def _ref_conv3x3(x, w_hwio):
    return jax.lax.conv_general_dilated(
        x, w_hwio, (1, 1), "SAME",
        dimension_numbers=("NHWC", "HWIO", "NHWC"),
        precision=jax.lax.Precision.HIGHEST)


def _ref_block(x, p):
    out = _ref_bn(x, p["g1"], p["b1"])
    out = _ref_conv3x3(out, p["w1"])
    out = _ref_bn(out, p["g2"], p["b2"])
    out = jnp.where(out >= 0, out, p["alpha"].reshape(1, 1, 1, -1) * out)
    out = _ref_conv3x3(out, p["w2"])
    out = _ref_bn(out, p["g3"], p["b3"])
    if "wd" in p:
        idn = jnp.einsum("nhwc,cp->nhwp", x, p["wd"],
                         precision=jax.lax.Precision.HIGHEST)
        idn = _ref_bn(idn, p["gd"], p["bd"])
    else:
        idn = x
    return out + idn


# ----------------------------------- main -------------------------------------

if __name__ == "__main__":
    key = jax.random.PRNGKey(0)
    kx, kp = jax.random.split(key)

    # FeatureiResnet(blocks=[(16,1),(32,1)], inplanes=16)
    blocks = ((16, 1), (32, 1))
    inplanes = 16
    N, H, W = 2, 8, 8

    x = jax.random.normal(kx, (N, inplanes, H, W), jnp.float32)   # NCHW like PyTorch
    params = init_params(kp, blocks, inplanes)

    out = feature_iresnet_forward(x, params)
    out = jax.block_until_ready(out)
    assert out.shape == (N, blocks[-1][0], H, W)

    # verify against a pure-JAX reference
    xr = jnp.transpose(x, (0, 2, 3, 1))
    for p in params:
        xr = _ref_block(xr, p)
    ref = jnp.transpose(xr, (0, 3, 1, 2))
    np.testing.assert_allclose(np.asarray(out), np.asarray(ref), rtol=3e-3, atol=3e-3)

    print("KERNEL_OK")
</pallas_src>

<mosaic_0001>
module attributes {stable_mosaic.version = 11 : i64} {
  func.func @kernel(%arg0: memref<16x128xf32, #tpu.memory_space<vmem>>, %arg1: memref<128x16xf32, #tpu.memory_space<vmem>>, %arg2: memref<16x128xf32, #tpu.memory_space<vmem>>, %arg3: memref<1x16xf32, #tpu.memory_space<vmem>>, %arg4: memref<1x16xf32, #tpu.memory_space<vmem>>, %arg5: memref<3x128x128xf32, #tpu.memory_space<vmem>>, %arg6: memref<1x16xf32, #tpu.memory_space<vmem>>, %arg7: memref<1x16xf32, #tpu.memory_space<vmem>>, %arg8: memref<1x128xf32, #tpu.memory_space<vmem>>, %arg9: memref<3x128x128xf32, #tpu.memory_space<vmem>>, %arg10: memref<1x16xf32, #tpu.memory_space<vmem>>, %arg11: memref<1x16xf32, #tpu.memory_space<vmem>>, %arg12: memref<256x32xf32, #tpu.memory_space<vmem>>, %arg13: memref<32x256xf32, #tpu.memory_space<vmem>>, %arg14: memref<1x16xf32, #tpu.memory_space<vmem>>, %arg15: memref<1x16xf32, #tpu.memory_space<vmem>>, %arg16: memref<3x128x256xf32, #tpu.memory_space<vmem>>, %arg17: memref<1x32xf32, #tpu.memory_space<vmem>>, %arg18: memref<1x32xf32, #tpu.memory_space<vmem>>, %arg19: memref<1x256xf32, #tpu.memory_space<vmem>>, %arg20: memref<3x256x256xf32, #tpu.memory_space<vmem>>, %arg21: memref<1x32xf32, #tpu.memory_space<vmem>>, %arg22: memref<1x32xf32, #tpu.memory_space<vmem>>, %arg23: memref<128x256xf32, #tpu.memory_space<vmem>>, %arg24: memref<1x32xf32, #tpu.memory_space<vmem>>, %arg25: memref<1x32xf32, #tpu.memory_space<vmem>>, %arg26: memref<16x256xf32, #tpu.memory_space<vmem>>) attributes {dimension_semantics = [], scalar_prefetch = 0 : i64, scratch_operands = 0 : i64, tpu.core_type = #tpu.core_type<tc>} {
    %0 = tpu.iota {dimensions = array<i32: 0>} : vector<16x1xi32>
    %c8_i32 = arith.constant 8 : i32
    %c0_i32 = arith.constant 0 : i32
    %1 = arith.cmpi eq, %c8_i32, %c0_i32 : i32
    %c1_i32 = arith.constant 1 : i32
    %2 = arith.select %1, %c1_i32, %c8_i32 : i32
    %3 = vector.broadcast %2 : i32 to vector<16x1xi32>
    %4 = arith.remsi %0, %3 : vector<16x1xi32>
    %c0_i32_0 = arith.constant 0 : i32
    %5 = vector.broadcast %c0_i32_0 : i32 to vector<16x1xi32>
    %6 = arith.cmpi ne, %4, %5 : vector<16x1xi32>
    %c0_i32_1 = arith.constant 0 : i32
    %7 = vector.broadcast %c0_i32_1 : i32 to vector<16x1xi32>
    %8 = arith.cmpi slt, %4, %7 : vector<16x1xi32>
    %c0_i32_2 = arith.constant 0 : i32
    %9 = arith.cmpi slt, %2, %c0_i32_2 : i32
    %10 = vector.broadcast %9 : i1 to vector<16x1xi1>
    %11 = vector.broadcast %10 : vector<16x1xi1> to vector<16x1xi1>
    %12 = arith.xori %8, %11 : vector<16x1xi1>
    %13 = arith.andi %12, %6 : vector<16x1xi1>
    %14 = vector.broadcast %2 : i32 to vector<16x1xi32>
    %15 = arith.addi %4, %14 : vector<16x1xi32>
    %16 = arith.select %13, %15, %4 : vector<16x1xi1>, vector<16x1xi32>
    %c0_i32_3 = arith.constant 0 : i32
    %17 = vector.broadcast %c0_i32_3 : i32 to vector<16x1xi32>
    %18 = arith.cmpi ne, %16, %17 : vector<16x1xi32>
    %c7_i32 = arith.constant 7 : i32
    %19 = vector.broadcast %c7_i32 : i32 to vector<16x1xi32>
    %20 = arith.cmpi ne, %16, %19 : vector<16x1xi32>
    %c0 = arith.constant 0 : index
    %c0_4 = arith.constant 0 : index
    %21 = vector.load %arg0[%c0, %c0_4] : memref<16x128xf32, #tpu.memory_space<vmem>>, vector<16x128xf32>
    %cst = arith.constant dense<0.000000e+00> : vector<128xf32>
    %22 = vector.multi_reduction <add>, %21, %cst [0] : vector<16x128xf32> to vector<128xf32>
    %23 = vector.shape_cast %22 : vector<128xf32> to vector<1x128xf32>
    %24 = arith.mulf %21, %21 : vector<16x128xf32>
    %cst_5 = arith.constant dense<0.000000e+00> : vector<128xf32>
    %25 = vector.multi_reduction <add>, %24, %cst_5 [0] : vector<16x128xf32> to vector<128xf32>
    %26 = vector.shape_cast %25 : vector<128xf32> to vector<1x128xf32>
    %27 = tpu.concatenate %23, %26 in 0 : vector<1x128xf32>, vector<1x128xf32> -> vector<2x128xf32>
    %c0_6 = arith.constant 0 : index
    %c0_7 = arith.constant 0 : index
    %28 = vector.load %arg1[%c0_6, %c0_7] : memref<128x16xf32, #tpu.memory_space<vmem>>, vector<128x16xf32>
    %cst_8 = arith.constant dense<0.000000e+00> : vector<2x16xf32>
    %29 = tpu.matmul %27, %28, %cst_8 {dimension_numbers = #tpu.dot_dimension_numbers<[1], [0], [0], [1], [0, 0, 1, 1], [], []>} : vector<2x128xf32>, vector<128x16xf32>, vector<2x16xf32> -> vector<2x16xf32>
    %30 = vector.extract_strided_slice %29 {offsets = [0, 0], sizes = [1, 16], strides = [1, 1]} : vector<2x16xf32> to vector<1x16xf32>
    %cst_9 = arith.constant 7.812500e-03 : f32
    %31 = vector.broadcast %cst_9 : f32 to vector<1x16xf32>
    %32 = arith.mulf %30, %31 : vector<1x16xf32>
    %33 = vector.extract_strided_slice %29 {offsets = [1, 0], sizes = [1, 16], strides = [1, 1]} : vector<2x16xf32> to vector<1x16xf32>
    %cst_10 = arith.constant 7.812500e-03 : f32
    %34 = vector.broadcast %cst_10 : f32 to vector<1x16xf32>
    %35 = arith.mulf %33, %34 : vector<1x16xf32>
    %36 = arith.mulf %32, %32 : vector<1x16xf32>
    %37 = arith.subf %35, %36 : vector<1x16xf32>
    %c0_11 = arith.constant 0 : index
    %c0_12 = arith.constant 0 : index
    %38 = vector.load %arg3[%c0_11, %c0_12] : memref<1x16xf32, #tpu.memory_space<vmem>>, vector<1x16xf32>
    %cst_13 = arith.constant 9.99999974E-6 : f32
    %39 = vector.broadcast %cst_13 : f32 to vector<1x16xf32>
    %40 = arith.addf %37, %39 : vector<1x16xf32>
    %41 = math.rsqrt %40 : vector<1x16xf32>
    %42 = arith.mulf %38, %41 : vector<1x16xf32>
    %c0_14 = arith.constant 0 : index
    %c0_15 = arith.constant 0 : index
    %43 = vector.load %arg4[%c0_14, %c0_15] : memref<1x16xf32, #tpu.memory_space<vmem>>, vector<1x16xf32>
    %44 = arith.mulf %32, %42 : vector<1x16xf32>
    %45 = arith.subf %43, %44 : vector<1x16xf32>
    %46 = tpu.concatenate %42, %45 in 0 : vector<1x16xf32>, vector<1x16xf32> -> vector<2x16xf32>
    %c0_16 = arith.constant 0 : index
    %c0_17 = arith.constant 0 : index
    %47 = vector.load %arg2[%c0_16, %c0_17] : memref<16x128xf32, #tpu.memory_space<vmem>>, vector<16x128xf32>
    %cst_18 = arith.constant dense<0.000000e+00> : vector<2x128xf32>
    %48 = tpu.matmul %46, %47, %cst_18 {dimension_numbers = #tpu.dot_dimension_numbers<[1], [0], [0], [1], [0, 0, 1, 1], [], []>} : vector<2x16xf32>, vector<16x128xf32>, vector<2x128xf32> -> vector<2x128xf32>
    %49 = vector.extract_strided_slice %48 {offsets = [0, 0], sizes = [1, 128], strides = [1, 1]} : vector<2x128xf32> to vector<1x128xf32>
    %50 = vector.broadcast %49 : vector<1x128xf32> to vector<16x128xf32>
    %51 = arith.mulf %21, %50 : vector<16x128xf32>
    %52 = vector.extract_strided_slice %48 {offsets = [1, 0], sizes = [1, 128], strides = [1, 1]} : vector<2x128xf32> to vector<1x128xf32>
    %53 = vector.broadcast %52 : vector<1x128xf32> to vector<16x128xf32>
    %54 = arith.addf %51, %53 : vector<16x128xf32>
    %c1_i32_19 = arith.constant 1 : i32
    %55 = tpu.dynamic_rotate %54 by %c1_i32_19 dim 0 : vector<16x128xf32>, i32 -> vector<16x128xf32>
    %cst_20 = arith.constant 0.000000e+00 : f32
    %56 = vector.shape_cast %18 : vector<16x1xi1> to vector<16x1xi1>
    %57 = vector.broadcast %56 : vector<16x1xi1> to vector<16x128xi1>
    %58 = vector.broadcast %cst_20 : f32 to vector<16x128xf32>
    %59 = arith.select %57, %55, %58 : vector<16x128xi1>, vector<16x128xf32>
    %c15_i32 = arith.constant 15 : i32
    %60 = tpu.dynamic_rotate %54 by %c15_i32 dim 0 : vector<16x128xf32>, i32 -> vector<16x128xf32>
    %cst_21 = arith.constant 0.000000e+00 : f32
    %61 = vector.shape_cast %20 : vector<16x1xi1> to vector<16x1xi1>
    %62 = vector.broadcast %61 : vector<16x1xi1> to vector<16x128xi1>
    %63 = vector.broadcast %cst_21 : f32 to vector<16x128xf32>
    %64 = arith.select %62, %60, %63 : vector<16x128xi1>, vector<16x128xf32>
    %c0_22 = arith.constant 0 : index
    %c0_23 = arith.constant 0 : index
    %c0_24 = arith.constant 0 : index
    %65 = vector.load %arg5[%c0_22, %c0_23, %c0_24] : memref<3x128x128xf32, #tpu.memory_space<vmem>>, vector<1x128x128xf32>
    %66 = vector.shape_cast %65 : vector<1x128x128xf32> to vector<128x128xf32>
    %cst_25 = arith.constant dense<0.000000e+00> : vector<16x128xf32>
    %67 = tpu.matmul %59, %66, %cst_25 {dimension_numbers = #tpu.dot_dimension_numbers<[1], [0], [0], [1], [0, 0, 1, 1], [], []>} : vector<16x128xf32>, vector<128x128xf32>, vector<16x128xf32> -> vector<16x128xf32>
    %c1 = arith.constant 1 : index
    %c0_26 = arith.constant 0 : index
    %c0_27 = arith.constant 0 : index
    %68 = vector.load %arg5[%c1, %c0_26, %c0_27] : memref<3x128x128xf32, #tpu.memory_space<vmem>>, vector<1x128x128xf32>
    %69 = vector.shape_cast %68 : vector<1x128x128xf32> to vector<128x128xf32>
    %cst_28 = arith.constant dense<0.000000e+00> : vector<16x128xf32>
    %70 = tpu.matmul %54, %69, %cst_28 {dimension_numbers = #tpu.dot_dimension_numbers<[1], [0], [0], [1], [0, 0, 1, 1], [], []>} : vector<16x128xf32>, vector<128x128xf32>, vector<16x128xf32> -> vector<16x128xf32>
    %71 = arith.addf %67, %70 : vector<16x128xf32>
    %c2 = arith.constant 2 : index
    %c0_29 = arith.constant 0 : index
    %c0_30 = arith.constant 0 : index
    %72 = vector.load %arg5[%c2, %c0_29, %c0_30] : memref<3x128x128xf32, #tpu.memory_space<vmem>>, vector<1x128x128xf32>
    %73 = vector.shape_cast %72 : vector<1x128x128xf32> to vector<128x128xf32>
    %cst_31 = arith.constant dense<0.000000e+00> : vector<16x128xf32>
    %74 = tpu.matmul %64, %73, %cst_31 {dimension_numbers = #tpu.dot_dimension_numbers<[1], [0], [0], [1], [0, 0, 1, 1], [], []>} : vector<16x128xf32>, vector<128x128xf32>, vector<16x128xf32> -> vector<16x128xf32>
    %75 = arith.addf %71, %74 : vector<16x128xf32>
    %cst_32 = arith.constant dense<0.000000e+00> : vector<128xf32>
    %76 = vector.multi_reduction <add>, %75, %cst_32 [0] : vector<16x128xf32> to vector<128xf32>
    %77 = vector.shape_cast %76 : vector<128xf32> to vector<1x128xf32>
    %78 = arith.mulf %75, %75 : vector<16x128xf32>
    %cst_33 = arith.constant dense<0.000000e+00> : vector<128xf32>
    %79 = vector.multi_reduction <add>, %78, %cst_33 [0] : vector<16x128xf32> to vector<128xf32>
    %80 = vector.shape_cast %79 : vector<128xf32> to vector<1x128xf32>
    %81 = tpu.concatenate %77, %80 in 0 : vector<1x128xf32>, vector<1x128xf32> -> vector<2x128xf32>
    %c0_34 = arith.constant 0 : index
    %c0_35 = arith.constant 0 : index
    %82 = vector.load %arg1[%c0_34, %c0_35] : memref<128x16xf32, #tpu.memory_space<vmem>>, vector<128x16xf32>
    %cst_36 = arith.constant dense<0.000000e+00> : vector<2x16xf32>
    %83 = tpu.matmul %81, %82, %cst_36 {dimension_numbers = #tpu.dot_dimension_numbers<[1], [0], [0], [1], [0, 0, 1, 1], [], []>} : vector<2x128xf32>, vector<128x16xf32>, vector<2x16xf32> -> vector<2x16xf32>
    %84 = vector.extract_strided_slice %83 {offsets = [0, 0], sizes = [1, 16], strides = [1, 1]} : vector<2x16xf32> to vector<1x16xf32>
    %cst_37 = arith.constant 7.812500e-03 : f32
    %85 = vector.broadcast %cst_37 : f32 to vector<1x16xf32>
    %86 = arith.mulf %84, %85 : vector<1x16xf32>
    %87 = vector.extract_strided_slice %83 {offsets = [1, 0], sizes = [1, 16], strides = [1, 1]} : vector<2x16xf32> to vector<1x16xf32>
    %cst_38 = arith.constant 7.812500e-03 : f32
    %88 = vector.broadcast %cst_38 : f32 to vector<1x16xf32>
    %89 = arith.mulf %87, %88 : vector<1x16xf32>
    %90 = arith.mulf %86, %86 : vector<1x16xf32>
    %91 = arith.subf %89, %90 : vector<1x16xf32>
    %c0_39 = arith.constant 0 : index
    %c0_40 = arith.constant 0 : index
    %92 = vector.load %arg6[%c0_39, %c0_40] : memref<1x16xf32, #tpu.memory_space<vmem>>, vector<1x16xf32>
    %cst_41 = arith.constant 9.99999974E-6 : f32
    %93 = vector.broadcast %cst_41 : f32 to vector<1x16xf32>
    %94 = arith.addf %91, %93 : vector<1x16xf32>
    %95 = math.rsqrt %94 : vector<1x16xf32>
    %96 = arith.mulf %92, %95 : vector<1x16xf32>
    %c0_42 = arith.constant 0 : index
    %c0_43 = arith.constant 0 : index
    %97 = vector.load %arg7[%c0_42, %c0_43] : memref<1x16xf32, #tpu.memory_space<vmem>>, vector<1x16xf32>
    %98 = arith.mulf %86, %96 : vector<1x16xf32>
    %99 = arith.subf %97, %98 : vector<1x16xf32>
    %100 = tpu.concatenate %96, %99 in 0 : vector<1x16xf32>, vector<1x16xf32> -> vector<2x16xf32>
    %c0_44 = arith.constant 0 : index
    %c0_45 = arith.constant 0 : index
    %101 = vector.load %arg2[%c0_44, %c0_45] : memref<16x128xf32, #tpu.memory_space<vmem>>, vector<16x128xf32>
    %cst_46 = arith.constant dense<0.000000e+00> : vector<2x128xf32>
    %102 = tpu.matmul %100, %101, %cst_46 {dimension_numbers = #tpu.dot_dimension_numbers<[1], [0], [0], [1], [0, 0, 1, 1], [], []>} : vector<2x16xf32>, vector<16x128xf32>, vector<2x128xf32> -> vector<2x128xf32>
    %103 = vector.extract_strided_slice %102 {offsets = [0, 0], sizes = [1, 128], strides = [1, 1]} : vector<2x128xf32> to vector<1x128xf32>
    %104 = vector.broadcast %103 : vector<1x128xf32> to vector<16x128xf32>
    %105 = arith.mulf %75, %104 : vector<16x128xf32>
    %106 = vector.extract_strided_slice %102 {offsets = [1, 0], sizes = [1, 128], strides = [1, 1]} : vector<2x128xf32> to vector<1x128xf32>
    %107 = vector.broadcast %106 : vector<1x128xf32> to vector<16x128xf32>
    %108 = arith.addf %105, %107 : vector<16x128xf32>
    %c0_47 = arith.constant 0 : index
    %c0_48 = arith.constant 0 : index
    %109 = vector.load %arg8[%c0_47, %c0_48] : memref<1x128xf32, #tpu.memory_space<vmem>>, vector<1x128xf32>
    %cst_49 = arith.constant 0.000000e+00 : f32
    %110 = vector.broadcast %cst_49 : f32 to vector<16x128xf32>
    %111 = arith.cmpf oge, %108, %110 : vector<16x128xf32>
    %112 = vector.broadcast %109 : vector<1x128xf32> to vector<16x128xf32>
    %113 = arith.mulf %112, %108 : vector<16x128xf32>
    %114 = arith.select %111, %108, %113 : vector<16x128xi1>, vector<16x128xf32>
    %c1_i32_50 = arith.constant 1 : i32
    %115 = tpu.dynamic_rotate %114 by %c1_i32_50 dim 0 : vector<16x128xf32>, i32 -> vector<16x128xf32>
    %cst_51 = arith.constant 0.000000e+00 : f32
    %116 = vector.shape_cast %18 : vector<16x1xi1> to vector<16x1xi1>
    %117 = vector.broadcast %116 : vector<16x1xi1> to vector<16x128xi1>
    %118 = vector.broadcast %cst_51 : f32 to vector<16x128xf32>
    %119 = arith.select %117, %115, %118 : vector<16x128xi1>, vector<16x128xf32>
    %c15_i32_52 = arith.constant 15 : i32
    %120 = tpu.dynamic_rotate %114 by %c15_i32_52 dim 0 : vector<16x128xf32>, i32 -> vector<16x128xf32>
    %cst_53 = arith.constant 0.000000e+00 : f32
    %121 = vector.shape_cast %20 : vector<16x1xi1> to vector<16x1xi1>
    %122 = vector.broadcast %121 : vector<16x1xi1> to vector<16x128xi1>
    %123 = vector.broadcast %cst_53 : f32 to vector<16x128xf32>
    %124 = arith.select %122, %120, %123 : vector<16x128xi1>, vector<16x128xf32>
    %c0_54 = arith.constant 0 : index
    %c0_55 = arith.constant 0 : index
    %c0_56 = arith.constant 0 : index
    %125 = vector.load %arg9[%c0_54, %c0_55, %c0_56] : memref<3x128x128xf32, #tpu.memory_space<vmem>>, vector<1x128x128xf32>
    %126 = vector.shape_cast %125 : vector<1x128x128xf32> to vector<128x128xf32>
    %cst_57 = arith.constant dense<0.000000e+00> : vector<16x128xf32>
    %127 = tpu.matmul %119, %126, %cst_57 {dimension_numbers = #tpu.dot_dimension_numbers<[1], [0], [0], [1], [0, 0, 1, 1], [], []>} : vector<16x128xf32>, vector<128x128xf32>, vector<16x128xf32> -> vector<16x128xf32>
    %c1_58 = arith.constant 1 : index
    %c0_59 = arith.constant 0 : index
    %c0_60 = arith.constant 0 : index
    %128 = vector.load %arg9[%c1_58, %c0_59, %c0_60] : memref<3x128x128xf32, #tpu.memory_space<vmem>>, vector<1x128x128xf32>
    %129 = vector.shape_cast %128 : vector<1x128x128xf32> to vector<128x128xf32>
    %cst_61 = arith.constant dense<0.000000e+00> : vector<16x128xf32>
    %130 = tpu.matmul %114, %129, %cst_61 {dimension_numbers = #tpu.dot_dimension_numbers<[1], [0], [0], [1], [0, 0, 1, 1], [], []>} : vector<16x128xf32>, vector<128x128xf32>, vector<16x128xf32> -> vector<16x128xf32>
    %131 = arith.addf %127, %130 : vector<16x128xf32>
    %c2_62 = arith.constant 2 : index
    %c0_63 = arith.constant 0 : index
    %c0_64 = arith.constant 0 : index
    %132 = vector.load %arg9[%c2_62, %c0_63, %c0_64] : memref<3x128x128xf32, #tpu.memory_space<vmem>>, vector<1x128x128xf32>
    %133 = vector.shape_cast %132 : vector<1x128x128xf32> to vector<128x128xf32>
    %cst_65 = arith.constant dense<0.000000e+00> : vector<16x128xf32>
    %134 = tpu.matmul %124, %133, %cst_65 {dimension_numbers = #tpu.dot_dimension_numbers<[1], [0], [0], [1], [0, 0, 1, 1], [], []>} : vector<16x128xf32>, vector<128x128xf32>, vector<16x128xf32> -> vector<16x128xf32>
    %135 = arith.addf %131, %134 : vector<16x128xf32>
    %cst_66 = arith.constant dense<0.000000e+00> : vector<128xf32>
    %136 = vector.multi_reduction <add>, %135, %cst_66 [0] : vector<16x128xf32> to vector<128xf32>
    %137 = vector.shape_cast %136 : vector<128xf32> to vector<1x128xf32>
    %138 = arith.mulf %135, %135 : vector<16x128xf32>
    %cst_67 = arith.constant dense<0.000000e+00> : vector<128xf32>
    %139 = vector.multi_reduction <add>, %138, %cst_67 [0] : vector<16x128xf32> to vector<128xf32>
    %140 = vector.shape_cast %139 : vector<128xf32> to vector<1x128xf32>
    %141 = tpu.concatenate %137, %140 in 0 : vector<1x128xf32>, vector<1x128xf32> -> vector<2x128xf32>
    %c0_68 = arith.constant 0 : index
    %c0_69 = arith.constant 0 : index
    %142 = vector.load %arg1[%c0_68, %c0_69] : memref<128x16xf32, #tpu.memory_space<vmem>>, vector<128x16xf32>
    %cst_70 = arith.constant dense<0.000000e+00> : vector<2x16xf32>
    %143 = tpu.matmul %141, %142, %cst_70 {dimension_numbers = #tpu.dot_dimension_numbers<[1], [0], [0], [1], [0, 0, 1, 1], [], []>} : vector<2x128xf32>, vector<128x16xf32>, vector<2x16xf32> -> vector<2x16xf32>
    %144 = vector.extract_strided_slice %143 {offsets = [0, 0], sizes = [1, 16], strides = [1, 1]} : vector<2x16xf32> to vector<1x16xf32>
    %cst_71 = arith.constant 7.812500e-03 : f32
    %145 = vector.broadcast %cst_71 : f32 to vector<1x16xf32>
    %146 = arith.mulf %144, %145 : vector<1x16xf32>
    %147 = vector.extract_strided_slice %143 {offsets = [1, 0], sizes = [1, 16], strides = [1, 1]} : vector<2x16xf32> to vector<1x16xf32>
    %cst_72 = arith.constant 7.812500e-03 : f32
    %148 = vector.broadcast %cst_72 : f32 to vector<1x16xf32>
    %149 = arith.mulf %147, %148 : vector<1x16xf32>
    %150 = arith.mulf %146, %146 : vector<1x16xf32>
    %151 = arith.subf %149, %150 : vector<1x16xf32>
    %c0_73 = arith.constant 0 : index
    %c0_74 = arith.constant 0 : index
    %152 = vector.load %arg10[%c0_73, %c0_74] : memref<1x16xf32, #tpu.memory_space<vmem>>, vector<1x16xf32>
    %cst_75 = arith.constant 9.99999974E-6 : f32
    %153 = vector.broadcast %cst_75 : f32 to vector<1x16xf32>
    %154 = arith.addf %151, %153 : vector<1x16xf32>
    %155 = math.rsqrt %154 : vector<1x16xf32>
    %156 = arith.mulf %152, %155 : vector<1x16xf32>
    %c0_76 = arith.constant 0 : index
    %c0_77 = arith.constant 0 : index
    %157 = vector.load %arg11[%c0_76, %c0_77] : memref<1x16xf32, #tpu.memory_space<vmem>>, vector<1x16xf32>
    %158 = arith.mulf %146, %156 : vector<1x16xf32>
    %159 = arith.subf %157, %158 : vector<1x16xf32>
    %160 = tpu.concatenate %156, %159 in 0 : vector<1x16xf32>, vector<1x16xf32> -> vector<2x16xf32>
    %c0_78 = arith.constant 0 : index
    %c0_79 = arith.constant 0 : index
    %161 = vector.load %arg2[%c0_78, %c0_79] : memref<16x128xf32, #tpu.memory_space<vmem>>, vector<16x128xf32>
    %cst_80 = arith.constant dense<0.000000e+00> : vector<2x128xf32>
    %162 = tpu.matmul %160, %161, %cst_80 {dimension_numbers = #tpu.dot_dimension_numbers<[1], [0], [0], [1], [0, 0, 1, 1], [], []>} : vector<2x16xf32>, vector<16x128xf32>, vector<2x128xf32> -> vector<2x128xf32>
    %163 = vector.extract_strided_slice %162 {offsets = [0, 0], sizes = [1, 128], strides = [1, 1]} : vector<2x128xf32> to vector<1x128xf32>
    %164 = vector.broadcast %163 : vector<1x128xf32> to vector<16x128xf32>
    %165 = arith.mulf %135, %164 : vector<16x128xf32>
    %166 = vector.extract_strided_slice %162 {offsets = [1, 0], sizes = [1, 128], strides = [1, 1]} : vector<2x128xf32> to vector<1x128xf32>
    %167 = vector.broadcast %166 : vector<1x128xf32> to vector<16x128xf32>
    %168 = arith.addf %165, %167 : vector<16x128xf32>
    %169 = arith.addf %168, %21 : vector<16x128xf32>
    %cst_81 = arith.constant dense<0.000000e+00> : vector<128xf32>
    %170 = vector.multi_reduction <add>, %169, %cst_81 [0] : vector<16x128xf32> to vector<128xf32>
    %171 = vector.shape_cast %170 : vector<128xf32> to vector<1x128xf32>
    %172 = arith.mulf %169, %169 : vector<16x128xf32>
    %cst_82 = arith.constant dense<0.000000e+00> : vector<128xf32>
    %173 = vector.multi_reduction <add>, %172, %cst_82 [0] : vector<16x128xf32> to vector<128xf32>
    %174 = vector.shape_cast %173 : vector<128xf32> to vector<1x128xf32>
    %175 = tpu.concatenate %171, %174 in 0 : vector<1x128xf32>, vector<1x128xf32> -> vector<2x128xf32>
    %c0_83 = arith.constant 0 : index
    %c0_84 = arith.constant 0 : index
    %176 = vector.load %arg1[%c0_83, %c0_84] : memref<128x16xf32, #tpu.memory_space<vmem>>, vector<128x16xf32>
    %cst_85 = arith.constant dense<0.000000e+00> : vector<2x16xf32>
    %177 = tpu.matmul %175, %176, %cst_85 {dimension_numbers = #tpu.dot_dimension_numbers<[1], [0], [0], [1], [0, 0, 1, 1], [], []>} : vector<2x128xf32>, vector<128x16xf32>, vector<2x16xf32> -> vector<2x16xf32>
    %178 = vector.extract_strided_slice %177 {offsets = [0, 0], sizes = [1, 16], strides = [1, 1]} : vector<2x16xf32> to vector<1x16xf32>
    %cst_86 = arith.constant 7.812500e-03 : f32
    %179 = vector.broadcast %cst_86 : f32 to vector<1x16xf32>
    %180 = arith.mulf %178, %179 : vector<1x16xf32>
    %181 = vector.extract_strided_slice %177 {offsets = [1, 0], sizes = [1, 16], strides = [1, 1]} : vector<2x16xf32> to vector<1x16xf32>
    %cst_87 = arith.constant 7.812500e-03 : f32
    %182 = vector.broadcast %cst_87 : f32 to vector<1x16xf32>
    %183 = arith.mulf %181, %182 : vector<1x16xf32>
    %184 = arith.mulf %180, %180 : vector<1x16xf32>
    %185 = arith.subf %183, %184 : vector<1x16xf32>
    %c0_88 = arith.constant 0 : index
    %c0_89 = arith.constant 0 : index
    %186 = vector.load %arg14[%c0_88, %c0_89] : memref<1x16xf32, #tpu.memory_space<vmem>>, vector<1x16xf32>
    %cst_90 = arith.constant 9.99999974E-6 : f32
    %187 = vector.broadcast %cst_90 : f32 to vector<1x16xf32>
    %188 = arith.addf %185, %187 : vector<1x16xf32>
    %189 = math.rsqrt %188 : vector<1x16xf32>
    %190 = arith.mulf %186, %189 : vector<1x16xf32>
    %c0_91 = arith.constant 0 : index
    %c0_92 = arith.constant 0 : index
    %191 = vector.load %arg15[%c0_91, %c0_92] : memref<1x16xf32, #tpu.memory_space<vmem>>, vector<1x16xf32>
    %192 = arith.mulf %180, %190 : vector<1x16xf32>
    %193 = arith.subf %191, %192 : vector<1x16xf32>
    %194 = tpu.concatenate %190, %193 in 0 : vector<1x16xf32>, vector<1x16xf32> -> vector<2x16xf32>
    %c0_93 = arith.constant 0 : index
    %c0_94 = arith.constant 0 : index
    %195 = vector.load %arg2[%c0_93, %c0_94] : memref<16x128xf32, #tpu.memory_space<vmem>>, vector<16x128xf32>
    %cst_95 = arith.constant dense<0.000000e+00> : vector<2x128xf32>
    %196 = tpu.matmul %194, %195, %cst_95 {dimension_numbers = #tpu.dot_dimension_numbers<[1], [0], [0], [1], [0, 0, 1, 1], [], []>} : vector<2x16xf32>, vector<16x128xf32>, vector<2x128xf32> -> vector<2x128xf32>
    %197 = vector.extract_strided_slice %196 {offsets = [0, 0], sizes = [1, 128], strides = [1, 1]} : vector<2x128xf32> to vector<1x128xf32>
    %198 = vector.broadcast %197 : vector<1x128xf32> to vector<16x128xf32>
    %199 = arith.mulf %169, %198 : vector<16x128xf32>
    %200 = vector.extract_strided_slice %196 {offsets = [1, 0], sizes = [1, 128], strides = [1, 1]} : vector<2x128xf32> to vector<1x128xf32>
    %201 = vector.broadcast %200 : vector<1x128xf32> to vector<16x128xf32>
    %202 = arith.addf %199, %201 : vector<16x128xf32>
    %c1_i32_96 = arith.constant 1 : i32
    %203 = tpu.dynamic_rotate %202 by %c1_i32_96 dim 0 : vector<16x128xf32>, i32 -> vector<16x128xf32>
    %cst_97 = arith.constant 0.000000e+00 : f32
    %204 = vector.shape_cast %18 : vector<16x1xi1> to vector<16x1xi1>
    %205 = vector.broadcast %204 : vector<16x1xi1> to vector<16x128xi1>
    %206 = vector.broadcast %cst_97 : f32 to vector<16x128xf32>
    %207 = arith.select %205, %203, %206 : vector<16x128xi1>, vector<16x128xf32>
    %c15_i32_98 = arith.constant 15 : i32
    %208 = tpu.dynamic_rotate %202 by %c15_i32_98 dim 0 : vector<16x128xf32>, i32 -> vector<16x128xf32>
    %cst_99 = arith.constant 0.000000e+00 : f32
    %209 = vector.shape_cast %20 : vector<16x1xi1> to vector<16x1xi1>
    %210 = vector.broadcast %209 : vector<16x1xi1> to vector<16x128xi1>
    %211 = vector.broadcast %cst_99 : f32 to vector<16x128xf32>
    %212 = arith.select %210, %208, %211 : vector<16x128xi1>, vector<16x128xf32>
    %c0_100 = arith.constant 0 : index
    %c0_101 = arith.constant 0 : index
    %c0_102 = arith.constant 0 : index
    %213 = vector.load %arg16[%c0_100, %c0_101, %c0_102] : memref<3x128x256xf32, #tpu.memory_space<vmem>>, vector<1x128x256xf32>
    %214 = vector.shape_cast %213 : vector<1x128x256xf32> to vector<128x256xf32>
    %cst_103 = arith.constant dense<0.000000e+00> : vector<16x256xf32>
    %215 = tpu.matmul %207, %214, %cst_103 {dimension_numbers = #tpu.dot_dimension_numbers<[1], [0], [0], [1], [0, 0, 1, 1], [], []>} : vector<16x128xf32>, vector<128x256xf32>, vector<16x256xf32> -> vector<16x256xf32>
    %c1_104 = arith.constant 1 : index
    %c0_105 = arith.constant 0 : index
    %c0_106 = arith.constant 0 : index
    %216 = vector.load %arg16[%c1_104, %c0_105, %c0_106] : memref<3x128x256xf32, #tpu.memory_space<vmem>>, vector<1x128x256xf32>
    %217 = vector.shape_cast %216 : vector<1x128x256xf32> to vector<128x256xf32>
    %cst_107 = arith.constant dense<0.000000e+00> : vector<16x256xf32>
    %218 = tpu.matmul %202, %217, %cst_107 {dimension_numbers = #tpu.dot_dimension_numbers<[1], [0], [0], [1], [0, 0, 1, 1], [], []>} : vector<16x128xf32>, vector<128x256xf32>, vector<16x256xf32> -> vector<16x256xf32>
    %219 = arith.addf %215, %218 : vector<16x256xf32>
    %c2_108 = arith.constant 2 : index
    %c0_109 = arith.constant 0 : index
    %c0_110 = arith.constant 0 : index
    %220 = vector.load %arg16[%c2_108, %c0_109, %c0_110] : memref<3x128x256xf32, #tpu.memory_space<vmem>>, vector<1x128x256xf32>
    %221 = vector.shape_cast %220 : vector<1x128x256xf32> to vector<128x256xf32>
    %cst_111 = arith.constant dense<0.000000e+00> : vector<16x256xf32>
    %222 = tpu.matmul %212, %221, %cst_111 {dimension_numbers = #tpu.dot_dimension_numbers<[1], [0], [0], [1], [0, 0, 1, 1], [], []>} : vector<16x128xf32>, vector<128x256xf32>, vector<16x256xf32> -> vector<16x256xf32>
    %223 = arith.addf %219, %222 : vector<16x256xf32>
    %cst_112 = arith.constant dense<0.000000e+00> : vector<256xf32>
    %224 = vector.multi_reduction <add>, %223, %cst_112 [0] : vector<16x256xf32> to vector<256xf32>
    %225 = vector.shape_cast %224 : vector<256xf32> to vector<1x256xf32>
    %226 = arith.mulf %223, %223 : vector<16x256xf32>
    %cst_113 = arith.constant dense<0.000000e+00> : vector<256xf32>
    %227 = vector.multi_reduction <add>, %226, %cst_113 [0] : vector<16x256xf32> to vector<256xf32>
    %228 = vector.shape_cast %227 : vector<256xf32> to vector<1x256xf32>
    %229 = tpu.concatenate %225, %228 in 0 : vector<1x256xf32>, vector<1x256xf32> -> vector<2x256xf32>
    %c0_114 = arith.constant 0 : index
    %c0_115 = arith.constant 0 : index
    %230 = vector.load %arg12[%c0_114, %c0_115] : memref<256x32xf32, #tpu.memory_space<vmem>>, vector<256x32xf32>
    %cst_116 = arith.constant dense<0.000000e+00> : vector<2x32xf32>
    %231 = tpu.matmul %229, %230, %cst_116 {dimension_numbers = #tpu.dot_dimension_numbers<[1], [0], [0], [1], [0, 0, 1, 1], [], []>} : vector<2x256xf32>, vector<256x32xf32>, vector<2x32xf32> -> vector<2x32xf32>
    %232 = vector.extract_strided_slice %231 {offsets = [0, 0], sizes = [1, 32], strides = [1, 1]} : vector<2x32xf32> to vector<1x32xf32>
    %cst_117 = arith.constant 7.812500e-03 : f32
    %233 = vector.broadcast %cst_117 : f32 to vector<1x32xf32>
    %234 = arith.mulf %232, %233 : vector<1x32xf32>
    %235 = vector.extract_strided_slice %231 {offsets = [1, 0], sizes = [1, 32], strides = [1, 1]} : vector<2x32xf32> to vector<1x32xf32>
    %cst_118 = arith.constant 7.812500e-03 : f32
    %236 = vector.broadcast %cst_118 : f32 to vector<1x32xf32>
    %237 = arith.mulf %235, %236 : vector<1x32xf32>
    %238 = arith.mulf %234, %234 : vector<1x32xf32>
    %239 = arith.subf %237, %238 : vector<1x32xf32>
    %c0_119 = arith.constant 0 : index
    %c0_120 = arith.constant 0 : index
    %240 = vector.load %arg17[%c0_119, %c0_120] : memref<1x32xf32, #tpu.memory_space<vmem>>, vector<1x32xf32>
    %cst_121 = arith.constant 9.99999974E-6 : f32
    %241 = vector.broadcast %cst_121 : f32 to vector<1x32xf32>
    %242 = arith.addf %239, %241 : vector<1x32xf32>
    %243 = math.rsqrt %242 : vector<1x32xf32>
    %244 = arith.mulf %240, %243 : vector<1x32xf32>
    %c0_122 = arith.constant 0 : index
    %c0_123 = arith.constant 0 : index
    %245 = vector.load %arg18[%c0_122, %c0_123] : memref<1x32xf32, #tpu.memory_space<vmem>>, vector<1x32xf32>
    %246 = arith.mulf %234, %244 : vector<1x32xf32>
    %247 = arith.subf %245, %246 : vector<1x32xf32>
    %248 = tpu.concatenate %244, %247 in 0 : vector<1x32xf32>, vector<1x32xf32> -> vector<2x32xf32>
    %c0_124 = arith.constant 0 : index
    %c0_125 = arith.constant 0 : index
    %249 = vector.load %arg13[%c0_124, %c0_125] : memref<32x256xf32, #tpu.memory_space<vmem>>, vector<32x256xf32>
    %cst_126 = arith.constant dense<0.000000e+00> : vector<2x256xf32>
    %250 = tpu.matmul %248, %249, %cst_126 {dimension_numbers = #tpu.dot_dimension_numbers<[1], [0], [0], [1], [0, 0, 1, 1], [], []>} : vector<2x32xf32>, vector<32x256xf32>, vector<2x256xf32> -> vector<2x256xf32>
    %251 = vector.extract_strided_slice %250 {offsets = [0, 0], sizes = [1, 256], strides = [1, 1]} : vector<2x256xf32> to vector<1x256xf32>
    %252 = vector.broadcast %251 : vector<1x256xf32> to vector<16x256xf32>
    %253 = arith.mulf %223, %252 : vector<16x256xf32>
    %254 = vector.extract_strided_slice %250 {offsets = [1, 0], sizes = [1, 256], strides = [1, 1]} : vector<2x256xf32> to vector<1x256xf32>
    %255 = vector.broadcast %254 : vector<1x256xf32> to vector<16x256xf32>
    %256 = arith.addf %253, %255 : vector<16x256xf32>
    %c0_127 = arith.constant 0 : index
    %c0_128 = arith.constant 0 : index
    %257 = vector.load %arg19[%c0_127, %c0_128] : memref<1x256xf32, #tpu.memory_space<vmem>>, vector<1x256xf32>
    %cst_129 = arith.constant 0.000000e+00 : f32
    %258 = vector.broadcast %cst_129 : f32 to vector<16x256xf32>
    %259 = arith.cmpf oge, %256, %258 : vector<16x256xf32>
    %260 = vector.broadcast %257 : vector<1x256xf32> to vector<16x256xf32>
    %261 = arith.mulf %260, %256 : vector<16x256xf32>
    %262 = arith.select %259, %256, %261 : vector<16x256xi1>, vector<16x256xf32>
    %c1_i32_130 = arith.constant 1 : i32
    %263 = tpu.dynamic_rotate %262 by %c1_i32_130 dim 0 : vector<16x256xf32>, i32 -> vector<16x256xf32>
    %cst_131 = arith.constant 0.000000e+00 : f32
    %264 = vector.shape_cast %18 : vector<16x1xi1> to vector<16x1xi1>
    %265 = vector.broadcast %264 : vector<16x1xi1> to vector<16x256xi1>
    %266 = vector.broadcast %cst_131 : f32 to vector<16x256xf32>
    %267 = arith.select %265, %263, %266 : vector<16x256xi1>, vector<16x256xf32>
    %c15_i32_132 = arith.constant 15 : i32
    %268 = tpu.dynamic_rotate %262 by %c15_i32_132 dim 0 : vector<16x256xf32>, i32 -> vector<16x256xf32>
    %cst_133 = arith.constant 0.000000e+00 : f32
    %269 = vector.shape_cast %20 : vector<16x1xi1> to vector<16x1xi1>
    %270 = vector.broadcast %269 : vector<16x1xi1> to vector<16x256xi1>
    %271 = vector.broadcast %cst_133 : f32 to vector<16x256xf32>
    %272 = arith.select %270, %268, %271 : vector<16x256xi1>, vector<16x256xf32>
    %c0_134 = arith.constant 0 : index
    %c0_135 = arith.constant 0 : index
    %c0_136 = arith.constant 0 : index
    %273 = vector.load %arg20[%c0_134, %c0_135, %c0_136] : memref<3x256x256xf32, #tpu.memory_space<vmem>>, vector<1x256x256xf32>
    %274 = vector.shape_cast %273 : vector<1x256x256xf32> to vector<256x256xf32>
    %cst_137 = arith.constant dense<0.000000e+00> : vector<16x256xf32>
    %275 = tpu.matmul %267, %274, %cst_137 {dimension_numbers = #tpu.dot_dimension_numbers<[1], [0], [0], [1], [0, 0, 1, 1], [], []>} : vector<16x256xf32>, vector<256x256xf32>, vector<16x256xf32> -> vector<16x256xf32>
    %c1_138 = arith.constant 1 : index
    %c0_139 = arith.constant 0 : index
    %c0_140 = arith.constant 0 : index
    %276 = vector.load %arg20[%c1_138, %c0_139, %c0_140] : memref<3x256x256xf32, #tpu.memory_space<vmem>>, vector<1x256x256xf32>
    %277 = vector.shape_cast %276 : vector<1x256x256xf32> to vector<256x256xf32>
    %cst_141 = arith.constant dense<0.000000e+00> : vector<16x256xf32>
    %278 = tpu.matmul %262, %277, %cst_141 {dimension_numbers = #tpu.dot_dimension_numbers<[1], [0], [0], [1], [0, 0, 1, 1], [], []>} : vector<16x256xf32>, vector<256x256xf32>, vector<16x256xf32> -> vector<16x256xf32>
    %279 = arith.addf %275, %278 : vector<16x256xf32>
    %c2_142 = arith.constant 2 : index
    %c0_143 = arith.constant 0 : index
    %c0_144 = arith.constant 0 : index
    %280 = vector.load %arg20[%c2_142, %c0_143, %c0_144] : memref<3x256x256xf32, #tpu.memory_space<vmem>>, vector<1x256x256xf32>
    %281 = vector.shape_cast %280 : vector<1x256x256xf32> to vector<256x256xf32>
    %cst_145 = arith.constant dense<0.000000e+00> : vector<16x256xf32>
    %282 = tpu.matmul %272, %281, %cst_145 {dimension_numbers = #tpu.dot_dimension_numbers<[1], [0], [0], [1], [0, 0, 1, 1], [], []>} : vector<16x256xf32>, vector<256x256xf32>, vector<16x256xf32> -> vector<16x256xf32>
    %283 = arith.addf %279, %282 : vector<16x256xf32>
    %cst_146 = arith.constant dense<0.000000e+00> : vector<256xf32>
    %284 = vector.multi_reduction <add>, %283, %cst_146 [0] : vector<16x256xf32> to vector<256xf32>
    %285 = vector.shape_cast %284 : vector<256xf32> to vector<1x256xf32>
    %286 = arith.mulf %283, %283 : vector<16x256xf32>
    %cst_147 = arith.constant dense<0.000000e+00> : vector<256xf32>
    %287 = vector.multi_reduction <add>, %286, %cst_147 [0] : vector<16x256xf32> to vector<256xf32>
    %288 = vector.shape_cast %287 : vector<256xf32> to vector<1x256xf32>
    %289 = tpu.concatenate %285, %288 in 0 : vector<1x256xf32>, vector<1x256xf32> -> vector<2x256xf32>
    %c0_148 = arith.constant 0 : index
    %c0_149 = arith.constant 0 : index
    %290 = vector.load %arg12[%c0_148, %c0_149] : memref<256x32xf32, #tpu.memory_space<vmem>>, vector<256x32xf32>
    %cst_150 = arith.constant dense<0.000000e+00> : vector<2x32xf32>
    %291 = tpu.matmul %289, %290, %cst_150 {dimension_numbers = #tpu.dot_dimension_numbers<[1], [0], [0], [1], [0, 0, 1, 1], [], []>} : vector<2x256xf32>, vector<256x32xf32>, vector<2x32xf32> -> vector<2x32xf32>
    %292 = vector.extract_strided_slice %291 {offsets = [0, 0], sizes = [1, 32], strides = [1, 1]} : vector<2x32xf32> to vector<1x32xf32>
    %cst_151 = arith.constant 7.812500e-03 : f32
    %293 = vector.broadcast %cst_151 : f32 to vector<1x32xf32>
    %294 = arith.mulf %292, %293 : vector<1x32xf32>
    %295 = vector.extract_strided_slice %291 {offsets = [1, 0], sizes = [1, 32], strides = [1, 1]} : vector<2x32xf32> to vector<1x32xf32>
    %cst_152 = arith.constant 7.812500e-03 : f32
    %296 = vector.broadcast %cst_152 : f32 to vector<1x32xf32>
    %297 = arith.mulf %295, %296 : vector<1x32xf32>
    %298 = arith.mulf %294, %294 : vector<1x32xf32>
    %299 = arith.subf %297, %298 : vector<1x32xf32>
    %c0_153 = arith.constant 0 : index
    %c0_154 = arith.constant 0 : index
    %300 = vector.load %arg21[%c0_153, %c0_154] : memref<1x32xf32, #tpu.memory_space<vmem>>, vector<1x32xf32>
    %cst_155 = arith.constant 9.99999974E-6 : f32
    %301 = vector.broadcast %cst_155 : f32 to vector<1x32xf32>
    %302 = arith.addf %299, %301 : vector<1x32xf32>
    %303 = math.rsqrt %302 : vector<1x32xf32>
    %304 = arith.mulf %300, %303 : vector<1x32xf32>
    %c0_156 = arith.constant 0 : index
    %c0_157 = arith.constant 0 : index
    %305 = vector.load %arg22[%c0_156, %c0_157] : memref<1x32xf32, #tpu.memory_space<vmem>>, vector<1x32xf32>
    %306 = arith.mulf %294, %304 : vector<1x32xf32>
    %307 = arith.subf %305, %306 : vector<1x32xf32>
    %308 = tpu.concatenate %304, %307 in 0 : vector<1x32xf32>, vector<1x32xf32> -> vector<2x32xf32>
    %c0_158 = arith.constant 0 : index
    %c0_159 = arith.constant 0 : index
    %309 = vector.load %arg13[%c0_158, %c0_159] : memref<32x256xf32, #tpu.memory_space<vmem>>, vector<32x256xf32>
    %cst_160 = arith.constant dense<0.000000e+00> : vector<2x256xf32>
    %310 = tpu.matmul %308, %309, %cst_160 {dimension_numbers = #tpu.dot_dimension_numbers<[1], [0], [0], [1], [0, 0, 1, 1], [], []>} : vector<2x32xf32>, vector<32x256xf32>, vector<2x256xf32> -> vector<2x256xf32>
    %311 = vector.extract_strided_slice %310 {offsets = [0, 0], sizes = [1, 256], strides = [1, 1]} : vector<2x256xf32> to vector<1x256xf32>
    %312 = vector.broadcast %311 : vector<1x256xf32> to vector<16x256xf32>
    %313 = arith.mulf %283, %312 : vector<16x256xf32>
    %314 = vector.extract_strided_slice %310 {offsets = [1, 0], sizes = [1, 256], strides = [1, 1]} : vector<2x256xf32> to vector<1x256xf32>
    %315 = vector.broadcast %314 : vector<1x256xf32> to vector<16x256xf32>
    %316 = arith.addf %313, %315 : vector<16x256xf32>
    %c0_161 = arith.constant 0 : index
    %c0_162 = arith.constant 0 : index
    %317 = vector.load %arg23[%c0_161, %c0_162] : memref<128x256xf32, #tpu.memory_space<vmem>>, vector<128x256xf32>
    %cst_163 = arith.constant dense<0.000000e+00> : vector<16x256xf32>
    %318 = tpu.matmul %169, %317, %cst_163 {dimension_numbers = #tpu.dot_dimension_numbers<[1], [0], [0], [1], [0, 0, 1, 1], [], []>} : vector<16x128xf32>, vector<128x256xf32>, vector<16x256xf32> -> vector<16x256xf32>
    %cst_164 = arith.constant dense<0.000000e+00> : vector<256xf32>
    %319 = vector.multi_reduction <add>, %318, %cst_164 [0] : vector<16x256xf32> to vector<256xf32>
    %320 = vector.shape_cast %319 : vector<256xf32> to vector<1x256xf32>
    %321 = arith.mulf %318, %318 : vector<16x256xf32>
    %cst_165 = arith.constant dense<0.000000e+00> : vector<256xf32>
    %322 = vector.multi_reduction <add>, %321, %cst_165 [0] : vector<16x256xf32> to vector<256xf32>
    %323 = vector.shape_cast %322 : vector<256xf32> to vector<1x256xf32>
    %324 = tpu.concatenate %320, %323 in 0 : vector<1x256xf32>, vector<1x256xf32> -> vector<2x256xf32>
    %c0_166 = arith.constant 0 : index
    %c0_167 = arith.constant 0 : index
    %325 = vector.load %arg12[%c0_166, %c0_167] : memref<256x32xf32, #tpu.memory_space<vmem>>, vector<256x32xf32>
    %cst_168 = arith.constant dense<0.000000e+00> : vector<2x32xf32>
    %326 = tpu.matmul %324, %325, %cst_168 {dimension_numbers = #tpu.dot_dimension_numbers<[1], [0], [0], [1], [0, 0, 1, 1], [], []>} : vector<2x256xf32>, vector<256x32xf32>, vector<2x32xf32> -> vector<2x32xf32>
    %327 = vector.extract_strided_slice %326 {offsets = [0, 0], sizes = [1, 32], strides = [1, 1]} : vector<2x32xf32> to vector<1x32xf32>
    %cst_169 = arith.constant 7.812500e-03 : f32
    %328 = vector.broadcast %cst_169 : f32 to vector<1x32xf32>
    %329 = arith.mulf %327, %328 : vector<1x32xf32>
    %330 = vector.extract_strided_slice %326 {offsets = [1, 0], sizes = [1, 32], strides = [1, 1]} : vector<2x32xf32> to vector<1x32xf32>
    %cst_170 = arith.constant 7.812500e-03 : f32
    %331 = vector.broadcast %cst_170 : f32 to vector<1x32xf32>
    %332 = arith.mulf %330, %331 : vector<1x32xf32>
    %333 = arith.mulf %329, %329 : vector<1x32xf32>
    %334 = arith.subf %332, %333 : vector<1x32xf32>
    %c0_171 = arith.constant 0 : index
    %c0_172 = arith.constant 0 : index
    %335 = vector.load %arg24[%c0_171, %c0_172] : memref<1x32xf32, #tpu.memory_space<vmem>>, vector<1x32xf32>
    %cst_173 = arith.constant 9.99999974E-6 : f32
    %336 = vector.broadcast %cst_173 : f32 to vector<1x32xf32>
    %337 = arith.addf %334, %336 : vector<1x32xf32>
    %338 = math.rsqrt %337 : vector<1x32xf32>
    %339 = arith.mulf %335, %338 : vector<1x32xf32>
    %c0_174 = arith.constant 0 : index
    %c0_175 = arith.constant 0 : index
    %340 = vector.load %arg25[%c0_174, %c0_175] : memref<1x32xf32, #tpu.memory_space<vmem>>, vector<1x32xf32>
    %341 = arith.mulf %329, %339 : vector<1x32xf32>
    %342 = arith.subf %340, %341 : vector<1x32xf32>
    %343 = tpu.concatenate %339, %342 in 0 : vector<1x32xf32>, vector<1x32xf32> -> vector<2x32xf32>
    %c0_176 = arith.constant 0 : index
    %c0_177 = arith.constant 0 : index
    %344 = vector.load %arg13[%c0_176, %c0_177] : memref<32x256xf32, #tpu.memory_space<vmem>>, vector<32x256xf32>
    %cst_178 = arith.constant dense<0.000000e+00> : vector<2x256xf32>
    %345 = tpu.matmul %343, %344, %cst_178 {dimension_numbers = #tpu.dot_dimension_numbers<[1], [0], [0], [1], [0, 0, 1, 1], [], []>} : vector<2x32xf32>, vector<32x256xf32>, vector<2x256xf32> -> vector<2x256xf32>
    %346 = vector.extract_strided_slice %345 {offsets = [0, 0], sizes = [1, 256], strides = [1, 1]} : vector<2x256xf32> to vector<1x256xf32>
    %347 = vector.broadcast %346 : vector<1x256xf32> to vector<16x256xf32>
    %348 = arith.mulf %318, %347 : vector<16x256xf32>
    %349 = vector.extract_strided_slice %345 {offsets = [1, 0], sizes = [1, 256], strides = [1, 1]} : vector<2x256xf32> to vector<1x256xf32>
    %350 = vector.broadcast %349 : vector<1x256xf32> to vector<16x256xf32>
    %351 = arith.addf %348, %350 : vector<16x256xf32>
    %352 = arith.addf %316, %351 : vector<16x256xf32>
    %c0_179 = arith.constant 0 : index
    %c0_180 = arith.constant 0 : index
    %353 = vector.load %arg26[%c0_179, %c0_180] : memref<16x256xf32, #tpu.memory_space<vmem>>, vector<16x256xf32>
    tpu.vector_store %arg26[%c0_179, %c0_180], %352 {strides = array<i32>} : memref<16x256xf32, #tpu.memory_space<vmem>>, vector<16x256xf32>,
    return
  }
}

</mosaic_0001>

<bundles_post_ra>
// kernel: tile.34
= control target key start
LH: loop header
LB: loop body
LE: loop exit
PB: predicated region body
PF: predicated region fallthrough
CT: control target
= control target key end

     0   :  { %vm92_vm0 = vcmask 1047556   ;;  %s459_s14 = smov 96   ;;  %s460_s26 = smov 64   ;;  %vm3_vm1 = vcmask 261120   ;;  %vm96_vm2 = vcmask 1048320   ;;  %vm183_vm3 = vcmask 785920   ;;  %s904_s0 = inlined_call_operand.vmem [shape: f32[8,32,32], index: 0, kind: input, shape index: {}]   ;;  %s905_s1 = inlined_call_operand.vmem [shape: f32[256,32], index: 1, kind: output, shape index: {}]  }
   0x1   :  { %v392_v0 = vld [vmem:[%s904_s0 + $0x7] ss:$8 sm:$0xf]   ;;  %v387_v3 = vld [vmem:[%s904_s0 + $0x3] ss:$8 sm:$0xf]  }
   0x2   :  { %v393_v1 = vld [vmem:[%s904_s0 + $0x7] ss:$8 sm:$0xf0]   ;;  %v388_v4 = vld [vmem:[%s904_s0 + $0x3] ss:$8 sm:$0xf0]  }
   0x3   :  { %v114_v2 = vsel %vm92_vm0, %v393_v1, %v392_v0  ;;  %v93_v5 = vsel %vm92_vm0, %v388_v4, %v387_v3  ;;  %v395_v6 = vld [vmem:[%s904_s0 + $0x87] ss:$8 sm:$0xf]   ;;  %v389_v9 = vld [vmem:[%s904_s0 + $0x83] ss:$8 sm:$0xf]  }
   0x4   :  { %115 = vrot.lane.b32.xlu1 %v114_v2, %s459_s14  ;;  %v396_v7 = vld [vmem:[%s904_s0 + $0x87] ss:$8 sm:$0xf0]   ;;  %94 = vrot.lane.b32.xlu0 %v93_v5, %s459_s14  ;;  %v390_v10 = vld [vmem:[%s904_s0 + $0x83] ss:$8 sm:$0xf0]  }
   0x5   :  { %v125_v8 = vsel %vm92_vm0, %v396_v7, %v395_v6  ;;  %v103_v11 = vsel %vm92_vm0, %v390_v10, %v389_v9  ;;  %v401_v12 = vld [vmem:[%s904_s0 + $0xc3] ss:$8 sm:$0xf]   ;;  %v407_v18 = vld [vmem:[%s904_s0 + $0xc7] ss:$8 sm:$0xf]  }
   0x6   :  { %v402_v13 = vld [vmem:[%s904_s0 + $0xc3] ss:$8 sm:$0xf0]   ;;  %v408_v19 = vld [vmem:[%s904_s0 + $0xc7] ss:$8 sm:$0xf0]  }
   0x7   :  { %v398_v14 = vld [vmem:[%s904_s0 + $0x43] ss:$8 sm:$0xf]   ;;  %v147_v16 = vsel %vm92_vm0, %v402_v13, %v401_v12  ;;  %v404_v20 = vld [vmem:[%s904_s0 + $0x47] ss:$8 sm:$0xf]   ;;  %v169_v22 = vsel %vm92_vm0, %v408_v19, %v407_v18 }
   0x8   :  { %v399_v15 = vld [vmem:[%s904_s0 + $0x43] ss:$8 sm:$0xf0]   ;;  %126 = vrot.lane.b32.xlu1 %v125_v8, %s459_s14  ;;  %104 = vrot.lane.b32.xlu0 %v103_v11, %s459_s14  ;;  %v405_v21 = vld [vmem:[%s904_s0 + $0x47] ss:$8 sm:$0xf0]  }
   0x9   :  { %v136_v17 = vsel %vm92_vm0, %v399_v15, %v398_v14  ;;  %v158_v23 = vsel %vm92_vm0, %v405_v21, %v404_v20  ;;  %v412_v24 = vld [vmem:[%s904_s0 + $0x82] ss:$8 sm:$0xf]   ;;  %v418_v30 = vld [vmem:[%s904_s0 + $0x86] ss:$8 sm:$0xf]  }
   0xa   :  { %v413_v25 = vld [vmem:[%s904_s0 + $0x82] ss:$8 sm:$0xf0]   ;;  %v419_v31 = vld [vmem:[%s904_s0 + $0x86] ss:$8 sm:$0xf0]  }
   0xb   :  { %v410_v26 = vld [vmem:[%s904_s0 + $0x2] ss:$8 sm:$0xf]   ;;  %v190_v28 = vsel %vm92_vm0, %v413_v25, %v412_v24  ;;  %v415_v32 = vld [vmem:[%s904_s0 + $0x6] ss:$8 sm:$0xf]   ;;  %v212_v34 = vsel %vm92_vm0, %v419_v31, %v418_v30 }
   0xc   :  { %148 = vrot.lane.b32.xlu1 %v147_v16, %s459_s14  ;;  %137 = vrot.lane.b32.xlu0 %v136_v17, %s459_s14  ;;  %v411_v27 = vld [vmem:[%s904_s0 + $0x2] ss:$8 sm:$0xf0]   ;;  %v416_v33 = vld [vmem:[%s904_s0 + $0x6] ss:$8 sm:$0xf0]  }
   0xd   :  { %v180_v29 = vsel %vm92_vm0, %v411_v27, %v410_v26  ;;  %v201_v35 = vsel %vm92_vm0, %v416_v33, %v415_v32  ;;  %v424_v36 = vld [vmem:[%s904_s0 + $0xc2] ss:$8 sm:$0xf]   ;;  %v430_v40 = vld [vmem:[%s904_s0 + $0xc6] ss:$8 sm:$0xf]  }
   0xe   :  { %v425_v37 = vld [vmem:[%s904_s0 + $0xc2] ss:$8 sm:$0xf0]   ;;  %v431_v42 = vld [vmem:[%s904_s0 + $0xc6] ss:$8 sm:$0xf0]  }
   0xf   :  { %v421_v38 = vld [vmem:[%s904_s0 + $0x42] ss:$8 sm:$0xf]   ;;  %v234_v41 = vsel %vm92_vm0, %v425_v37, %v424_v36  ;;  %v427_v43 = vld [vmem:[%s904_s0 + $0x46] ss:$8 sm:$0xf]   ;;  %v256_v53 = vsel %vm92_vm0, %v431_v42, %v430_v40 }
  0x10   :  { %170 = vrot.lane.b32.xlu1 %v169_v22, %s459_s14  ;;  %159 = vrot.lane.b32.xlu0 %v158_v23, %s459_s14  ;;  %v422_v39 = vld [vmem:[%s904_s0 + $0x42] ss:$8 sm:$0xf0]   ;;  %v428_v45 = vld [vmem:[%s904_s0 + $0x46] ss:$8 sm:$0xf0]  }
  0x11   :  { %v223_v44 = vsel %vm92_vm0, %v422_v39, %v421_v38  ;;  %v367_v46 = vld [vmem:[%s904_s0 + $0x80] ss:$4 sm:$0xff]   ;;  %v245_v55 = vsel %vm92_vm0, %v428_v45, %v427_v43  ;;  %v435_v56 = vld [vmem:[%s904_s0 + $0x81] ss:$8 sm:$0xf]   ;;  %s461_s25 = smov 32  }
  0x12   :  { %368 = vst.msk [vmem:[%s905_s1 + $0x20] ss:$8 sm:$0x3] %vm3_vm1, %v367_v46   ;;  %369 = vst.msk [vmem:[%s905_s1 + $0x11] ss:$8 sm:$0xc] %vm3_vm1, %v367_v46  }
  0x13   :  { %370 = vst.msk [vmem:[%s905_s1 + $0x2] ss:$8 sm:$0x30] %vm3_vm1, %v367_v46   ;;  %371 = vst.msk [vmem:[%s905_s1 - $0xd] ss:$8 sm:$0xc0] %vm3_vm1, %v367_v46  }
  0x14   :  { %191 = vrot.lane.b32.xlu1 %v190_v28, %s460_s26  ;;  %181 = vrot.lane.b32.xlu0 %v180_v29, %s460_s26  ;;  %v372_v47 = vld [vmem:[%s904_s0 + $0xa0] ss:$4 sm:$0xff]   ;;  %v436_v57 = vld [vmem:[%s904_s0 + $0x81] ss:$8 sm:$0xf0]   ;;  %vm270_vm4 = vcmask 523520  }
  0x15   :  { %v2_v48 = vld [vmem:[%s904_s0] ss:$4 sm:$0xff]   ;;  %373 = vst.msk [vmem:[%s905_s1 + $0x24] ss:$8 sm:$0x3] %vm3_vm1, %v372_v47   ;;  %v277_v60 = vsel %vm92_vm0, %v436_v57, %v435_v56 }
  0x16   :  { %v352_v49 = vld [vmem:[%s904_s0 + $0x20] ss:$4 sm:$0xff]   ;;  %374 = vst.msk [vmem:[%s905_s1 + $0x15] ss:$8 sm:$0xc] %vm3_vm1, %v372_v47  }
  0x17   :  { %375 = vst.msk [vmem:[%s905_s1 + $0x6] ss:$8 sm:$0x30] %vm3_vm1, %v372_v47   ;;  %376 = vst.msk [vmem:[%s905_s1 - $0x9] ss:$8 sm:$0xc0] %vm3_vm1, %v372_v47  }
  0x18   :  { %213 = vrot.lane.b32.xlu1 %v212_v34, %s460_s26  ;;  %202 = vrot.lane.b32.xlu0 %v201_v35, %s460_s26  ;;  %4 = vst.msk [vmem:[%s905_s1] ss:$8 sm:$0x3] %vm3_vm1, %v2_v48   ;;  %349 = vst.msk [vmem:[%s905_s1 - $0xf] ss:$8 sm:$0xc] %vm3_vm1, %v2_v48  }
  0x19   :  { %350 = vst.msk [vmem:[%s905_s1 - $0x1e] ss:$8 sm:$0x30] %vm3_vm1, %v2_v48   ;;  %351 = vst.msk [vmem:[%s905_s1 - $0x2d] ss:$8 sm:$0xc0] %vm3_vm1, %v2_v48  }
  0x1a   :  { %353 = vst.msk [vmem:[%s905_s1 + $0x4] ss:$8 sm:$0x3] %vm3_vm1, %v352_v49   ;;  %354 = vst.msk [vmem:[%s905_s1 - $0xb] ss:$8 sm:$0xc] %vm3_vm1, %v352_v49  }
  0x1b   :  { %355 = vst.msk [vmem:[%s905_s1 - $0x1a] ss:$8 sm:$0x30] %vm3_vm1, %v352_v49   ;;  %356 = vst.msk [vmem:[%s905_s1 - $0x29] ss:$8 sm:$0xc0] %vm3_vm1, %v352_v49  }
  0x1c   :  { %235 = vrot.lane.b32.xlu1 %v234_v41, %s460_s26  ;;  %v377_v50 = vld [vmem:[%s904_s0 + $0xc0] ss:$4 sm:$0xff]   ;;  %224 = vrot.lane.b32.xlu0 %v223_v44, %s460_s26  ;;  %v433_v58 = vld [vmem:[%s904_s0 + $0x1] ss:$8 sm:$0xf]  }
  0x1d   :  { %v382_v51 = vld [vmem:[%s904_s0 + $0xe0] ss:$4 sm:$0xff]   ;;  %378 = vst.msk [vmem:[%s905_s1 + $0x30] ss:$8 sm:$0x3] %vm3_vm1, %v377_v50  }
  0x1e   :  { %v357_v52 = vld [vmem:[%s904_s0 + $0x40] ss:$4 sm:$0xff]   ;;  %379 = vst.msk [vmem:[%s905_s1 + $0x21] ss:$8 sm:$0xc] %vm3_vm1, %v377_v50  }
  0x1f   :  { %380 = vst.msk [vmem:[%s905_s1 + $0x12] ss:$8 sm:$0x30] %vm3_vm1, %v377_v50   ;;  %381 = vst.msk [vmem:[%s905_s1 + $0x3] ss:$8 sm:$0xc0] %vm3_vm1, %v377_v50  }
  0x20   :  { %383 = vst.msk [vmem:[%s905_s1 + $0x34] ss:$8 sm:$0x3] %vm3_vm1, %v382_v51   ;;  %384 = vst.msk [vmem:[%s905_s1 + $0x25] ss:$8 sm:$0xc] %vm3_vm1, %v382_v51   ;;  %257 = vrot.lane.b32.xlu1 %v256_v53, %s460_s26  ;;  %246 = vrot.lane.b32.xlu0 %v245_v55, %s460_s26 }
  0x21   :  { %385 = vst.msk [vmem:[%s905_s1 + $0x16] ss:$8 sm:$0x30] %vm3_vm1, %v382_v51   ;;  %386 = vst.msk [vmem:[%s905_s1 + $0x7] ss:$8 sm:$0xc0] %vm3_vm1, %v382_v51  }
  0x22   :  { %358 = vst.msk [vmem:[%s905_s1 + $0x10] ss:$8 sm:$0x3] %vm3_vm1, %v357_v52   ;;  %359 = vst.msk [vmem:[%s905_s1 + $0x1] ss:$8 sm:$0xc] %vm3_vm1, %v357_v52  }
  0x23   :  { %360 = vst.msk [vmem:[%s905_s1 - $0xe] ss:$8 sm:$0x30] %vm3_vm1, %v357_v52   ;;  %361 = vst.msk [vmem:[%s905_s1 - $0x1d] ss:$8 sm:$0xc0] %vm3_vm1, %v357_v52  }
  0x24   :  { %v362_v54 = vld [vmem:[%s904_s0 + $0x60] ss:$4 sm:$0xff]   ;;  %v434_v59 = vld [vmem:[%s904_s0 + $0x1] ss:$8 sm:$0xf0]   ;;  %278 = vrot.lane.b32.xlu1 %v277_v60, %s461_s25 }
  0x25   :  { %363 = vst.msk [vmem:[%s905_s1 + $0x14] ss:$8 sm:$0x3] %vm3_vm1, %v362_v54   ;;  %364 = vst.msk [vmem:[%s905_s1 + $0x5] ss:$8 sm:$0xc] %vm3_vm1, %v362_v54   ;;  %v267_v61 = vsel %vm92_vm0, %v434_v59, %v433_v58 }
  0x26   :  { %365 = vst.msk [vmem:[%s905_s1 - $0xa] ss:$8 sm:$0x30] %vm3_vm1, %v362_v54   ;;  %366 = vst.msk [vmem:[%s905_s1 - $0x19] ss:$8 sm:$0xc0] %vm3_vm1, %v362_v54   ;;  %268 = vrot.lane.b32.xlu0 %v267_v61, %s461_s25 }
  0x27   :  { %v441_v62 = vld [vmem:[%s904_s0 + $0x85] ss:$8 sm:$0xf]   ;;  %v447_v4 = vld [vmem:[%s904_s0 + $0xc1] ss:$8 sm:$0xf]  }
  0x28   :  { %v442_v63 = vld [vmem:[%s904_s0 + $0x85] ss:$8 sm:$0xf0]   ;;  %v448_v5 = vld [vmem:[%s904_s0 + $0xc1] ss:$8 sm:$0xf0]  }
  0x29   :  { %v438_v0 = vld [vmem:[%s904_s0 + $0x5] ss:$8 sm:$0xf]   ;;  %v299_v2 = vsel %vm92_vm0, %v442_v63, %v441_v62  ;;  %v444_v6 = vld [vmem:[%s904_s0 + $0x41] ss:$8 sm:$0xf]   ;;  %v321_v8 = vsel %vm92_vm0, %v448_v5, %v447_v4 }
  0x2a   :  { %v439_v1 = vld [vmem:[%s904_s0 + $0x5] ss:$8 sm:$0xf0]   ;;  %v445_v7 = vld [vmem:[%s904_s0 + $0x41] ss:$8 sm:$0xf0]   ;;  %300 = vrot.lane.b32.xlu1 %v299_v2, %s461_s25 }
  0x2b   :  { %v288_v3 = vsel %vm92_vm0, %v439_v1, %v438_v0  ;;  %v310_v9 = vsel %vm92_vm0, %v445_v7, %v444_v6  ;;  %v453_v10 = vld [vmem:[%s904_s0 + $0xc5] ss:$8 sm:$0xf]  }
  0x2c   :  { %289 = vrot.lane.b32.xlu0 %v288_v3, %s461_s25  ;;  %v454_v11 = vld [vmem:[%s904_s0 + $0xc5] ss:$8 sm:$0xf0]  }
  0x2d   :  { %v450_v12 = vld [vmem:[%s904_s0 + $0x45] ss:$8 sm:$0xf]   ;;  %v343_v14 = vsel %vm92_vm0, %v454_v11, %v453_v10 }
  0x2e   :  { %v451_v13 = vld [vmem:[%s904_s0 + $0x45] ss:$8 sm:$0xf0]   ;;  %322 = vrot.lane.b32.xlu1 %v321_v8, %s461_s25 }
  0x2f   :  { %v332_v15 = vsel %vm92_vm0, %v451_v13, %v450_v12 }
  0x30   :  { %311 = vrot.lane.b32.xlu0 %v310_v9, %s461_s25 }
  0x32   :  { %344 = vrot.lane.b32.xlu1 %v343_v14, %s461_s25 }
  0x34   :  { %333 = vrot.lane.b32.xlu0 %v332_v15, %s461_s25 }
  0x76   :  { %v116_v16 = vpop.permute.xlu1 %115   ;;  %v95_v17 = vpop.permute.xlu0 %94  }
  0x77   :  { %394 = vst.msk [vmem:[%s905_s1 + $0x8] sm:$0xff] %vm96_vm2, %v116_v16   ;;  %97 = vst.msk [vmem:[%s905_s1] sm:$0xff] %vm96_vm2, %v95_v17  }
  0x7a   :  { %v127_v18 = vpop.permute.xlu1 %126   ;;  %v105_v19 = vpop.permute.xlu0 %104  }
  0x7b   :  { %397 = vst.msk [vmem:[%s905_s1 + $0x28] sm:$0xff] %vm96_vm2, %v127_v18   ;;  %391 = vst.msk [vmem:[%s905_s1 + $0x20] sm:$0xff] %vm96_vm2, %v105_v19  }
  0x7e   :  { %v149_v20 = vpop.permute.xlu1 %148   ;;  %v138_v21 = vpop.permute.xlu0 %137  }
  0x7f   :  { %403 = vst.msk [vmem:[%s905_s1 + $0x30] sm:$0xff] %vm96_vm2, %v149_v20   ;;  %400 = vst.msk [vmem:[%s905_s1 + $0x10] sm:$0xff] %vm96_vm2, %v138_v21  }
  0x82   :  { %v171_v22 = vpop.permute.xlu1 %170   ;;  %v160_v23 = vpop.permute.xlu0 %159  }
  0x83   :  { %409 = vst.msk [vmem:[%s905_s1 + $0x38] sm:$0xff] %vm96_vm2, %v171_v22   ;;  %406 = vst.msk [vmem:[%s905_s1 + $0x18] sm:$0xff] %vm96_vm2, %v160_v23  }
  0x86   :  { %v192_v24 = vpop.permute.xlu1 %191   ;;  %v182_v25 = vpop.permute.xlu0 %181  }
  0x87   :  { %414 = vst.msk [vmem:[%s905_s1 + $0x20] sm:$0xff] %vm183_vm3, %v192_v24   ;;  %184 = vst.msk [vmem:[%s905_s1] sm:$0xff] %vm183_vm3, %v182_v25  }
  0x8a   :  { %v214_v26 = vpop.permute.xlu1 %213   ;;  %v203_v27 = vpop.permute.xlu0 %202  }
  0x8b   :  { %420 = vst.msk [vmem:[%s905_s1 + $0x28] sm:$0xff] %vm183_vm3, %v214_v26   ;;  %417 = vst.msk [vmem:[%s905_s1 + $0x8] sm:$0xff] %vm183_vm3, %v203_v27  }
  0x8e   :  { %v236_v28 = vpop.permute.xlu1 %235   ;;  %v225_v29 = vpop.permute.xlu0 %224  }
  0x8f   :  { %426 = vst.msk [vmem:[%s905_s1 + $0x30] sm:$0xff] %vm183_vm3, %v236_v28   ;;  %423 = vst.msk [vmem:[%s905_s1 + $0x10] sm:$0xff] %vm183_vm3, %v225_v29  }
  0x92   :  { %v258_v30 = vpop.permute.xlu1 %257   ;;  %v247_v31 = vpop.permute.xlu0 %246  }
  0x93   :  { %432 = vst.msk [vmem:[%s905_s1 + $0x38] sm:$0xff] %vm183_vm3, %v258_v30   ;;  %429 = vst.msk [vmem:[%s905_s1 + $0x18] sm:$0xff] %vm183_vm3, %v247_v31  }
  0x96   :  { %v279_v32 = vpop.permute.xlu1 %278  }
  0x97   :  { %437 = vst.msk [vmem:[%s905_s1 + $0x20] sm:$0xff] %vm270_vm4, %v279_v32  }
  0x98   :  { %v269_v33 = vpop.permute.xlu0 %268  }
  0x99   :  { %271 = vst.msk [vmem:[%s905_s1] sm:$0xff] %vm270_vm4, %v269_v33  }
  0x9c   :  { %v301_v34 = vpop.permute.xlu1 %300  }
  0x9d   :  { %443 = vst.msk [vmem:[%s905_s1 + $0x28] sm:$0xff] %vm270_vm4, %v301_v34  }
  0x9e   :  { %v290_v35 = vpop.permute.xlu0 %289  }
  0x9f   :  { %440 = vst.msk [vmem:[%s905_s1 + $0x8] sm:$0xff] %vm270_vm4, %v290_v35  }
  0xa0   :  { %v323_v36 = vpop.permute.xlu1 %322  }
  0xa1   :  { %449 = vst.msk [vmem:[%s905_s1 + $0x30] sm:$0xff] %vm270_vm4, %v323_v36  }
  0xa2   :  { %v312_v37 = vpop.permute.xlu0 %311  }
  0xa3   :  { %446 = vst.msk [vmem:[%s905_s1 + $0x10] sm:$0xff] %vm270_vm4, %v312_v37  }
  0xa4   :  { %v345_v38 = vpop.permute.xlu1 %344  }
  0xa5   :  { %455 = vst.msk [vmem:[%s905_s1 + $0x38] sm:$0xff] %vm270_vm4, %v345_v38  }
  0xa6   :  { %v334_v39 = vpop.permute.xlu0 %333  }
  0xa7   :  { %452 = vst.msk [vmem:[%s905_s1 + $0x18] sm:$0xff] %vm270_vm4, %v334_v39  }

// kernel: tile.24
= control target key start
LH: loop header
LB: loop body
LE: loop exit
PB: predicated region body
PF: predicated region fallthrough
CT: control target
= control target key end

     0   :  { %vm4_vm0 = vcmask 1047556   ;;  %s209_s14 = smov 96   ;;  %s210_s19 = smov 112   ;;  %vm6_vm1 = vcmask 130048   ;;  %vm25_vm2 = vcmask 1048448   ;;  %vm46_vm3 = vcmask 917248   ;;  %s388_s0 = inlined_call_operand.vmem [shape: f32[8,16,16], index: 0, kind: input, shape index: {}]   ;;  %s389_s1 = inlined_call_operand.vmem [shape: f32[128,16], index: 1, kind: output, shape index: {}]  }
   0x1   :  { %v172_v0 = vld [vmem:[%s388_s0 + $0x6] ss:$8 sm:$0xf]   ;;  %v167_v3 = vld [vmem:[%s388_s0 + $0x7] ss:$8 sm:$0xf]  }
   0x2   :  { %v173_v1 = vld [vmem:[%s388_s0 + $0x6] ss:$8 sm:$0xf0]   ;;  %v168_v4 = vld [vmem:[%s388_s0 + $0x7] ss:$8 sm:$0xf0]  }
   0x3   :  { %v43_v2 = vsel %vm4_vm0, %v173_v1, %v172_v0  ;;  %v22_v5 = vsel %vm4_vm0, %v168_v4, %v167_v3  ;;  %v174_v6 = vld [vmem:[%s388_s0 + $0x46] ss:$8 sm:$0xf]   ;;  %v169_v9 = vld [vmem:[%s388_s0 + $0x47] ss:$8 sm:$0xf]  }
   0x4   :  { %44 = vrot.lane.b32.xlu1 %v43_v2, %s209_s14  ;;  %v175_v7 = vld [vmem:[%s388_s0 + $0x46] ss:$8 sm:$0xf0]   ;;  %23 = vrot.lane.b32.xlu0 %v22_v5, %s210_s19  ;;  %v170_v10 = vld [vmem:[%s388_s0 + $0x47] ss:$8 sm:$0xf0]  }
   0x5   :  { %v53_v8 = vsel %vm4_vm0, %v175_v7, %v174_v6  ;;  %v32_v11 = vsel %vm4_vm0, %v170_v10, %v169_v9  ;;  %v179_v12 = vld [vmem:[%s388_s0 + $0x45] ss:$8 sm:$0xf]   ;;  %v184_v18 = vld [vmem:[%s388_s0 + $0x44] ss:$8 sm:$0xf]  }
   0x6   :  { %v180_v13 = vld [vmem:[%s388_s0 + $0x45] ss:$8 sm:$0xf0]   ;;  %v185_v19 = vld [vmem:[%s388_s0 + $0x44] ss:$8 sm:$0xf0]  }
   0x7   :  { %v177_v14 = vld [vmem:[%s388_s0 + $0x5] ss:$8 sm:$0xf]   ;;  %v74_v16 = vsel %vm4_vm0, %v180_v13, %v179_v12  ;;  %v182_v20 = vld [vmem:[%s388_s0 + $0x4] ss:$8 sm:$0xf]   ;;  %v95_v22 = vsel %vm4_vm0, %v185_v19, %v184_v18 }
   0x8   :  { %54 = vrot.lane.b32.xlu1 %v53_v8, %s209_s14  ;;  %v178_v15 = vld [vmem:[%s388_s0 + $0x5] ss:$8 sm:$0xf0]   ;;  %33 = vrot.lane.b32.xlu0 %v32_v11, %s210_s19  ;;  %v183_v21 = vld [vmem:[%s388_s0 + $0x4] ss:$8 sm:$0xf0]  }
   0x9   :  { %v64_v17 = vsel %vm4_vm0, %v178_v15, %v177_v14  ;;  %s211_s11 = smov 80   ;;  %v85_v23 = vsel %vm4_vm0, %v183_v21, %v182_v20  ;;  %v189_v24 = vld [vmem:[%s388_s0 + $0x43] ss:$8 sm:$0xf]   ;;  %s212_s20 = smov 64   ;;  %vm67_vm4 = vcmask 786048  }
   0xa   :  { %v190_v25 = vld [vmem:[%s388_s0 + $0x43] ss:$8 sm:$0xf0]   ;;  %v194_v28 = vld [vmem:[%s388_s0 + $0x42] ss:$8 sm:$0xf]  }
   0xb   :  { %v187_v26 = vld [vmem:[%s388_s0 + $0x3] ss:$8 sm:$0xf]   ;;  %v195_v29 = vld [vmem:[%s388_s0 + $0x42] ss:$8 sm:$0xf0]   ;;  %v116_v30 = vsel %vm4_vm0, %v190_v25, %v189_v24 }
   0xc   :  { %75 = vrot.lane.b32.xlu1 %v74_v16, %s211_s11  ;;  %65 = vrot.lane.b32.xlu0 %v64_v17, %s211_s11  ;;  %v188_v27 = vld [vmem:[%s388_s0 + $0x3] ss:$8 sm:$0xf0]   ;;  %v192_v31 = vld [vmem:[%s388_s0 + $0x2] ss:$8 sm:$0xf]   ;;  %v137_v40 = vsel %vm4_vm0, %v195_v29, %v194_v28 }
   0xd   :  { %v2_v32 = vld [vmem:[%s388_s0] ss:$8 sm:$0xf]   ;;  %v106_v33 = vsel %vm4_vm0, %v188_v27, %v187_v26  ;;  %v193_v36 = vld [vmem:[%s388_s0 + $0x2] ss:$8 sm:$0xf0]  }
   0xe   :  { %v3_v34 = vld [vmem:[%s388_s0] ss:$8 sm:$0xf0]   ;;  %s213_s8 = smov 48   ;;  %v127_v41 = vsel %vm4_vm0, %v193_v36, %v192_v31  ;;  %s215_s21 = smov 16   ;;  %vm88_vm5 = vcmask 654848  }
   0xf   :  { %v164_v35 = vld [vmem:[%s388_s0 + $0x40] ss:$8 sm:$0xf]   ;;  %v5_v37 = vsel %vm4_vm0, %v3_v34, %v2_v32  ;;  %v199_v42 = vld [vmem:[%s388_s0 + $0x41] ss:$8 sm:$0xf]  }
  0x10   :  { %96 = vrot.lane.b32.xlu1 %v95_v22, %s212_s20  ;;  %86 = vrot.lane.b32.xlu0 %v85_v23, %s212_s20  ;;  %v165_v38 = vld [vmem:[%s388_s0 + $0x40] ss:$8 sm:$0xf0]   ;;  %7 = vst.msk [vmem:[%s389_s1] sm:$0xff] %vm6_vm1, %v5_v37   ;;  %vm109_vm6 = vcmask 523648   ;;  %vm130_vm7 = vcmask 392448  }
  0x11   :  { %v13_v39 = vsel %vm4_vm0, %v165_v38, %v164_v35  ;;  %v200_v43 = vld [vmem:[%s388_s0 + $0x41] ss:$8 sm:$0xf0]   ;;  %vm151_vm8 = vcmask 261248  }
  0x12   :  { %166 = vst.msk [vmem:[%s389_s1 + $0x8] sm:$0xff] %vm6_vm1, %v13_v39   ;;  %v197_v44 = vld [vmem:[%s388_s0 + $0x1] ss:$8 sm:$0xf]   ;;  %v158_v46 = vsel %vm4_vm0, %v200_v43, %v199_v42 }
  0x13   :  { %v198_v45 = vld [vmem:[%s388_s0 + $0x1] ss:$8 sm:$0xf0]   ;;  %s214_s0 = smov 32  }
  0x14   :  { %117 = vrot.lane.b32.xlu1 %v116_v30, %s213_s8  ;;  %107 = vrot.lane.b32.xlu0 %v106_v33, %s213_s8  ;;  %v148_v47 = vsel %vm4_vm0, %v198_v45, %v197_v44 }
  0x18   :  { %138 = vrot.lane.b32.xlu1 %v137_v40, %s214_s0  ;;  %128 = vrot.lane.b32.xlu0 %v127_v41, %s214_s0 }
  0x1c   :  { %159 = vrot.lane.b32.xlu1 %v158_v46, %s215_s21  ;;  %149 = vrot.lane.b32.xlu0 %v148_v47, %s215_s21 }
  0x76   :  { %v45_v48 = vpop.permute.xlu1 %44   ;;  %v24_v49 = vpop.permute.xlu0 %23  }
  0x77   :  { %26 = vst.msk [vmem:[%s389_s1] sm:$0xff] %vm25_vm2, %v24_v49  }
  0x78   :  { %47 = vst.msk [vmem:[%s389_s1] sm:$0xff] %vm46_vm3, %v45_v48  }
  0x7a   :  { %v55_v50 = vpop.permute.xlu1 %54   ;;  %v34_v51 = vpop.permute.xlu0 %33  }
  0x7b   :  { %171 = vst.msk [vmem:[%s389_s1 + $0x8] sm:$0xff] %vm25_vm2, %v34_v51  }
  0x7c   :  { %176 = vst.msk [vmem:[%s389_s1 + $0x8] sm:$0xff] %vm46_vm3, %v55_v50  }
  0x7e   :  { %v76_v52 = vpop.permute.xlu1 %75   ;;  %v66_v53 = vpop.permute.xlu0 %65  }
  0x7f   :  { %181 = vst.msk [vmem:[%s389_s1 + $0x8] sm:$0xff] %vm67_vm4, %v76_v52   ;;  %68 = vst.msk [vmem:[%s389_s1] sm:$0xff] %vm67_vm4, %v66_v53  }
  0x82   :  { %v97_v54 = vpop.permute.xlu1 %96   ;;  %v87_v55 = vpop.permute.xlu0 %86  }
  0x83   :  { %186 = vst.msk [vmem:[%s389_s1 + $0x8] sm:$0xff] %vm88_vm5, %v97_v54   ;;  %89 = vst.msk [vmem:[%s389_s1] sm:$0xff] %vm88_vm5, %v87_v55  }
  0x86   :  { %v118_v56 = vpop.permute.xlu1 %117   ;;  %v108_v57 = vpop.permute.xlu0 %107  }
  0x87   :  { %191 = vst.msk [vmem:[%s389_s1 + $0x8] sm:$0xff] %vm109_vm6, %v118_v56   ;;  %110 = vst.msk [vmem:[%s389_s1] sm:$0xff] %vm109_vm6, %v108_v57  }
  0x8a   :  { %v139_v58 = vpop.permute.xlu1 %138   ;;  %v129_v59 = vpop.permute.xlu0 %128  }
  0x8b   :  { %196 = vst.msk [vmem:[%s389_s1 + $0x8] sm:$0xff] %vm130_vm7, %v139_v58   ;;  %131 = vst.msk [vmem:[%s389_s1] sm:$0xff] %vm130_vm7, %v129_v59  }
  0x8e   :  { %v160_v60 = vpop.permute.xlu1 %159   ;;  %v150_v61 = vpop.permute.xlu0 %149  }
  0x8f   :  { %201 = vst.msk [vmem:[%s389_s1 + $0x8] sm:$0xff] %vm151_vm8, %v160_v60   ;;  %152 = vst.msk [vmem:[%s389_s1] sm:$0xff] %vm151_vm8, %v150_v61  }

// kernel: feature_iresnet_forward.1
= control target key start
LH: loop header
LB: loop body
LE: loop exit
PB: predicated region body
PF: predicated region fallthrough
CT: control target
= control target key end

     0   :  { %v5015_v0 = vmov 0.0|0.0   ;;  %vm5016_vm0 = vmmov 0   ;;  %v5017_v4 = vmov 0.0   ;;  %vm132_vm1 = vcmask 1040384   ;;  %s7215_s1 = inlined_call_operand.vmem [shape: f32[128,16], index: 1, kind: input, shape index: {}]   ;;  %s7216_s0 = inlined_call_operand.vmem [shape: f32[16,128], index: 0, kind: input, shape index: {}]   ;;  %s7217_s2 = inlined_call_operand.vmem [shape: f32[16,128], index: 2, kind: input, shape index: {}]   ;;  %s7218_s5 = inlined_call_operand.vmem [shape: f32[3,128,128], index: 5, kind: input, shape index: {}]   ;;  %s7219_s3 = inlined_call_operand.vmem [shape: f32[1,16], index: 3, kind: input, shape index: {}]   ;;  %s7220_s4 = inlined_call_operand.vmem [shape: f32[1,16], index: 4, kind: input, shape index: {}]   ;;  %s7221_s9 = inlined_call_operand.vmem [shape: f32[3,128,128], index: 9, kind: input, shape index: {}]   ;;  %s7222_s6 = inlined_call_operand.vmem [shape: f32[1,16], index: 6, kind: input, shape index: {}]   ;;  %s7223_s7 = inlined_call_operand.vmem [shape: f32[1,16], index: 7, kind: input, shape index: {}]   ;;  %s7224_s8 = inlined_call_operand.vmem [shape: f32[1,128], index: 8, kind: input, shape index: {}]   ;;  %s7225_s10 = inlined_call_operand.vmem [shape: f32[1,16], index: 10, kind: input, shape index: {}]   ;;  %s7226_s11 = inlined_call_operand.vmem [shape: f32[1,16], index: 11, kind: input, shape index: {}]   ;;  %s7227_s16 = inlined_call_operand.vmem [shape: f32[3,128,256], index: 16, kind: input, shape index: {}]   ;;  %s7228_s14 = inlined_call_operand.vmem [shape: f32[1,16], index: 14, kind: input, shape index: {}]   ;;  %s7229_s15 = inlined_call_operand.vmem [shape: f32[1,16], index: 15, kind: input, shape index: {}]   ;;  %s7230_s12 = inlined_call_operand.vmem [shape: f32[256,32], index: 12, kind: input, shape index: {}]   ;;  %s7231_s13 = inlined_call_operand.vmem [shape: f32[32,256], index: 13, kind: input, shape index: {}]   ;;  %s7232_s20 = inlined_call_operand.vmem [shape: f32[3,256,256], index: 20, kind: input, shape index: {}]   ;;  %s7233_s17 = inlined_call_operand.vmem [shape: f32[1,32], index: 17, kind: input, shape index: {}]   ;;  %s7234_s18 = inlined_call_operand.vmem [shape: f32[1,32], index: 18, kind: input, shape index: {}]   ;;  %s7235_s19 = inlined_call_operand.vmem [shape: f32[1,256], index: 19, kind: input, shape index: {}]   ;;  %s7236_s23 = inlined_call_operand.vmem [shape: f32[128,256], index: 23, kind: input, shape index: {}]   ;;  %s7237_s21 = inlined_call_operand.vmem [shape: f32[1,32], index: 21, kind: input, shape index: {}]   ;;  %s7238_s22 = inlined_call_operand.vmem [shape: f32[1,32], index: 22, kind: input, shape index: {}]   ;;  %s7239_s24 = inlined_call_operand.vmem [shape: f32[1,32], index: 24, kind: input, shape index: {}]   ;;  %s7240_s25 = inlined_call_operand.vmem [shape: f32[1,32], index: 25, kind: input, shape index: {}]   ;;  %s7241_s26 = inlined_call_operand.vmem [shape: f32[16,256], index: 26, kind: output, shape index: {}]  }
   0x1   :  { %7247 = sst [smem:[#allocation2_spill]] %s7215_s1  ;;  %4231 = vmatprep.subr.bf16.mxu0 %v5015_v0  ;;  %3885 = vmatprep.mubr.msk.f32.mxu0 %vm5016_vm0, %v5017_v4  ;;  %vm259_vm2 = vcmask 130048   ;;  %vm2101_vm11 = vcmask 261120  }
   0x2   :  { %7248 = sst [smem:[#allocation3_spill]] %s7216_s0 }
   0x3   :  { %7249 = sst [smem:[#allocation4_spill]] %s7217_s2  ;;  %s7259_s27 = sld [smem:[#allocation3_spill]] }
   0x4   :  { %7250 = sst [smem:[#allocation5_spill]] %s7218_s5 }
   0x5   :  { %7251 = sst [smem:[#allocation6_spill]] %s7219_s3 }
   0x6   :  { %7252 = sst [smem:[#allocation7_spill]] %s7220_s4  ;;  %s7262_s1 = sld [smem:[#allocation6_spill]] }
   0x7   :  { %7253 = sst [smem:[#allocation8_spill]] %s7221_s9  ;;  %s7263_s2 = sld [smem:[#allocation7_spill]] }
   0x8   :  { %7254 = sst [smem:[#allocation9_spill]] %s7222_s6  ;;  %s7258_s6 = sld [smem:[#allocation2_spill]] }
   0x9   :  { %7255 = sst [smem:[#allocation10_spill]] %s7223_s7  ;;  %v5184_v10 = vld [vmem:[%s7259_s27] sm:$0xff]  ;;  %v5189_v11 = vld [vmem:[%s7259_s27 + $0x8] sm:$0xff]  ;;  %s7261_s7 = sld [smem:[#allocation5_spill]] }
   0xa   :  { %7256 = sst [smem:[#allocation11_spill]] %s7224_s8  ;;  %v116_v12 = vadd.f32 %v5189_v11, %v5184_v10  ;;  %v123_v13 = vmul.f32 %v5184_v10, %v5184_v10  ;;  %v124_v14 = vmul.f32 %v5189_v11, %v5189_v11  ;;  %s7272_s0 = sld [smem:[#allocation8_spill]] }
   0xb   :  { %7257 = sst [smem:[#allocation12_spill]] %s7225_s10  ;;  %s7275_s29 = sld [smem:[#allocation11_spill]] }
   0xc   :  { %v117_v18 = vrot.slane %v116_v12, 4  ;;  %v125_v19 = vadd.f32 %v124_v14, %v123_v13  ;;  %s7260_s10 = sld [smem:[#allocation4_spill]] }
   0xd   :  { %s7276_s5 = sld [smem:[#allocation12_spill]] }
   0xe   :  { %v134_v1 = vld [vmem:[%s7258_s6] sm:$0xff]  ;;  %v135_v2 = vld [vmem:[%s7258_s6 + $0x8] sm:$0xff]  ;;  %v136_v3 = vld [vmem:[%s7258_s6 + $0x10] sm:$0xff]  ;;  %v126_v20 = vrot.slane %v125_v19, 4  ;;  %v118_v22 = vadd.f32 %v117_v18, %v116_v12 }
   0xf   :  { %v5166_v5 = vpack.c.bf16 %v135_v2, %v134_v1  ;;  %v137_v6 = vld [vmem:[%s7258_s6 + $0x18] sm:$0xff]  ;;  %v138_v8 = vld [vmem:[%s7258_s6 + $0x20] sm:$0xff]  ;;  %v139_v9 = vld [vmem:[%s7258_s6 + $0x28] sm:$0xff] }
  0x10   :  { %v5172_v7 = vpack.c.bf16 %v137_v6, %v136_v3  ;;  %v5198_v15 = vpack.c.bf16 %v139_v9, %v138_v8  ;;  %v140_v16 = vld [vmem:[%s7258_s6 + $0x30] sm:$0xff]  ;;  %v141_v17 = vld [vmem:[%s7258_s6 + $0x38] sm:$0xff]  ;;  %v142_v23 = vld [vmem:[%s7258_s6 + $0x40] sm:$0xff]  ;;  %v127_v25 = vadd.f32 %v126_v20, %v125_v19  ;;  %v119_v27 = vrot.slane %v118_v22, 2 }
  0x11   :  { %4233 = vmatpush3.bf16.msra.mxu0 %v5166_v5  ;;  %v5208_v21 = vpack.c.bf16 %v141_v17, %v140_v16  ;;  %v143_v24 = vld [vmem:[%s7258_s6 + $0x48] sm:$0xff]  ;;  %v144_v29 = vld [vmem:[%s7258_s6 + $0x50] sm:$0xff]  ;;  %v145_v30 = vld [vmem:[%s7258_s6 + $0x58] sm:$0xff]  ;;  %v83_v19 = vlaneseq  ;;  %v5018_v20 = vmov 1966171168  }
  0x12   :  { %4234 = vmatprep.subr.bf16.mxu0 %v5015_v0  ;;  %v5218_v26 = vpack.c.bf16 %v143_v24, %v142_v23  ;;  %v128_v28 = vrot.slane %v127_v25, 2  ;;  %v5228_v31 = vpack.c.bf16 %v145_v30, %v144_v29  ;;  %v120_v32 = vadd.f32 %v119_v27, %v118_v22  ;;  %v146_v34 = vld [vmem:[%s7258_s6 + $0x60] sm:$0xff]  ;;  %v147_v35 = vld [vmem:[%s7258_s6 + $0x68] sm:$0xff]  ;;  %v148_v39 = vld [vmem:[%s7258_s6 + $0x70] sm:$0xff] }
  0x13   :  { %v5238_v36 = vpack.c.bf16 %v147_v35, %v146_v34  ;;  %v149_v40 = vld [vmem:[%s7258_s6 + $0x78] sm:$0xff]  ;;  %v257_v45 = vld [vmem:[%s7260_s10] sm:$0xff]  ;;  %v258_v46 = vld [vmem:[%s7260_s10 + $0x8] sm:$0xff]  ;;  %v231_v22 = vunpack.c.l.s4 %v5018_v20  ;;  %v5308_v23 = vshrl.u32 %v83_v19, 7 }
  0x14   :  { %v129_v33 = vadd.f32 %v128_v28, %v127_v25  ;;  %v121_v37 = vrot.slane %v120_v32, 1  ;;  %v5248_v41 = vpack.c.bf16 %v149_v40, %v148_v39  ;;  %v5262_v47 = vpack.c.bf16 %v258_v46, %v257_v45  ;;  %v3277_v48 = vld [vmem:[%s7261_s7 + $0x80] sm:$0xff]  ;;  %v3278_v49 = vld [vmem:[%s7261_s7 + $0x88] sm:$0xff]  ;;  %v3279_v50 = vld [vmem:[%s7261_s7 + $0x90] sm:$0xff] }
  0x15   :  { %4236 = vmatpush3.bf16.msra.mxu0 %v5172_v7  ;;  %v4258_v51 = vpack.c.bf16 %v3278_v49, %v3277_v48  ;;  %v3280_v52 = vld [vmem:[%s7261_s7 + $0x98] sm:$0xff]  ;;  %v3281_v54 = vld [vmem:[%s7261_s7 + $0xa0] sm:$0xff]  ;;  %v3282_v55 = vld [vmem:[%s7261_s7 + $0xa8] sm:$0xff]  ;;  %v232_v24 = vunpack.c.0.s8 %v231_v22  ;;  %v5358_v49 = vsub.s32 1, %v5308_v23  ;;  %vm347_vm3 = vcmp.lt.s32.totalorder %v5308_v23, 1 }
  0x16   :  { %4237 = vmatprep.subr.bf16.mxu0 %v5015_v0  ;;  %v130_v38 = vrot.slane %v129_v33, 1  ;;  %v122_v42 = vadd.f32 %v121_v37, %v120_v32  ;;  %v4262_v53 = vpack.c.bf16 %v3280_v52, %v3279_v50  ;;  %v4266_v56 = vpack.c.bf16 %v3282_v55, %v3281_v54  ;;  %v3283_v57 = vld [vmem:[%s7261_s7 + $0xb0] sm:$0xff]  ;;  %v3284_v58 = vld [vmem:[%s7261_s7 + $0xb8] sm:$0xff]  ;;  %v3285_v60 = vld [vmem:[%s7261_s7 + $0xc0] sm:$0xff] }
  0x17   :  { %4259 = vmatprep.subr.bf16.mxu1 %v4258_v51  ;;  %v4270_v59 = vpack.c.bf16 %v3284_v58, %v3283_v57  ;;  %v3286_v61 = vld [vmem:[%s7261_s7 + $0xc8] sm:$0xff]  ;;  %v3287_v63 = vld [vmem:[%s7261_s7 + $0xd0] sm:$0xff]  ;;  %v3288_v1 = vld [vmem:[%s7261_s7 + $0xd8] sm:$0xff]  ;;  %v5311_v25 = vsub.s32 %v232_v24, %v5308_v23  ;;  %v5322_v37 = vsub.s32 0, %v5308_v23  ;;  %vm358_vm6 = vcmp.lt.s32.totalorder %v5308_v23, 7 }
  0x18   :  { %v131_v43 = vadd.f32 %v130_v38, %v129_v33  ;;  %4261 = vmatpush3.bf16.msra.mxu1 %v4258_v51  ;;  %v4274_v62 = vpack.c.bf16 %v3286_v61, %v3285_v60  ;;  %v4278_v2 = vpack.c.bf16 %v3288_v1, %v3287_v63  ;;  %v3289_v3 = vld [vmem:[%s7261_s7 + $0xe0] sm:$0xff]  ;;  %v3290_v6 = vld [vmem:[%s7261_s7 + $0xe8] sm:$0xff]  ;;  %v369_v57 = vld [vmem:[%s7261_s7 + $0x10] sm:$0xff] }
  0x19   :  { %4239 = vmatpush3.bf16.msra.mxu0 %v5198_v15  ;;  %4263 = vmatprep.subr.bf16.mxu1 %v4262_v53  ;;  %v4282_v8 = vpack.c.bf16 %v3290_v6, %v3289_v3  ;;  %v226_v30 = vld [vmem:[%s7262_s1] sm:$0x1]  ;;  %v368_v46 = vld [vmem:[%s7261_s7 + $0x8] sm:$0xff]  ;;  %v370_v58 = vld [vmem:[%s7261_s7 + $0x18] sm:$0xff]  ;;  %s7273_s1 = sld [smem:[#allocation9_spill]] }
  0x1a   :  { %4240 = vmatprep.subr.bf16.mxu0 %v5015_v0  ;;  %v133_v44 = vsel %vm132_vm1, %v122_v42, %v131_v43  ;;  %v247_v34 = vld [vmem:[%s7263_s2] sm:$0x1]  ;;  %v3291_v42 = vld [vmem:[%s7261_s7 + $0xf0] sm:$0xff]  ;;  %v3292_v43 = vld [vmem:[%s7261_s7 + $0xf8] sm:$0xff]  ;;  %s7274_s2 = sld [smem:[#allocation10_spill]] }
  0x1b   :  { %v367_v45 = vld [vmem:[%s7261_s7] sm:$0xff]  ;;  %v372_v1 = vld [vmem:[%s7261_s7 + $0x28] sm:$0xff]  ;;  %v373_v6 = vld [vmem:[%s7261_s7 + $0x30] sm:$0xff] }
  0x1c   :  { %4265 = vmatpush3.bf16.msra.mxu1 %v4262_v53  ;;  %v4290_v48 = vpack.c.bf16 %v368_v46, %v367_v45  ;;  %v371_v63 = vld [vmem:[%s7261_s7 + $0x20] sm:$0xff]  ;;  %v380_v20 = vld [vmem:[%s7261_s7 + $0x68] sm:$0xff]  ;;  %v381_v24 = vld [vmem:[%s7261_s7 + $0x70] sm:$0xff] }
  0x1d   :  { %4242 = vmatpush3.bf16.msra.mxu0 %v5208_v21  ;;  %4267 = vmatprep.subr.bf16.mxu1 %v4266_v56  ;;  %v4298_v3 = vpack.c.bf16 %v372_v1, %v371_v63  ;;  %v379_v19 = vld [vmem:[%s7261_s7 + $0x60] sm:$0xff]  ;;  %v3309_v63 = vld [vmem:[%s7261_s7 + $0x170] sm:$0xff]  ;;  %v3310_v1 = vld [vmem:[%s7261_s7 + $0x178] sm:$0xff] }
  0x1e   :  { %4243 = vmatprep.subr.bf16.mxu0 %v5015_v0  ;;  %v4314_v22 = vpack.c.bf16 %v380_v20, %v379_v19  ;;  %v3299_v46 = vld [vmem:[%s7261_s7 + $0x120] sm:$0xff] }
  0x20   :  { %4269 = vmatpush3.bf16.msra.mxu1 %v4266_v56  ;;  %v90_v56 = vand.u32 7, %v5308_v23 }
  0x21   :  { %4245 = vmatpush3.bf16.msra.mxu0 %v5218_v26  ;;  %4271 = vmatprep.subr.bf16.mxu1 %v4270_v59 }
  0x22   :  { %4246 = vmatprep.subr.bf16.mxu0 %v5015_v0  ;;  %vm5377_vm4 = vcmp.ne.s32.totalorder %v90_v56, 0  ;;  %vm5444_vm7 = vcmp.ne.s32.totalorder %v90_v56, 7  ;;  %v3304_v56 = vld [vmem:[%s7261_s7 + $0x148] sm:$0xff] }
  0x24   :  { %4273 = vmatpush3.bf16.msra.mxu1 %v4270_v59 }
  0x25   :  { %4248 = vmatpush3.bf16.msra.mxu0 %v5228_v31  ;;  %4275 = vmatprep.subr.bf16.mxu1 %v4274_v62 }
  0x26   :  { %4249 = vmatprep.subr.bf16.mxu0 %v5015_v0 }
  0x28   :  { %4277 = vmatpush3.bf16.msra.mxu1 %v4274_v62 }
  0x29   :  { %4251 = vmatpush3.bf16.msra.mxu0 %v5238_v36  ;;  %4279 = vmatprep.subr.bf16.mxu1 %v4278_v2 }
  0x2a   :  { %4252 = vmatprep.subr.bf16.mxu0 %v5015_v0 }
  0x2c   :  { %4281 = vmatpush3.bf16.msra.mxu1 %v4278_v2 }
  0x2d   :  { %4254 = vmatpush3.bf16.msra.mxu0 %v5248_v41  ;;  %4283 = vmatprep.subr.bf16.mxu1 %v4282_v8 }
  0x2e   :  { %4255 = vmatprep.subr.bf16.mxu0 %v5015_v0 }
  0x30   :  { %3886 = vmatmul.mubr.f32.vlgmr.msra.gmra.mrb[0].mxu0 %v133_v44  ;;  %4285 = vmatpush3.bf16.msra.mxu1 %v4282_v8  ;;  %v4286_v44 = vpack.c.bf16 %v3292_v43, %v3291_v42  ;;  %v374_v8 = vld [vmem:[%s7261_s7 + $0x38] sm:$0xff]  ;;  %v3507_v42 = vld [vmem:[%s7232_s20 + $0x488] sm:$0xff] }
  0x31   :  { %3892 = vmatprep.mubr.msk.f32.mxu0 %vm5016_vm0, %v5017_v4  ;;  %4257 = vmatpush3.bf16.msra.mxu0 %v5262_v47 }
  0x32   :  { %4354 = vmatprep.subr.bf16.mxu0 %v5015_v0  ;;  %4287 = vmatprep.subr.bf16.mxu1 %v4286_v44 }
  0x34   :  { %4289 = vmatpush3.bf16.msra.mxu1 %v4286_v44 }
  0x35   :  { %4291 = vmatprep.subr.bf16.mxu1 %v4290_v48 }
 0x103   :  { %v216_v9 = vpop.f32.mrb[0].mxu0 }
 0x104   :  { %v220_v12 = vmul.f32 0.0078125, %v216_v9  ;;  %v3887_v13 = vpop.f32.mrb[1].mxu0  ;;  %v4302_v9 = vpack.c.bf16 %v374_v8, %v373_v6 }
 0x105   :  { %v376_v13 = vld [vmem:[%s7261_s7 + $0x48] sm:$0xff] }
 0x106   :  { %v221_v14 = vmul.f32 %v220_v12, %v220_v12 }
 0x108   :  { %v223_v16 = vrot.slane %v221_v14, 7 }
 0x10a   :  { %v225_v17 = vsub.f32 %v220_v12, %v223_v16  ;;  %v377_v16 = vld [vmem:[%s7261_s7 + $0x50] sm:$0xff] }
 0x10c   :  { %v227_v18 = vadd.f32 1e-05, %v225_v17  ;;  %v378_v17 = vld [vmem:[%s7261_s7 + $0x58] sm:$0xff] }
 0x10e   :  { %4999 = vrsqrt.f32 %v227_v18  ;;  %v4310_v18 = vpack.c.bf16 %v378_v17, %v377_v16 }
 0x118   :  { %v5000_v27 = vpop.eup %4999 }
 0x119   :  { %v236_v28 = vrot.slane %v5000_v27, %v5311_v25  ;;  %v382_v27 = vld [vmem:[%s7261_s7 + $0x78] sm:$0xff] }
 0x11b   :  { %v237_v29 = vcombine.high %v236_v28, %v236_v28  ;;  %v85_v28 = vadd.s32 8, %v5308_v23  ;;  %v2265_v23 = vld [vmem:[%s7232_s20 + $0x88] sm:$0xff] }
 0x11d   :  { %v244_v32 = vrot.slane %v237_v29, %v5311_v25  ;;  %v4318_v29 = vpack.c.bf16 %v382_v27, %v381_v24 }
 0x11f   :  { %v246_v33 = vmul.f32 %v244_v32, %v226_v30  ;;  %v3295_v30 = vld [vmem:[%s7261_s7 + $0x100] sm:$0xff]  ;;  %v3296_v32 = vld [vmem:[%s7261_s7 + $0x108] sm:$0xff] }
 0x121   :  { %v248_v35 = vmul.f32 %v246_v33, %v220_v12  ;;  %v375_v12 = vld [vmem:[%s7261_s7 + $0x40] sm:$0xff] }
 0x122   :  { %v4306_v14 = vpack.c.bf16 %v376_v13, %v375_v12 }
 0x123   :  { %v249_v38 = vsub.f32 %v247_v34, %v248_v35  ;;  %v4322_v34 = vpack.c.bf16 %v3296_v32, %v3295_v30  ;;  %v3297_v35 = vld [vmem:[%s7261_s7 + $0x110] sm:$0xff] }
 0x125   :  { %v254_v39 = vrot.slane %v249_v38, %v5322_v37  ;;  %v3298_v38 = vld [vmem:[%s7261_s7 + $0x118] sm:$0xff] }
 0x126   :  { %v4326_v44 = vpack.c.bf16 %v3298_v38, %v3297_v35  ;;  %v3315_v35 = vld [vmem:[%s7272_s0 + $0x80] sm:$0xff]  ;;  %v3316_v38 = vld [vmem:[%s7272_s0 + $0x88] sm:$0xff] }
 0x127   :  { %v256_v40 = vsel %vm132_vm1, %v246_v33, %v254_v39  ;;  %v97_v33 = vand.u32 7, %v85_v28 }
 0x128   :  { %3893 = vmatmul.mubr.msk.f32.vlgmr.msra.gmra.mrb[2].mxu0 %vm259_vm2, %v256_v40 }
 0x129   :  { %4356 = vmatpush3.bf16.msra.mxu0 %v5166_v5  ;;  %4032 = vmatprep.mubr.msk.f32.mxu0 %vm5016_vm0, %v5017_v4  ;;  %vm5439_vm5 = vcmp.ne.s32.totalorder %v97_v33, 0  ;;  %vm5492_vm8 = vcmp.ne.s32.totalorder %v97_v33, 7 }
 0x12a   :  { %4357 = vmatprep.subr.bf16.mxu0 %v5015_v0 }
 0x12d   :  { %4359 = vmatpush3.bf16.msra.mxu0 %v5172_v7 }
 0x12e   :  { %4360 = vmatprep.subr.bf16.mxu0 %v5015_v0 }
 0x131   :  { %4362 = vmatpush3.bf16.msra.mxu0 %v5198_v15 }
 0x132   :  { %4363 = vmatprep.subr.bf16.mxu0 %v5015_v0 }
 0x135   :  { %4365 = vmatpush3.bf16.msra.mxu0 %v5208_v21 }
 0x136   :  { %4366 = vmatprep.subr.bf16.mxu0 %v5015_v0 }
 0x139   :  { %4368 = vmatpush3.bf16.msra.mxu0 %v5218_v26 }
 0x13a   :  { %4369 = vmatprep.subr.bf16.mxu0 %v5015_v0 }
 0x13d   :  { %4371 = vmatpush3.bf16.msra.mxu0 %v5228_v31 }
 0x13e   :  { %4372 = vmatprep.subr.bf16.mxu0 %v5015_v0 }
 0x141   :  { %4374 = vmatpush3.bf16.msra.mxu0 %v5238_v36 }
 0x142   :  { %4375 = vmatprep.subr.bf16.mxu0 %v5015_v0 }
 0x145   :  { %4377 = vmatpush3.bf16.msra.mxu0 %v5248_v41 }
 0x146   :  { %4378 = vmatprep.subr.bf16.mxu0 %v5015_v0 }
 0x1fb   :  { %v329_v50 = vpop.f32.mrb[2].mxu0 }
 0x1fc   :  { %v336_v51 = vrot.slane %v329_v50, %v5322_v37  ;;  %v3894_v52 = vpop.f32.mrb[3].mxu0  ;;  %v342_v55 = vrot.slane %v329_v50, %v5358_v49 }
 0x1fd   :  { %v3301_v52 = vld [vmem:[%s7261_s7 + $0x130] sm:$0xff] }
 0x1fe   :  { %v337_v53 = vmul.f32 %v336_v51, %v5184_v10  ;;  %v338_v54 = vmul.f32 %v336_v51, %v5189_v11  ;;  %v4294_v10 = vpack.c.bf16 %v370_v58, %v369_v57  ;;  %v3305_v58 = vld [vmem:[%s7261_s7 + $0x150] sm:$0xff]  ;;  %v3503_v11 = vld [vmem:[%s7232_s20 + $0x468] sm:$0xff] }
 0x200   :  { %v5371_v59 = vadd.f32 %v342_v55, %v337_v53  ;;  %v5373_v60 = vadd.f32 %v342_v55, %v338_v54  ;;  %v3302_v53 = vld [vmem:[%s7261_s7 + $0x138] sm:$0xff]  ;;  %v3303_v55 = vld [vmem:[%s7261_s7 + $0x140] sm:$0xff] }
 0x201   :  { %v4334_v54 = vpack.c.bf16 %v3302_v53, %v3301_v52  ;;  %v4338_v57 = vpack.c.bf16 %v3304_v56, %v3303_v55  ;;  %v737_v55 = vld [vmem:[%s7273_s1] sm:$0x1] }
 0x202   :  { %3927 = vmatprep.mubr.f32.mxu1 %v5371_v59  ;;  %v345_v61 = vrot.slane %v5371_v59, 7  ;;  %v346_v62 = vrot.slane %v5373_v60, 7  ;;  %v356_v39 = vrot.slane %v5371_v59, 1  ;;  %v357_v40 = vrot.slane %v5373_v60, 1  ;;  %v3306_v59 = vld [vmem:[%s7261_s7 + $0x158] sm:$0xff] }
 0x203   :  { %3928 = vmatmul.mubr.f32.vlgmr.msra.gmra.mrb[0].mxu1 %v5373_v60  ;;  %v4342_v60 = vpack.c.bf16 %v3306_v59, %v3305_v58  ;;  %v758_v58 = vld [vmem:[%s7274_s2] sm:$0x1] }
 0x204   :  { %4293 = vmatpush3.bf16.msra.mxu1 %v4290_v48  ;;  %v349_v2 = vsel %vm347_vm3, %v346_v62, %v345_v61  ;;  %v348_v45 = vsel %vm347_vm3, %v345_v61, %v346_v62  ;;  %v3300_v48 = vld [vmem:[%s7261_s7 + $0x128] sm:$0xff]  ;;  %v359_v50 = vsel %vm358_vm6, %v356_v39, %v357_v40  ;;  %v360_v6 = vsel %vm358_vm6, %v357_v40, %v356_v39 }
 0x205   :  { %3962 = vmatprep.mubr.msk.f32.mxu1 %vm5377_vm4, %v349_v2  ;;  %4295 = vmatprep.subr.bf16.mxu1 %v4294_v10  ;;  %v4330_v51 = vpack.c.bf16 %v3300_v48, %v3299_v46  ;;  %v3308_v61 = vld [vmem:[%s7261_s7 + $0x168] sm:$0xff]  ;;  %v4350_v2 = vpack.c.bf16 %v3310_v1, %v3309_v63  ;;  %v4381_v39 = vpack.c.bf16 %v3316_v38, %v3315_v35 }
 0x206   :  { %v879_v35 = vld [vmem:[%s7272_s0 + $0x8] sm:$0xff] }
 0x208   :  { %4297 = vmatpush3.bf16.msra.mxu1 %v4294_v10  ;;  %v3307_v10 = vld [vmem:[%s7261_s7 + $0x160] sm:$0xff] }
 0x209   :  { %4299 = vmatprep.subr.bf16.mxu1 %v4298_v3  ;;  %v4346_v62 = vpack.c.bf16 %v3308_v61, %v3307_v10  ;;  %v3317_v10 = vld [vmem:[%s7272_s0 + $0x90] sm:$0xff]  ;;  %v3318_v61 = vld [vmem:[%s7272_s0 + $0x98] sm:$0xff] }
 0x20a   :  { %v4385_v63 = vpack.c.bf16 %v3318_v61, %v3317_v10  ;;  %v882_v61 = vld [vmem:[%s7272_s0 + $0x20] sm:$0xff] }
 0x20c   :  { %4301 = vmatpush3.bf16.msra.mxu1 %v4298_v3 }
 0x20d   :  { %4303 = vmatprep.subr.bf16.mxu1 %v4302_v9 }
 0x210   :  { %4305 = vmatpush3.bf16.msra.mxu1 %v4302_v9 }
 0x211   :  { %4307 = vmatprep.subr.bf16.mxu1 %v4306_v14 }
 0x214   :  { %4309 = vmatpush3.bf16.msra.mxu1 %v4306_v14 }
 0x215   :  { %4311 = vmatprep.subr.bf16.mxu1 %v4310_v18 }
 0x218   :  { %4313 = vmatpush3.bf16.msra.mxu1 %v4310_v18 }
 0x219   :  { %4315 = vmatprep.subr.bf16.mxu1 %v4314_v22 }
 0x21c   :  { %4317 = vmatpush3.bf16.msra.mxu1 %v4314_v22 }
 0x21d   :  { %4319 = vmatprep.subr.bf16.mxu1 %v4318_v29 }
 0x220   :  { %4321 = vmatpush3.bf16.msra.mxu1 %v4318_v29 }
 0x221   :  { %4323 = vmatprep.subr.bf16.mxu1 %v4322_v34 }
 0x223   :  { %3963 = vmatmul.mubr.msk.f32.vlgmr.msra.gmra.mrb[0].mxu1 %vm5439_vm5, %v348_v45 }
 0x224   :  { %4325 = vmatpush3.bf16.msra.mxu1 %v4322_v34  ;;  %3997 = vmatprep.mubr.msk.f32.mxu1 %vm5444_vm7, %v359_v50 }
 0x225   :  { %4327 = vmatprep.subr.bf16.mxu1 %v4326_v44 }
 0x228   :  { %4329 = vmatpush3.bf16.msra.mxu1 %v4326_v44 }
 0x229   :  { %4331 = vmatprep.subr.bf16.mxu1 %v4330_v51 }
 0x22c   :  { %4333 = vmatpush3.bf16.msra.mxu1 %v4330_v51 }
 0x22d   :  { %4335 = vmatprep.subr.bf16.mxu1 %v4334_v54 }
 0x230   :  { %4337 = vmatpush3.bf16.msra.mxu1 %v4334_v54 }
 0x231   :  { %4339 = vmatprep.subr.bf16.mxu1 %v4338_v57 }
 0x234   :  { %4341 = vmatpush3.bf16.msra.mxu1 %v4338_v57 }
 0x235   :  { %4343 = vmatprep.subr.bf16.mxu1 %v4342_v60 }
 0x238   :  { %4345 = vmatpush3.bf16.msra.mxu1 %v4342_v60 }
 0x239   :  { %4347 = vmatprep.subr.bf16.mxu1 %v4346_v62 }
 0x23c   :  { %4349 = vmatpush3.bf16.msra.mxu1 %v4346_v62 }
 0x23d   :  { %4351 = vmatprep.subr.bf16.mxu1 %v4350_v2 }
 0x240   :  { %4353 = vmatpush3.bf16.msra.mxu1 %v4350_v2  ;;  %v3319_v2 = vld [vmem:[%s7272_s0 + $0xa0] sm:$0xff] }
 0x241   :  { %4477 = vmatprep.subr.bf16.mxu1 %v5015_v0 }
 0x243   :  { %3998 = vmatmul.mubr.msk.f32.vlgmr.msra.gmra.mrb[0].mxu1 %vm5492_vm8, %v360_v6  ;;  %v3320_v6 = vld [vmem:[%s7272_s0 + $0xa8] sm:$0xff] }
 0x244   :  { %4479 = vmatpush3.bf16.msra.mxu1 %v5166_v5  ;;  %4179 = vmatprep.mubr.msk.f32.mxu1 %vm5016_vm0, %v5017_v4 }
 0x245   :  { %4480 = vmatprep.subr.bf16.mxu1 %v5015_v0 }
 0x248   :  { %4482 = vmatpush3.bf16.msra.mxu1 %v5172_v7 }
 0x249   :  { %4483 = vmatprep.subr.bf16.mxu1 %v5015_v0 }
 0x24c   :  { %4485 = vmatpush3.bf16.msra.mxu1 %v5198_v15 }
 0x24d   :  { %4486 = vmatprep.subr.bf16.mxu1 %v5015_v0 }
 0x250   :  { %4488 = vmatpush3.bf16.msra.mxu1 %v5208_v21 }
 0x251   :  { %4489 = vmatprep.subr.bf16.mxu1 %v5015_v0 }
 0x254   :  { %4491 = vmatpush3.bf16.msra.mxu1 %v5218_v26 }
 0x255   :  { %4492 = vmatprep.subr.bf16.mxu1 %v5015_v0 }
 0x258   :  { %4494 = vmatpush3.bf16.msra.mxu1 %v5228_v31 }
 0x259   :  { %4495 = vmatprep.subr.bf16.mxu1 %v5015_v0 }
 0x25c   :  { %4497 = vmatpush3.bf16.msra.mxu1 %v5238_v36 }
 0x25d   :  { %4498 = vmatprep.subr.bf16.mxu1 %v5015_v0 }
 0x260   :  { %4500 = vmatpush3.bf16.msra.mxu1 %v5248_v41 }
 0x261   :  { %4501 = vmatprep.subr.bf16.mxu1 %v5015_v0 }
 0x316   :  { %v5519_v8 = vpop.f32.mrb[0].mxu1 }
 0x317   :  { %v652_v9 = vmul.f32 %v5519_v8, %v5519_v8  ;;  %v5523_v12 = vpop.f32.mrb[1].mxu1 }
 0x318   :  { %v644_v13 = vadd.f32 %v5519_v8, %v5523_v12  ;;  %v651_v14 = vmul.f32 %v5523_v12, %v5523_v12 }
 0x31a   :  { %v645_v16 = vrot.slane %v644_v13, 4  ;;  %v653_v17 = vadd.f32 %v652_v9, %v651_v14  ;;  %v4389_v9 = vpack.c.bf16 %v3320_v6, %v3319_v2  ;;  %v3322_v14 = vld [vmem:[%s7272_s0 + $0xb8] sm:$0xff] }
 0x31c   :  { %v646_v18 = vadd.f32 %v645_v16, %v644_v13  ;;  %v654_v19 = vrot.slane %v653_v17, 4  ;;  %v3321_v13 = vld [vmem:[%s7272_s0 + $0xb0] sm:$0xff] }
 0x31d   :  { %v4393_v16 = vpack.c.bf16 %v3322_v14, %v3321_v13  ;;  %v884_v13 = vld [vmem:[%s7272_s0 + $0x30] sm:$0xff]  ;;  %v885_v14 = vld [vmem:[%s7272_s0 + $0x38] sm:$0xff] }
 0x31e   :  { %v647_v20 = vrot.slane %v646_v18, 2  ;;  %v655_v22 = vadd.f32 %v654_v19, %v653_v17  ;;  %v3323_v17 = vld [vmem:[%s7272_s0 + $0xc0] sm:$0xff] }
 0x320   :  { %v648_v24 = vadd.f32 %v647_v20, %v646_v18  ;;  %v656_v27 = vrot.slane %v655_v22, 2  ;;  %v3324_v18 = vld [vmem:[%s7272_s0 + $0xc8] sm:$0xff]  ;;  %v3325_v20 = vld [vmem:[%s7272_s0 + $0xd0] sm:$0xff] }
 0x321   :  { %v4397_v19 = vpack.c.bf16 %v3324_v18, %v3323_v17  ;;  %v886_v17 = vld [vmem:[%s7272_s0 + $0x40] sm:$0xff]  ;;  %v887_v18 = vld [vmem:[%s7272_s0 + $0x48] sm:$0xff] }
 0x322   :  { %v649_v28 = vrot.slane %v648_v24, 1  ;;  %v657_v29 = vadd.f32 %v656_v27, %v655_v22  ;;  %v3326_v22 = vld [vmem:[%s7272_s0 + $0xd8] sm:$0xff]  ;;  %v3327_v27 = vld [vmem:[%s7272_s0 + $0xe0] sm:$0xff] }
 0x324   :  { %v658_v30 = vrot.slane %v657_v29, 1  ;;  %v650_v32 = vadd.f32 %v649_v28, %v648_v24  ;;  %v4401_v24 = vpack.c.bf16 %v3326_v22, %v3325_v20  ;;  %v3328_v28 = vld [vmem:[%s7272_s0 + $0xe8] sm:$0xff]  ;;  %v888_v20 = vld [vmem:[%s7272_s0 + $0x50] sm:$0xff]  ;;  %v889_v22 = vld [vmem:[%s7272_s0 + $0x58] sm:$0xff] }
 0x326   :  { %v659_v33 = vadd.f32 %v658_v30, %v657_v29  ;;  %v4405_v29 = vpack.c.bf16 %v3328_v28, %v3327_v27  ;;  %v3329_v30 = vld [vmem:[%s7272_s0 + $0xf0] sm:$0xff]  ;;  %v890_v27 = vld [vmem:[%s7272_s0 + $0x60] sm:$0xff]  ;;  %v891_v28 = vld [vmem:[%s7272_s0 + $0x68] sm:$0xff] }
 0x328   :  { %v660_v34 = vsel %vm132_vm1, %v650_v32, %v659_v33  ;;  %v3330_v32 = vld [vmem:[%s7272_s0 + $0xf8] sm:$0xff] }
 0x329   :  { %4033 = vmatmul.mubr.f32.vlgmr.msra.gmra.mrb[4].mxu0 %v660_v34  ;;  %v4409_v33 = vpack.c.bf16 %v3330_v32, %v3329_v30  ;;  %v878_v34 = vld [vmem:[%s7272_s0] sm:$0xff]  ;;  %v892_v30 = vld [vmem:[%s7272_s0 + $0x70] sm:$0xff]  ;;  %v893_v32 = vld [vmem:[%s7272_s0 + $0x78] sm:$0xff] }
 0x32a   :  { %4380 = vmatpush3.bf16.msra.mxu0 %v5262_v47  ;;  %4039 = vmatprep.mubr.msk.f32.mxu0 %vm5016_vm0, %v5017_v4  ;;  %v4413_v38 = vpack.c.bf16 %v879_v35, %v878_v34  ;;  %v3333_v34 = vld [vmem:[%s7272_s0 + $0x100] sm:$0xff]  ;;  %v3334_v35 = vld [vmem:[%s7272_s0 + $0x108] sm:$0xff] }
 0x32b   :  { %4382 = vmatprep.subr.bf16.mxu0 %v4381_v39 }
 0x3fc   :  { %v727_v40 = vpop.f32.mrb[4].mxu0 }
 0x3fd   :  { %v731_v44 = vmul.f32 0.0078125, %v727_v40  ;;  %v4034_v45 = vpop.f32.mrb[5].mxu0 }
 0x3ff   :  { %v732_v46 = vmul.f32 %v731_v44, %v731_v44 }
 0x401   :  { %v734_v48 = vrot.slane %v732_v46, 7 }
 0x403   :  { %v736_v50 = vsub.f32 %v731_v44, %v734_v48 }
 0x405   :  { %v738_v51 = vadd.f32 1e-05, %v736_v50  ;;  %v3314_v50 = vld [vmem:[%s7275_s29] ss:$0 sm:$0xff] }
 0x407   :  { %5001 = vrsqrt.f32 %v738_v51 }
 0x411   :  { %v5002_v52 = vpop.eup %5001 }
 0x412   :  { %v747_v53 = vrot.slane %v5002_v52, %v5311_v25 }
 0x414   :  { %v748_v54 = vcombine.high %v747_v53, %v747_v53  ;;  %v880_v53 = vld [vmem:[%s7272_s0 + $0x10] sm:$0xff] }
 0x416   :  { %v755_v56 = vrot.slane %v748_v54, %v5311_v25  ;;  %v881_v54 = vld [vmem:[%s7272_s0 + $0x18] sm:$0xff] }
 0x418   :  { %v757_v57 = vmul.f32 %v755_v56, %v737_v55 }
 0x41a   :  { %v759_v59 = vmul.f32 %v757_v57, %v731_v44 }
 0x41c   :  { %v760_v60 = vsub.f32 %v758_v58, %v759_v59 }
 0x41e   :  { %v765_v62 = vrot.slane %v760_v60, %v5322_v37 }
 0x420   :  { %v767_v1 = vsel %vm132_vm1, %v757_v57, %v765_v62  ;;  %v4417_v57 = vpack.c.bf16 %v881_v54, %v880_v53  ;;  %v883_v62 = vld [vmem:[%s7272_s0 + $0x28] sm:$0xff]  ;;  %v3341_v53 = vld [vmem:[%s7272_s0 + $0x140] sm:$0xff] }
 0x421   :  { %4040 = vmatmul.mubr.msk.f32.vlgmr.msra.gmra.mrb[6].mxu0 %vm259_vm2, %v767_v1  ;;  %v3342_v54 = vld [vmem:[%s7272_s0 + $0x148] sm:$0xff] }
 0x422   :  { %4384 = vmatpush3.bf16.msra.mxu0 %v4381_v39 }
 0x423   :  { %4386 = vmatprep.subr.bf16.mxu0 %v4385_v63 }
 0x426   :  { %4388 = vmatpush3.bf16.msra.mxu0 %v4385_v63 }
 0x427   :  { %4390 = vmatprep.subr.bf16.mxu0 %v4389_v9 }
 0x42a   :  { %4392 = vmatpush3.bf16.msra.mxu0 %v4389_v9  ;;  %v4421_v9 = vpack.c.bf16 %v883_v62, %v882_v61 }
 0x42b   :  { %4394 = vmatprep.subr.bf16.mxu0 %v4393_v16 }
 0x42e   :  { %4396 = vmatpush3.bf16.msra.mxu0 %v4393_v16  ;;  %v4425_v16 = vpack.c.bf16 %v885_v14, %v884_v13 }
 0x42f   :  { %4398 = vmatprep.subr.bf16.mxu0 %v4397_v19 }
 0x432   :  { %4400 = vmatpush3.bf16.msra.mxu0 %v4397_v19  ;;  %v4429_v19 = vpack.c.bf16 %v887_v18, %v886_v17 }
 0x433   :  { %4402 = vmatprep.subr.bf16.mxu0 %v4401_v24 }
 0x436   :  { %4404 = vmatpush3.bf16.msra.mxu0 %v4401_v24  ;;  %v4433_v24 = vpack.c.bf16 %v889_v22, %v888_v20 }
 0x437   :  { %4406 = vmatprep.subr.bf16.mxu0 %v4405_v29 }
 0x43a   :  { %4408 = vmatpush3.bf16.msra.mxu0 %v4405_v29  ;;  %v4437_v29 = vpack.c.bf16 %v891_v28, %v890_v27 }
 0x43b   :  { %4410 = vmatprep.subr.bf16.mxu0 %v4409_v33 }
 0x43e   :  { %4412 = vmatpush3.bf16.msra.mxu0 %v4409_v33  ;;  %v4441_v33 = vpack.c.bf16 %v893_v32, %v892_v30 }
 0x43f   :  { %4414 = vmatprep.subr.bf16.mxu0 %v4413_v38 }
 0x4f4   :  { %v837_v39 = vpop.f32.mrb[6].mxu0 }
 0x4f5   :  { %v844_v40 = vrot.slane %v837_v39, %v5322_v37  ;;  %v4041_v44 = vpop.f32.mrb[7].mxu0  ;;  %v850_v48 = vrot.slane %v837_v39, %v5358_v49  ;;  %v3335_v39 = vld [vmem:[%s7272_s0 + $0x110] sm:$0xff] }
 0x4f7   :  { %v845_v45 = vmul.f32 %v844_v40, %v5523_v12  ;;  %v846_v46 = vmul.f32 %v5519_v8, %v844_v40  ;;  %v3336_v40 = vld [vmem:[%s7272_s0 + $0x118] sm:$0xff] }
 0x4f8   :  { %v4449_v44 = vpack.c.bf16 %v3336_v40, %v3335_v39 }
 0x4f9   :  { %v851_v51 = vadd.f32 %v850_v48, %v845_v45  ;;  %v852_v52 = vadd.f32 %v850_v48, %v846_v46  ;;  %v3337_v45 = vld [vmem:[%s7272_s0 + $0x120] sm:$0xff]  ;;  %v3338_v46 = vld [vmem:[%s7272_s0 + $0x128] sm:$0xff] }
 0x4fa   :  { %v4453_v48 = vpack.c.bf16 %v3338_v46, %v3337_v45 }
 0x4fb   :  { %vm854_vm9 = vcmp.ge.f32.partialorder %v851_v51, 0.0  ;;  %v862_v12 = vmul.f32 %v3314_v50, %v851_v51  ;;  %vm855_vm10 = vcmp.ge.f32.partialorder %v852_v52, 0.0  ;;  %v863_v8 = vmul.f32 %v3314_v50, %v852_v52  ;;  %v3339_v50 = vld [vmem:[%s7272_s0 + $0x130] sm:$0xff] }
 0x4fd   :  { %v864_v55 = vsel %vm854_vm9, %v851_v51, %v862_v12  ;;  %v865_v56 = vsel %vm855_vm10, %v852_v52, %v863_v8  ;;  %v3340_v51 = vld [vmem:[%s7272_s0 + $0x138] sm:$0xff]  ;;  %v4461_v12 = vpack.c.bf16 %v3342_v54, %v3341_v53  ;;  %v3343_v8 = vld [vmem:[%s7272_s0 + $0x150] sm:$0xff] }
 0x4fe   :  { %v866_v58 = vrot.slane %v864_v55, 7  ;;  %v872_v59 = vrot.slane %v864_v55, 1  ;;  %4074 = vmatprep.mubr.f32.mxu0 %v864_v55  ;;  %v867_v60 = vrot.slane %v865_v56, 7  ;;  %v873_v10 = vrot.slane %v865_v56, 1  ;;  %v3344_v55 = vld [vmem:[%s7272_s0 + $0x158] sm:$0xff] }
 0x4ff   :  { %4075 = vmatmul.mubr.f32.vlgmr.msra.gmra.mrb[8].mxu0 %v865_v56  ;;  %v4457_v52 = vpack.c.bf16 %v3340_v51, %v3339_v50  ;;  %v4465_v56 = vpack.c.bf16 %v3344_v55, %v3343_v8  ;;  %v1269_v51 = vld [vmem:[%s7226_s11] sm:$0x1] }
 0x500   :  { %4416 = vmatpush3.bf16.msra.mxu0 %v4413_v38  ;;  %v869_v63 = vsel %vm347_vm3, %v867_v60, %v866_v58  ;;  %v868_v1 = vsel %vm347_vm3, %v866_v58, %v867_v60  ;;  %v874_v2 = vsel %vm358_vm6, %v872_v59, %v873_v10  ;;  %v5625_v6 = vsel %vm358_vm6, %v873_v10, %v872_v59  ;;  %v3346_v58 = vld [vmem:[%s7272_s0 + $0x168] sm:$0xff]  ;;  %v3347_v60 = vld [vmem:[%s7272_s0 + $0x170] sm:$0xff]  ;;  %v3348_v10 = vld [vmem:[%s7272_s0 + $0x178] sm:$0xff] }
 0x501   :  { %4109 = vmatprep.mubr.msk.f32.mxu0 %vm5377_vm4, %v869_v63  ;;  %4418 = vmatprep.subr.bf16.mxu0 %v4417_v57  ;;  %v4445_v38 = vpack.c.bf16 %v3334_v35, %v3333_v34  ;;  %v4473_v61 = vpack.c.bf16 %v3348_v10, %v3347_v60 }
 0x504   :  { %4420 = vmatpush3.bf16.msra.mxu0 %v4417_v57  ;;  %v3345_v57 = vld [vmem:[%s7272_s0 + $0x160] sm:$0xff] }
 0x505   :  { %4422 = vmatprep.subr.bf16.mxu0 %v4421_v9  ;;  %v4469_v59 = vpack.c.bf16 %v3346_v58, %v3345_v57 }
 0x508   :  { %4424 = vmatpush3.bf16.msra.mxu0 %v4421_v9 }
 0x509   :  { %4426 = vmatprep.subr.bf16.mxu0 %v4425_v16 }
 0x50c   :  { %4428 = vmatpush3.bf16.msra.mxu0 %v4425_v16 }
 0x50d   :  { %4430 = vmatprep.subr.bf16.mxu0 %v4429_v19 }
 0x510   :  { %4432 = vmatpush3.bf16.msra.mxu0 %v4429_v19 }
 0x511   :  { %4434 = vmatprep.subr.bf16.mxu0 %v4433_v24 }
 0x514   :  { %4436 = vmatpush3.bf16.msra.mxu0 %v4433_v24 }
 0x515   :  { %4438 = vmatprep.subr.bf16.mxu0 %v4437_v29 }
 0x518   :  { %4440 = vmatpush3.bf16.msra.mxu0 %v4437_v29 }
 0x519   :  { %4442 = vmatprep.subr.bf16.mxu0 %v4441_v33 }
 0x51c   :  { %4444 = vmatpush3.bf16.msra.mxu0 %v4441_v33 }
 0x51d   :  { %4446 = vmatprep.subr.bf16.mxu0 %v4445_v38 }
 0x51f   :  { %4110 = vmatmul.mubr.msk.f32.vlgmr.msra.gmra.mrb[8].mxu0 %vm5439_vm5, %v868_v1 }
 0x520   :  { %4448 = vmatpush3.bf16.msra.mxu0 %v4445_v38  ;;  %4144 = vmatprep.mubr.msk.f32.mxu0 %vm5444_vm7, %v874_v2 }
 0x521   :  { %4450 = vmatprep.subr.bf16.mxu0 %v4449_v44 }
 0x524   :  { %4452 = vmatpush3.bf16.msra.mxu0 %v4449_v44 }
 0x525   :  { %4454 = vmatprep.subr.bf16.mxu0 %v4453_v48 }
 0x528   :  { %4456 = vmatpush3.bf16.msra.mxu0 %v4453_v48 }
 0x529   :  { %4458 = vmatprep.subr.bf16.mxu0 %v4457_v52 }
 0x52c   :  { %4460 = vmatpush3.bf16.msra.mxu0 %v4457_v52 }
 0x52d   :  { %4462 = vmatprep.subr.bf16.mxu0 %v4461_v12 }
 0x530   :  { %4464 = vmatpush3.bf16.msra.mxu0 %v4461_v12 }
 0x531   :  { %4466 = vmatprep.subr.bf16.mxu0 %v4465_v56 }
 0x534   :  { %4468 = vmatpush3.bf16.msra.mxu0 %v4465_v56 }
 0x535   :  { %4470 = vmatprep.subr.bf16.mxu0 %v4469_v59 }
 0x538   :  { %4472 = vmatpush3.bf16.msra.mxu0 %v4469_v59 }
 0x539   :  { %4474 = vmatprep.subr.bf16.mxu0 %v4473_v61 }
 0x53c   :  { %4476 = vmatpush3.bf16.msra.mxu0 %v4473_v61 }
 0x53d   :  { %4528 = vmatprep.subr.bf16.mxu0 %v5015_v0 }
 0x53f   :  { %4145 = vmatmul.mubr.msk.f32.vlgmr.msra.gmra.mrb[8].mxu0 %vm5492_vm8, %v5625_v6 }
 0x540   :  { %4530 = vmatpush3.bf16.msra.mxu0 %v5262_v47  ;;  %4228 = vmatprep.mubr.msk.f32.mxu0 %vm5016_vm0, %v5017_v4 }
 0x612   :  { %v5718_v62 = vpop.f32.mrb[8].mxu0 }
 0x613   :  { %v1163_v63 = vmul.f32 %v5718_v62, %v5718_v62  ;;  %v1144_v1 = vpop.f32.mrb[9].mxu0 }
 0x614   :  { %v1155_v2 = vadd.f32 %v5718_v62, %v1144_v1  ;;  %v1162_v9 = vmul.f32 %v1144_v1, %v1144_v1 }
 0x616   :  { %v1156_v13 = vrot.slane %v1155_v2, 4  ;;  %v1164_v14 = vadd.f32 %v1163_v63, %v1162_v9 }
 0x618   :  { %v1157_v16 = vadd.f32 %v1156_v13, %v1155_v2  ;;  %v1165_v17 = vrot.slane %v1164_v14, 4 }
 0x61a   :  { %v1158_v18 = vrot.slane %v1157_v16, 2  ;;  %v1166_v6 = vadd.f32 %v1165_v17, %v1164_v14 }
 0x61c   :  { %v1159_v19 = vadd.f32 %v1158_v18, %v1157_v16  ;;  %v1167_v20 = vrot.slane %v1166_v6, 2 }
 0x61e   :  { %v1160_v22 = vrot.slane %v1159_v19, 1  ;;  %v1168_v24 = vadd.f32 %v1167_v20, %v1166_v6  ;;  %v3356_v20 = vld [vmem:[%s7227_s16 + $0x118] sm:$0xff] }
 0x620   :  { %v1169_v27 = vrot.slane %v1168_v24, 1  ;;  %v1161_v28 = vadd.f32 %v1160_v22, %v1159_v19  ;;  %v3354_v19 = vld [vmem:[%s7227_s16 + $0x108] sm:$0xff] }
 0x621   :  { %v4531_v22 = vpack.c.bf16 %v3356_v20, %v3354_v19  ;;  %v3378_v19 = vld [vmem:[%s7227_s16 + $0x1c8] sm:$0xff]  ;;  %v3380_v20 = vld [vmem:[%s7227_s16 + $0x1d8] sm:$0xff] }
 0x622   :  { %v1170_v29 = vadd.f32 %v1169_v27, %v1168_v24 }
 0x623   :  { %4532 = vmatprep.subr.bf16.mxu0 %v4531_v22 }
 0x624   :  { %v1171_v30 = vsel %vm132_vm1, %v1161_v28, %v1170_v29 }
 0x625   :  { %4180 = vmatmul.mubr.f32.vlgmr.msra.gmra.mrb[2].mxu1 %v1171_v30 }
 0x626   :  { %4503 = vmatpush3.bf16.msra.mxu1 %v5262_v47  ;;  %4186 = vmatprep.mubr.msk.f32.mxu1 %vm5016_vm0, %v5017_v4  ;;  %v1248_v47 = vld [vmem:[%s7276_s5] sm:$0x1] }
 0x627   :  { %4504 = vmatprep.subr.bf16.mxu1 %v5015_v0 }
 0x6f8   :  { %v1238_v32 = vpop.f32.mrb[2].mxu1 }
 0x6f9   :  { %v1242_v33 = vmul.f32 0.0078125, %v1238_v32  ;;  %v4181_v34 = vpop.f32.mrb[3].mxu1 }
 0x6fb   :  { %v1243_v35 = vmul.f32 %v1242_v33, %v1242_v33 }
 0x6fd   :  { %v1245_v38 = vrot.slane %v1243_v35, 7 }
 0x6ff   :  { %v1247_v39 = vsub.f32 %v1242_v33, %v1245_v38 }
 0x701   :  { %v1249_v40 = vadd.f32 1e-05, %v1247_v39  ;;  %v1459_v39 = vld [vmem:[%s7228_s14] sm:$0x1] }
 0x703   :  { %5003 = vrsqrt.f32 %v1249_v40 }
 0x70d   :  { %v5004_v44 = vpop.eup %5003 }
 0x70e   :  { %v1258_v45 = vrot.slane %v5004_v44, %v5311_v25 }
 0x710   :  { %v1259_v46 = vcombine.high %v1258_v45, %v1258_v45  ;;  %v1480_v45 = vld [vmem:[%s7229_s15] sm:$0x1] }
 0x712   :  { %v1266_v48 = vrot.slane %v1259_v46, %v5311_v25 }
 0x714   :  { %v1268_v50 = vmul.f32 %v1266_v48, %v1248_v47  ;;  %v3353_v47 = vld [vmem:[%s7227_s16 + $0x100] sm:$0xff]  ;;  %v3355_v48 = vld [vmem:[%s7227_s16 + $0x110] sm:$0xff] }
 0x716   :  { %v1270_v52 = vmul.f32 %v1268_v50, %v1242_v33 }
 0x718   :  { %v1271_v53 = vsub.f32 %v1269_v51, %v1270_v52  ;;  %v3358_v51 = vld [vmem:[%s7227_s16 + $0x128] sm:$0xff]  ;;  %v3360_v52 = vld [vmem:[%s7227_s16 + $0x138] sm:$0xff] }
 0x71a   :  { %v1276_v54 = vrot.slane %v1271_v53, %v5322_v37 }
 0x71c   :  { %v1278_v12 = vsel %vm132_vm1, %v1268_v50, %v1276_v54  ;;  %v4533_v54 = vpack.c.bf16 %v3355_v48, %v3353_v47  ;;  %v1954_v47 = vld [vmem:[%s7230_s12] sm:$0xff] }
 0x71d   :  { %4187 = vmatmul.mubr.msk.f32.vlgmr.msra.gmra.mrb[4].mxu1 %vm259_vm2, %v1278_v12  ;;  %v4535_v12 = vpack.c.bf16 %v3360_v52, %v3358_v51  ;;  %v1972_v51 = vld [vmem:[%s7230_s12 + $0x90] sm:$0xff]  ;;  %v1973_v52 = vld [vmem:[%s7230_s12 + $0x98] sm:$0xff] }
 0x71e   :  { %4506 = vmatpush3.bf16.msra.mxu1 %v5166_v5  ;;  %4221 = vmatprep.mubr.msk.f32.mxu1 %vm5016_vm0, %v5017_v4 }
 0x71f   :  { %4507 = vmatprep.subr.bf16.mxu1 %v5015_v0 }
 0x722   :  { %4509 = vmatpush3.bf16.msra.mxu1 %v5172_v7 }
 0x723   :  { %4510 = vmatprep.subr.bf16.mxu1 %v5015_v0 }
 0x726   :  { %4512 = vmatpush3.bf16.msra.mxu1 %v5198_v15 }
 0x727   :  { %4513 = vmatprep.subr.bf16.mxu1 %v5015_v0 }
 0x72a   :  { %4515 = vmatpush3.bf16.msra.mxu1 %v5208_v21 }
 0x72b   :  { %4516 = vmatprep.subr.bf16.mxu1 %v5015_v0 }
 0x72e   :  { %4518 = vmatpush3.bf16.msra.mxu1 %v5218_v26 }
 0x72f   :  { %4519 = vmatprep.subr.bf16.mxu1 %v5015_v0 }
 0x732   :  { %4521 = vmatpush3.bf16.msra.mxu1 %v5228_v31  ;;  %v5013_v31 = vld [vmem:[%s7259_s27] sm:$0xff] }
 0x733   :  { %4522 = vmatprep.subr.bf16.mxu1 %v5015_v0 }
 0x736   :  { %4524 = vmatpush3.bf16.msra.mxu1 %v5238_v36 }
 0x737   :  { %4525 = vmatprep.subr.bf16.mxu1 %v5015_v0  ;;  %v5014_v0 = vld [vmem:[%s7259_s27 + $0x8] sm:$0xff] }
 0x73a   :  { %4527 = vmatpush3.bf16.msra.mxu1 %v5248_v41 }
 0x7f0   :  { %v1348_v5 = vpop.f32.mrb[4].mxu1 }
 0x7f1   :  { %v1355_v7 = vrot.slane %v1348_v5, %v5322_v37  ;;  %v4188_v15 = vpop.f32.mrb[5].mxu1  ;;  %v1361_v26 = vrot.slane %v1348_v5, %v5358_v49  ;;  %v3357_v5 = vld [vmem:[%s7227_s16 + $0x120] sm:$0xff] }
 0x7f3   :  { %v1356_v21 = vmul.f32 %v1355_v7, %v1144_v1  ;;  %v1357_v8 = vmul.f32 %v5718_v62, %v1355_v7  ;;  %v3359_v7 = vld [vmem:[%s7227_s16 + $0x130] sm:$0xff] }
 0x7f5   :  { %v1362_v55 = vadd.f32 %v1361_v26, %v1356_v21  ;;  %v1363_v56 = vadd.f32 %v1361_v26, %v1357_v8  ;;  %v3362_v21 = vld [vmem:[%s7227_s16 + $0x148] sm:$0xff]  ;;  %v3364_v8 = vld [vmem:[%s7227_s16 + $0x158] sm:$0xff]  ;;  %v4537_v26 = vpack.c.bf16 %v3359_v7, %v3357_v5 }
 0x7f6   :  { %v1957_v5 = vld [vmem:[%s7230_s12 + $0x18] sm:$0xff] }
 0x7f7   :  { %v5762_v36 = vadd.f32 %v5013_v31, %v1362_v55  ;;  %v5767_v41 = vadd.f32 %v5014_v0, %v1363_v56  ;;  %v4539_v55 = vpack.c.bf16 %v3364_v8, %v3362_v21  ;;  %v3361_v56 = vld [vmem:[%s7227_s16 + $0x140] sm:$0xff]  ;;  %v3363_v31 = vld [vmem:[%s7227_s16 + $0x150] sm:$0xff]  ;;  %v3366_v0 = vld [vmem:[%s7227_s16 + $0x168] sm:$0xff] }
 0x7f9   :  { %v1366_v57 = vadd.f32 %v5767_v41, %v5762_v36  ;;  %v1373_v58 = vmul.f32 %v5762_v36, %v5762_v36  ;;  %v1374_v59 = vmul.f32 %v5767_v41, %v5767_v41 }
 0x7fb   :  { %v1367_v60 = vrot.slane %v1366_v57, 4  ;;  %v1375_v10 = vadd.f32 %v1374_v59, %v1373_v58  ;;  %v4541_v58 = vpack.c.bf16 %v3363_v31, %v3361_v56  ;;  %v1592_v56 = vld [vmem:[%s7227_s16 + $0x28] sm:$0xff]  ;;  %v1594_v31 = vld [vmem:[%s7227_s16 + $0x38] sm:$0xff] }
 0x7fd   :  { %v1368_v61 = vadd.f32 %v1367_v60, %v1366_v57  ;;  %v1376_v62 = vrot.slane %v1375_v10, 4  ;;  %v3368_v57 = vld [vmem:[%s7227_s16 + $0x178] sm:$0xff]  ;;  %v3365_v60 = vld [vmem:[%s7227_s16 + $0x160] sm:$0xff] }
 0x7fe   :  { %v4543_v59 = vpack.c.bf16 %v3368_v57, %v3366_v0 }
 0x7ff   :  { %v1369_v63 = vrot.slane %v1368_v61, 2  ;;  %v1377_v1 = vadd.f32 %v1376_v62, %v1375_v10  ;;  %v3367_v10 = vld [vmem:[%s7227_s16 + $0x170] sm:$0xff]  ;;  %v3372_v62 = vld [vmem:[%s7227_s16 + $0x198] sm:$0xff] }
 0x801   :  { %v1370_v2 = vadd.f32 %v1369_v63, %v1368_v61  ;;  %v1378_v9 = vrot.slane %v1377_v1, 2  ;;  %v3370_v61 = vld [vmem:[%s7227_s16 + $0x188] sm:$0xff]  ;;  %v4545_v63 = vpack.c.bf16 %v3367_v10, %v3365_v60  ;;  %v4567_v10 = vpack.c.bf16 %v1594_v31, %v1592_v56 }
 0x803   :  { %v1371_v13 = vrot.slane %v1370_v2, 1  ;;  %v1379_v14 = vadd.f32 %v1378_v9, %v1377_v1  ;;  %v4547_v1 = vpack.c.bf16 %v3372_v62, %v3370_v61  ;;  %v3371_v9 = vld [vmem:[%s7227_s16 + $0x190] sm:$0xff]  ;;  %v1591_v61 = vld [vmem:[%s7227_s16 + $0x20] sm:$0xff] }
 0x804   :  { %v1593_v62 = vld [vmem:[%s7227_s16 + $0x30] sm:$0xff] }
 0x805   :  { %v1380_v16 = vrot.slane %v1379_v14, 1  ;;  %v1372_v17 = vadd.f32 %v1371_v13, %v1370_v2  ;;  %v3369_v2 = vld [vmem:[%s7227_s16 + $0x180] sm:$0xff]  ;;  %v3374_v13 = vld [vmem:[%s7227_s16 + $0x1a8] sm:$0xff] }
 0x807   :  { %v1381_v18 = vadd.f32 %v1380_v16, %v1379_v14  ;;  %v3376_v14 = vld [vmem:[%s7227_s16 + $0x1b8] sm:$0xff]  ;;  %v4549_v16 = vpack.c.bf16 %v3371_v9, %v3369_v2  ;;  %v4569_v2 = vpack.c.bf16 %v1593_v62, %v1591_v61 }
 0x808   :  { %v3394_v61 = vld [vmem:[%s7227_s16 + $0x238] sm:$0xff] }
 0x809   :  { %v1382_v6 = vsel %vm132_vm1, %v1372_v17, %v1381_v18  ;;  %v4551_v17 = vpack.c.bf16 %v3376_v14, %v3374_v13  ;;  %v3373_v18 = vld [vmem:[%s7227_s16 + $0x1a0] sm:$0xff] }
 0x80a   :  { %4222 = vmatmul.mubr.f32.vlgmr.msra.gmra.mrb[6].mxu1 %v1382_v6  ;;  %v3375_v6 = vld [vmem:[%s7227_s16 + $0x1b0] sm:$0xff]  ;;  %v1595_v14 = vld [vmem:[%s7227_s16 + $0x40] sm:$0xff] }
 0x80b   :  { %v4553_v22 = vpack.c.bf16 %v3375_v6, %v3373_v18  ;;  %v1602_v18 = vld [vmem:[%s7227_s16 + $0x78] sm:$0xff] }
 0x8dd   :  { %v1449_v24 = vpop.f32.mrb[6].mxu1 }
 0x8de   :  { %v1453_v27 = vmul.f32 0.0078125, %v1449_v24  ;;  %v4223_v28 = vpop.f32.mrb[7].mxu1  ;;  %v4555_v24 = vpack.c.bf16 %v3380_v20, %v3378_v19  ;;  %v1599_v20 = vld [vmem:[%s7227_s16 + $0x60] sm:$0xff] }
 0x8df   :  { %v3379_v28 = vld [vmem:[%s7227_s16 + $0x1d0] sm:$0xff] }
 0x8e0   :  { %v1454_v29 = vmul.f32 %v1453_v27, %v1453_v27 }
 0x8e2   :  { %v1456_v30 = vrot.slane %v1454_v29, 7 }
 0x8e4   :  { %v1458_v32 = vsub.f32 %v1453_v27, %v1456_v30  ;;  %v3382_v30 = vld [vmem:[%s7227_s16 + $0x1e8] sm:$0xff] }
 0x8e6   :  { %v1460_v33 = vadd.f32 1e-05, %v1458_v32  ;;  %v3384_v32 = vld [vmem:[%s7227_s16 + $0x1f8] sm:$0xff] }
 0x8e8   :  { %5005 = vrsqrt.f32 %v1460_v33  ;;  %v4559_v33 = vpack.c.bf16 %v3384_v32, %v3382_v30  ;;  %v1603_v30 = vld [vmem:[%s7227_s16 + $0x80] sm:$0xff]  ;;  %v1605_v32 = vld [vmem:[%s7227_s16 + $0x90] sm:$0xff] }
 0x8f2   :  { %v5006_v34 = vpop.eup %5005 }
 0x8f3   :  { %v1469_v35 = vrot.slane %v5006_v34, %v5311_v25  ;;  %v3381_v34 = vld [vmem:[%s7227_s16 + $0x1e0] sm:$0xff] }
 0x8f5   :  { %v1470_v38 = vcombine.high %v1469_v35, %v1469_v35  ;;  %v3383_v35 = vld [vmem:[%s7227_s16 + $0x1f0] sm:$0xff] }
 0x8f7   :  { %v1477_v40 = vrot.slane %v1470_v38, %v5311_v25  ;;  %v4561_v38 = vpack.c.bf16 %v3383_v35, %v3381_v34  ;;  %v1610_v34 = vld [vmem:[%s7227_s16 + $0xb8] sm:$0xff]  ;;  %v4581_v35 = vpack.c.bf16 %v1605_v32, %v1603_v30  ;;  %v3401_v30 = vld [vmem:[%s7227_s16 + $0x270] sm:$0xff]  ;;  %v3404_v32 = vld [vmem:[%s7227_s16 + $0x288] sm:$0xff] }
 0x8f9   :  { %v1479_v44 = vmul.f32 %v1477_v40, %v1459_v39  ;;  %v1588_v39 = vld [vmem:[%s7227_s16 + $0x8] sm:$0xff]  ;;  %v1590_v40 = vld [vmem:[%s7227_s16 + $0x18] sm:$0xff] }
 0x8fb   :  { %v1481_v46 = vmul.f32 %v1479_v44, %v1453_v27  ;;  %v3377_v27 = vld [vmem:[%s7227_s16 + $0x1c0] sm:$0xff] }
 0x8fc   :  { %v4557_v29 = vpack.c.bf16 %v3379_v28, %v3377_v27  ;;  %v1606_v27 = vld [vmem:[%s7227_s16 + $0x98] sm:$0xff] }
 0x8fd   :  { %v1482_v50 = vsub.f32 %v1480_v45, %v1481_v46  ;;  %v1970_v45 = vld [vmem:[%s7230_s12 + $0x80] sm:$0xff]  ;;  %v1971_v46 = vld [vmem:[%s7230_s12 + $0x88] sm:$0xff] }
 0x8fe   :  { %v5899_v48 = vpack.c.bf16 %v1971_v46, %v1970_v45  ;;  %v1614_v45 = vld [vmem:[%s7227_s16 + $0xd8] sm:$0xff] }
 0x8ff   :  { %v1487_v53 = vrot.slane %v1482_v50, %v5322_v37  ;;  %v1955_v50 = vld [vmem:[%s7230_s12 + $0x8] sm:$0xff] }
 0x900   :  { %4628 = vmatprep.subr.bf16.mxu1 %v5899_v48 }
 0x901   :  { %v1489_v15 = vsel %vm132_vm1, %v1479_v44, %v1487_v53  ;;  %v4563_v44 = vpack.c.bf16 %v1590_v40, %v1588_v39  ;;  %v5910_v53 = vpack.c.bf16 %v1955_v50, %v1954_v47  ;;  %v1607_v39 = vld [vmem:[%s7227_s16 + $0xa0] sm:$0xff]  ;;  %v1609_v40 = vld [vmem:[%s7227_s16 + $0xb0] sm:$0xff] }
 0x902   :  { %4229 = vmatmul.mubr.msk.f32.vlgmr.msra.gmra.mrb[10].mxu0 %vm259_vm2, %v1489_v15  ;;  %v4585_v46 = vpack.c.bf16 %v1609_v40, %v1607_v39  ;;  %v1611_v50 = vld [vmem:[%s7227_s16 + $0xc0] sm:$0xff]  ;;  %v3405_v39 = vld [vmem:[%s7227_s16 + $0x290] sm:$0xff]  ;;  %v3408_v40 = vld [vmem:[%s7227_s16 + $0x2a8] sm:$0xff] }
 0x903   :  { %4534 = vmatpush1.bf16.msra.mxu0 %v4533_v54  ;;  %1716 = vmatprep.mubr.f32.mxu0 %v5017_v4  ;;  %v5912_v54 = vpack.c.bf16 %v1973_v52, %v1972_v51  ;;  %v1613_v51 = vld [vmem:[%s7227_s16 + $0xd0] sm:$0xff]  ;;  %v1616_v52 = vld [vmem:[%s7227_s16 + $0xe8] sm:$0xff] }
 0x904   :  { %4536 = vmatprep.subr.bf16.mxu0 %v4535_v12  ;;  %v1956_v12 = vld [vmem:[%s7230_s12 + $0x10] sm:$0xff]  ;;  %4630 = vmatpush3.bf16.msra.mxu1 %v5910_v53 }
 0x905   :  { %v5922_v7 = vpack.c.bf16 %v1957_v5, %v1956_v12  ;;  %4632 = vmatprep.subr.bf16.mxu1 %v5912_v54  ;;  %v1618_v12 = vld [vmem:[%s7227_s16 + $0xf8] sm:$0xff]  ;;  %v4589_v5 = vpack.c.bf16 %v1613_v51, %v1611_v50  ;;  %v3409_v50 = vld [vmem:[%s7227_s16 + $0x2b0] sm:$0xff]  ;;  %v3412_v51 = vld [vmem:[%s7227_s16 + $0x2c8] sm:$0xff] }
 0x907   :  { %4538 = vmatpush1.bf16.msra.mxu0 %v4537_v26  ;;  %v1587_v26 = vld [vmem:[%s7227_s16] sm:$0xff] }
 0x908   :  { %4540 = vmatprep.subr.bf16.mxu0 %v4539_v55  ;;  %4634 = vmatpush3.bf16.msra.mxu1 %v5922_v7  ;;  %v1589_v55 = vld [vmem:[%s7227_s16 + $0x10] sm:$0xff] }
 0x90b   :  { %4542 = vmatpush1.bf16.msra.mxu0 %v4541_v58  ;;  %v4565_v58 = vpack.c.bf16 %v1589_v55, %v1587_v26  ;;  %v3388_v26 = vld [vmem:[%s7227_s16 + $0x208] sm:$0xff]  ;;  %v3390_v55 = vld [vmem:[%s7227_s16 + $0x218] sm:$0xff] }
 0x90c   :  { %4544 = vmatprep.subr.bf16.mxu0 %v4543_v59  ;;  %v4595_v31 = vpack.c.bf16 %v3390_v55, %v3388_v26  ;;  %v3418_v26 = vld [vmem:[%s7227_s16 + $0x2f8] sm:$0xff] }
 0x90f   :  { %4546 = vmatpush1.bf16.msra.mxu0 %v4545_v63  ;;  %v1596_v63 = vld [vmem:[%s7227_s16 + $0x48] sm:$0xff] }
 0x910   :  { %4548 = vmatprep.subr.bf16.mxu0 %v4547_v1  ;;  %v1598_v1 = vld [vmem:[%s7227_s16 + $0x58] sm:$0xff] }
 0x911   :  { %v4571_v13 = vpack.c.bf16 %v1598_v1, %v1596_v63  ;;  %v3391_v1 = vld [vmem:[%s7227_s16 + $0x220] sm:$0xff] }
 0x913   :  { %4550 = vmatpush1.bf16.msra.mxu0 %v4549_v16  ;;  %v1597_v16 = vld [vmem:[%s7227_s16 + $0x50] sm:$0xff] }
 0x914   :  { %4552 = vmatprep.subr.bf16.mxu0 %v4551_v17  ;;  %v1600_v17 = vld [vmem:[%s7227_s16 + $0x68] sm:$0xff]  ;;  %v4573_v6 = vpack.c.bf16 %v1597_v16, %v1595_v14  ;;  %v3398_v16 = vld [vmem:[%s7227_s16 + $0x258] sm:$0xff] }
 0x915   :  { %v4575_v19 = vpack.c.bf16 %v1602_v18, %v1600_v17  ;;  %v3396_v14 = vld [vmem:[%s7227_s16 + $0x248] sm:$0xff] }
 0x916   :  { %v4603_v18 = vpack.c.bf16 %v3398_v16, %v3396_v14  ;;  %v1977_v14 = vld [vmem:[%s7230_s12 + $0xb8] sm:$0xff] }
 0x917   :  { %4554 = vmatpush1.bf16.msra.mxu0 %v4553_v22  ;;  %v1601_v22 = vld [vmem:[%s7227_s16 + $0x70] sm:$0xff] }
 0x918   :  { %4556 = vmatprep.subr.bf16.mxu0 %v4555_v24  ;;  %v1604_v24 = vld [vmem:[%s7227_s16 + $0x88] sm:$0xff]  ;;  %v4577_v28 = vpack.c.bf16 %v1601_v22, %v1599_v20 }
 0x919   :  { %v3400_v22 = vld [vmem:[%s7227_s16 + $0x268] sm:$0xff] }
 0x91b   :  { %4558 = vmatpush1.bf16.msra.mxu0 %v4557_v29  ;;  %v4579_v29 = vpack.c.bf16 %v1606_v27, %v1604_v24  ;;  %v3402_v24 = vld [vmem:[%s7227_s16 + $0x278] sm:$0xff] }
 0x91c   :  { %4560 = vmatprep.subr.bf16.mxu0 %v4559_v33  ;;  %v1608_v33 = vld [vmem:[%s7227_s16 + $0xa8] sm:$0xff] }
 0x91f   :  { %4562 = vmatpush1.bf16.msra.mxu0 %v4561_v38  ;;  %v4583_v38 = vpack.c.bf16 %v1610_v34, %v1608_v33  ;;  %v3406_v33 = vld [vmem:[%s7227_s16 + $0x298] sm:$0xff] }
 0x920   :  { %4564 = vmatprep.subr.bf16.mxu0 %v4563_v44  ;;  %v1612_v44 = vld [vmem:[%s7227_s16 + $0xc8] sm:$0xff] }
 0x921   :  { %v4587_v47 = vpack.c.bf16 %v1614_v45, %v1612_v44  ;;  %v3410_v44 = vld [vmem:[%s7227_s16 + $0x2b8] sm:$0xff] }
 0x9d5   :  { %v1559_v15 = vpop.f32.mrb[10].mxu0 }
 0x9d6   :  { %v1566_v21 = vrot.slane %v1559_v15, %v5322_v37  ;;  %v4230_v8 = vpop.f32.mrb[11].mxu0  ;;  %v1572_v57 = vrot.slane %v1559_v15, %v5358_v49  ;;  %v4591_v15 = vpack.c.bf16 %v1618_v12, %v1616_v52  ;;  %v3414_v52 = vld [vmem:[%s7227_s16 + $0x2d8] sm:$0xff] }
 0x9d7   :  { %v1617_v8 = vld [vmem:[%s7227_s16 + $0xf0] sm:$0xff] }
 0x9d8   :  { %v1567_v0 = vmul.f32 %v1566_v21, %v5762_v36  ;;  %v1568_v59 = vmul.f32 %v1566_v21, %v5767_v41  ;;  %v1615_v21 = vld [vmem:[%s7227_s16 + $0xe0] sm:$0xff] }
 0x9d9   :  { %v4593_v56 = vpack.c.bf16 %v1617_v8, %v1615_v21  ;;  %v3413_v21 = vld [vmem:[%s7227_s16 + $0x2d0] sm:$0xff]  ;;  %v3416_v8 = vld [vmem:[%s7227_s16 + $0x2e8] sm:$0xff] }
 0x9da   :  { %v5942_v60 = vadd.f32 %v1572_v57, %v1567_v0  ;;  %v5958_v9 = vadd.f32 %v1572_v57, %v1568_v59  ;;  %v3387_v0 = vld [vmem:[%s7227_s16 + $0x200] sm:$0xff]  ;;  %v3389_v57 = vld [vmem:[%s7227_s16 + $0x210] sm:$0xff] }
 0x9db   :  { %v4597_v62 = vpack.c.bf16 %v3389_v57, %v3387_v0  ;;  %v3417_v0 = vld [vmem:[%s7227_s16 + $0x2f0] sm:$0xff] }
 0x9dc   :  { %1717 = vmatmul.mubr.f32.vlgmr.msra.gmra.mrb[12].mxu0 %v5942_v60  ;;  %v1576_v59 = vrot.slane %v5958_v9, 7 }
 0x9dd   :  { %4566 = vmatpush1.bf16.msra.mxu0 %v4565_v58  ;;  %1722 = vmatprep.mubr.f32.mxu0 %v5017_v4  ;;  %v1575_v58 = vrot.slane %v5942_v60, 7 }
 0x9de   :  { %4568 = vmatprep.subr.bf16.mxu0 %v4567_v10  ;;  %v3392_v10 = vld [vmem:[%s7227_s16 + $0x228] sm:$0xff] }
 0x9df   :  { %v4599_v63 = vpack.c.bf16 %v3394_v61, %v3392_v10  ;;  %v1577_v20 = vsel %vm347_vm3, %v1575_v58, %v1576_v59 }
 0x9e0   :  { %1723 = vmatmul.mubr.f32.gmra.mrb[14].mxu0 %v5958_v9 }
 0x9e1   :  { %4570 = vmatpush1.bf16.msra.mxu0 %v4569_v2  ;;  %1793 = vmatprep.mubr.f32.mxu0 %v5017_v4  ;;  %v3393_v2 = vld [vmem:[%s7227_s16 + $0x230] sm:$0xff] }
 0x9e2   :  { %4572 = vmatprep.subr.bf16.mxu0 %v4571_v13  ;;  %v1578_v13 = vsel %vm347_vm3, %v1576_v59, %v1575_v58  ;;  %v4601_v17 = vpack.c.bf16 %v3393_v2, %v3391_v1  ;;  %v1581_v58 = vrot.slane %v5942_v60, 1  ;;  %v1582_v59 = vrot.slane %v5958_v9, 1  ;;  %v1974_v60 = vld [vmem:[%s7230_s12 + $0xa0] sm:$0xff]  ;;  %v1975_v9 = vld [vmem:[%s7230_s12 + $0xa8] sm:$0xff] }
 0x9e3   :  { %v1959_v1 = vld [vmem:[%s7230_s12 + $0x28] sm:$0xff] }
 0x9e4   :  { %v1583_v10 = vsel %vm358_vm6, %v1581_v58, %v1582_v59  ;;  %v1584_v61 = vsel %vm358_vm6, %v1582_v59, %v1581_v58 }
 0x9e5   :  { %4574 = vmatpush1.bf16.msra.mxu0 %v4573_v6  ;;  %v3395_v6 = vld [vmem:[%s7227_s16 + $0x240] sm:$0xff] }
 0x9e6   :  { %4576 = vmatprep.subr.bf16.mxu0 %v4575_v19  ;;  %v3397_v19 = vld [vmem:[%s7227_s16 + $0x250] sm:$0xff] }
 0x9e7   :  { %v4605_v27 = vpack.c.bf16 %v3397_v19, %v3395_v6  ;;  %v1978_v19 = vld [vmem:[%s7230_s12 + $0xc0] sm:$0xff] }
 0x9e9   :  { %4578 = vmatpush1.bf16.msra.mxu0 %v4577_v28  ;;  %v4607_v28 = vpack.c.bf16 %v3402_v24, %v3400_v22  ;;  %v1962_v24 = vld [vmem:[%s7230_s12 + $0x40] sm:$0xff] }
 0x9ea   :  { %4580 = vmatprep.subr.bf16.mxu0 %v4579_v29  ;;  %v3399_v29 = vld [vmem:[%s7227_s16 + $0x260] sm:$0xff] }
 0x9eb   :  { %v4609_v34 = vpack.c.bf16 %v3401_v30, %v3399_v29  ;;  %v1980_v29 = vld [vmem:[%s7230_s12 + $0xd0] sm:$0xff]  ;;  %v1981_v30 = vld [vmem:[%s7230_s12 + $0xd8] sm:$0xff] }
 0x9ed   :  { %4582 = vmatpush1.bf16.msra.mxu0 %v4581_v35  ;;  %v4611_v35 = vpack.c.bf16 %v3406_v33, %v3404_v32  ;;  %v6208_v32 = vpack.c.bf16 %v1981_v30, %v1980_v29  ;;  %v1964_v33 = vld [vmem:[%s7230_s12 + $0x50] sm:$0xff] }
 0x9ee   :  { %4584 = vmatprep.subr.bf16.mxu0 %v4583_v38  ;;  %v3403_v38 = vld [vmem:[%s7227_s16 + $0x280] sm:$0xff] }
 0x9ef   :  { %v4613_v45 = vpack.c.bf16 %v3405_v39, %v3403_v38  ;;  %v1982_v38 = vld [vmem:[%s7230_s12 + $0xe0] sm:$0xff]  ;;  %v1983_v39 = vld [vmem:[%s7230_s12 + $0xe8] sm:$0xff] }
 0x9f1   :  { %4586 = vmatpush1.bf16.msra.mxu0 %v4585_v46  ;;  %v4615_v46 = vpack.c.bf16 %v3410_v44, %v3408_v40  ;;  %v6226_v40 = vpack.c.bf16 %v1983_v39, %v1982_v38  ;;  %v1966_v44 = vld [vmem:[%s7230_s12 + $0x60] sm:$0xff] }
 0x9f2   :  { %4588 = vmatprep.subr.bf16.mxu0 %v4587_v47  ;;  %v3407_v47 = vld [vmem:[%s7227_s16 + $0x2a0] sm:$0xff] }
 0x9f3   :  { %v4617_v12 = vpack.c.bf16 %v3409_v50, %v3407_v47  ;;  %v1984_v47 = vld [vmem:[%s7230_s12 + $0xf0] sm:$0xff]  ;;  %v1985_v50 = vld [vmem:[%s7230_s12 + $0xf8] sm:$0xff] }
 0x9f5   :  { %4590 = vmatpush1.bf16.msra.mxu0 %v4589_v5  ;;  %v4619_v5 = vpack.c.bf16 %v3414_v52, %v3412_v51  ;;  %v1968_v51 = vld [vmem:[%s7230_s12 + $0x70] sm:$0xff]  ;;  %v6246_v52 = vpack.c.bf16 %v1985_v50, %v1984_v47 }
 0x9f6   :  { %4592 = vmatprep.subr.bf16.mxu0 %v4591_v15  ;;  %v3411_v15 = vld [vmem:[%s7227_s16 + $0x2c0] sm:$0xff] }
 0x9f7   :  { %v4621_v55 = vpack.c.bf16 %v3413_v21, %v3411_v15 }
 0x9f9   :  { %4594 = vmatpush1.bf16.msra.mxu0 %v4593_v56  ;;  %v4623_v56 = vpack.c.bf16 %v3418_v26, %v3416_v8 }
 0x9fa   :  { %4596 = vmatprep.subr.bf16.mxu0 %v4595_v31  ;;  %v3415_v31 = vld [vmem:[%s7227_s16 + $0x2e0] sm:$0xff] }
 0x9fb   :  { %v4625_v57 = vpack.c.bf16 %v3417_v0, %v3415_v31 }
 0x9fc   :  { %3385 = vmatmul.mubr.msk.f32.vlgmr.msra.gmra.mrb[12].mxu0 %vm5377_vm4, %v1578_v13  ;;  %v1976_v13 = vld [vmem:[%s7230_s12 + $0xb0] sm:$0xff] }
 0x9fd   :  { %4598 = vmatpush1.bf16.msra.mxu0 %v4597_v62  ;;  %1799 = vmatprep.mubr.f32.mxu0 %v5017_v4  ;;  %v6154_v62 = vpack.c.bf16 %v1975_v9, %v1974_v60  ;;  %v6172_v16 = vpack.c.bf16 %v1977_v14, %v1976_v13 }
 0x9fe   :  { %4600 = vmatprep.subr.bf16.mxu0 %v4599_v63  ;;  %v1958_v63 = vld [vmem:[%s7230_s12 + $0x20] sm:$0xff] }
 0x9ff   :  { %v6162_v2 = vpack.c.bf16 %v1959_v1, %v1958_v63  ;;  %4636 = vmatprep.subr.bf16.mxu1 %v6154_v62 }
 0xa00   :  { %3386 = vmatmul.mubr.msk.f32.gmra.mrb[14].mxu0 %vm5439_vm5, %v1577_v20  ;;  %v1979_v20 = vld [vmem:[%s7230_s12 + $0xc8] sm:$0xff] }
 0xa01   :  { %4602 = vmatpush1.bf16.msra.mxu0 %v4601_v17  ;;  %1903 = vmatprep.mubr.f32.mxu0 %v5017_v4  ;;  %v1960_v17 = vld [vmem:[%s7230_s12 + $0x30] sm:$0xff]  ;;  %v6190_v22 = vpack.c.bf16 %v1979_v20, %v1978_v19 }
 0xa02   :  { %4604 = vmatprep.subr.bf16.mxu0 %v4603_v18  ;;  %4638 = vmatpush3.bf16.msra.mxu1 %v6162_v2  ;;  %v1961_v18 = vld [vmem:[%s7230_s12 + $0x38] sm:$0xff] }
 0xa03   :  { %v6180_v6 = vpack.c.bf16 %v1961_v18, %v1960_v17  ;;  %4640 = vmatprep.subr.bf16.mxu1 %v6172_v16 }
 0xa05   :  { %4606 = vmatpush1.bf16.msra.mxu0 %v4605_v27  ;;  %v1963_v27 = vld [vmem:[%s7230_s12 + $0x48] sm:$0xff] }
 0xa06   :  { %4608 = vmatprep.subr.bf16.mxu0 %v4607_v28  ;;  %4642 = vmatpush3.bf16.msra.mxu1 %v6180_v6  ;;  %v6198_v28 = vpack.c.bf16 %v1963_v27, %v1962_v24 }
 0xa07   :  { %4644 = vmatprep.subr.bf16.mxu1 %v6190_v22 }
 0xa09   :  { %4610 = vmatpush1.bf16.msra.mxu0 %v4609_v34  ;;  %v1965_v34 = vld [vmem:[%s7230_s12 + $0x58] sm:$0xff] }
 0xa0a   :  { %4612 = vmatprep.subr.bf16.mxu0 %v4611_v35  ;;  %4646 = vmatpush3.bf16.msra.mxu1 %v6198_v28  ;;  %v6216_v35 = vpack.c.bf16 %v1965_v34, %v1964_v33 }
 0xa0b   :  { %4648 = vmatprep.subr.bf16.mxu1 %v6208_v32 }
 0xa0d   :  { %4614 = vmatpush1.bf16.msra.mxu0 %v4613_v45  ;;  %v1967_v45 = vld [vmem:[%s7230_s12 + $0x68] sm:$0xff] }
 0xa0e   :  { %4616 = vmatprep.subr.bf16.mxu0 %v4615_v46  ;;  %4650 = vmatpush3.bf16.msra.mxu1 %v6216_v35  ;;  %v6234_v46 = vpack.c.bf16 %v1967_v45, %v1966_v44 }
 0xa0f   :  { %4652 = vmatprep.subr.bf16.mxu1 %v6226_v40 }
 0xa11   :  { %4618 = vmatpush1.bf16.msra.mxu0 %v4617_v12  ;;  %v1969_v12 = vld [vmem:[%s7230_s12 + $0x78] sm:$0xff] }
 0xa12   :  { %4620 = vmatprep.subr.bf16.mxu0 %v4619_v5  ;;  %4654 = vmatpush3.bf16.msra.mxu1 %v6234_v46  ;;  %v6252_v5 = vpack.c.bf16 %v1969_v12, %v1968_v51 }
 0xa13   :  { %4656 = vmatprep.subr.bf16.mxu1 %v6246_v52 }
 0xa15   :  { %4622 = vmatpush1.bf16.msra.mxu0 %v4621_v55 }
 0xa16   :  { %4624 = vmatprep.subr.bf16.mxu0 %v4623_v56  ;;  %4658 = vmatpush3.bf16.msra.mxu1 %v6252_v5 }
 0xa19   :  { %4626 = vmatpush1.bf16.msra.mxu0 %v4625_v57 }
 0xa1c   :  { %3419 = vmatmul.mubr.msk.f32.vlgmr.msra.gmra.mrb[12].mxu0 %vm5444_vm7, %v1583_v10 }
 0xa1d   :  { %1909 = vmatprep.mubr.f32.mxu0 %v5017_v4 }
 0xa20   :  { %3420 = vmatmul.mubr.msk.f32.gmra.mrb[14].mxu0 %vm5492_vm8, %v1584_v61 }
 0xa21   :  { %2169 = vmatprep.mubr.f32.mxu0 %v5017_v4 }
 0xaef   :  { %v6256_v15 = vpop.f32.mrb[12].mxu0 }
 0xaf0   :  { %v6258_v21 = vpop.f32.mrb[13].mxu0  ;;  %v1934_v26 = vmul.f32 %v6256_v15, %v6256_v15 }
 0xaf1   :  { %v1935_v0 = vmul.f32 %v6258_v21, %v6258_v21 }
 0xaf3   :  { %v6260_v8 = vpop.f32.mrb[14].mxu0 }
 0xaf4   :  { %v1920_v55 = vadd.f32 %v6260_v8, %v6256_v15  ;;  %v1936_v56 = vmul.f32 %v6260_v8, %v6260_v8  ;;  %v6268_v31 = vpop.f32.mrb[15].mxu0 }
 0xaf5   :  { %v1927_v57 = vadd.f32 %v6268_v31, %v6258_v21  ;;  %v1937_v58 = vmul.f32 %v6268_v31, %v6268_v31 }
 0xaf6   :  { %v1921_v59 = vrot.slane %v1920_v55, 4  ;;  %v1938_v10 = vadd.f32 %v1936_v56, %v1934_v26  ;;  %v2096_v56 = vld [vmem:[%s7231_s13 + $0x18] sm:$0xff] }
 0xaf7   :  { %v1928_v61 = vrot.slane %v1927_v57, 4  ;;  %v1945_v60 = vadd.f32 %v1937_v58, %v1935_v0  ;;  %v2095_v58 = vld [vmem:[%s7231_s13 + $0x10] sm:$0xff] }
 0xaf8   :  { %v1922_v9 = vadd.f32 %v1921_v59, %v1920_v55  ;;  %v1939_v63 = vrot.slane %v1938_v10, 4  ;;  %v2094_v55 = vld [vmem:[%s7231_s13 + $0x8] sm:$0xff] }
 0xaf9   :  { %v1929_v1 = vadd.f32 %v1928_v61, %v1927_v57  ;;  %v1946_v13 = vrot.slane %v1945_v60, 4  ;;  %v6284_v0 = vpack.c.bf16 %v2096_v56, %v2094_v55  ;;  %v2093_v57 = vld [vmem:[%s7231_s13] sm:$0xff]  ;;  %v2100_v61 = vld [vmem:[%s7231_s13 + $0x38] sm:$0xff]  ;;  %v3436_v56 = vld [vmem:[%s7232_s20 + $0x270] sm:$0xff] }
 0xafa   :  { %v1923_v14 = vrot.slane %v1922_v9, 2  ;;  %v1940_v17 = vadd.f32 %v1939_v63, %v1938_v10  ;;  %v6292_v59 = vpack.c.bf16 %v2095_v58, %v2093_v57  ;;  %v2098_v10 = vld [vmem:[%s7231_s13 + $0x28] sm:$0xff]  ;;  %v2099_v63 = vld [vmem:[%s7231_s13 + $0x30] sm:$0xff]  ;;  %v3434_v55 = vld [vmem:[%s7232_s20 + $0x260] sm:$0xff] }
 0xafb   :  { %v1930_v18 = vrot.slane %v1929_v1, 2  ;;  %v1947_v19 = vadd.f32 %v1946_v13, %v1945_v60  ;;  %4660 = vmatprep.subr.bf16.mxu0 %v6284_v0  ;;  %v6302_v60 = vpack.c.bf16 %v2100_v61, %v2098_v10  ;;  %v3423_v13 = vld [vmem:[%s7232_s20 + $0x208] sm:$0xff]  ;;  %v3441_v58 = vld [vmem:[%s7232_s20 + $0x298] sm:$0xff]  ;;  %v4681_v10 = vpack.c.bf16 %v3436_v56, %v3434_v55  ;;  %v3454_v56 = vld [vmem:[%s7232_s20 + $0x300] sm:$0xff] }
 0xafc   :  { %v1924_v20 = vadd.f32 %v1923_v14, %v1922_v9  ;;  %v1941_v24 = vrot.slane %v1940_v17, 2  ;;  %4662 = vmatpush1.bf16.msra.mxu0 %v6292_v59  ;;  %v2097_v9 = vld [vmem:[%s7231_s13 + $0x20] sm:$0xff]  ;;  %v3425_v14 = vld [vmem:[%s7232_s20 + $0x218] sm:$0xff]  ;;  %v3439_v57 = vld [vmem:[%s7232_s20 + $0x288] sm:$0xff] }
 0xafd   :  { %v1931_v27 = vadd.f32 %v1930_v18, %v1929_v1  ;;  %v1948_v29 = vrot.slane %v1947_v19, 2  ;;  %v6310_v1 = vpack.c.bf16 %v2099_v63, %v2097_v9  ;;  %4664 = vmatprep.subr.bf16.mxu0 %v6302_v60  ;;  %v4667_v18 = vpack.c.bf16 %v3425_v14, %v3423_v13  ;;  %v3438_v9 = vld [vmem:[%s7232_s20 + $0x280] sm:$0xff]  ;;  %v3440_v63 = vld [vmem:[%s7232_s20 + $0x290] sm:$0xff]  ;;  %v3443_v13 = vld [vmem:[%s7232_s20 + $0x2a8] sm:$0xff] }
 0xafe   :  { %v1925_v30 = vrot.slane %v1924_v20, 1  ;;  %v1942_v33 = vadd.f32 %v1941_v24, %v1940_v17  ;;  %v3422_v17 = vld [vmem:[%s7232_s20 + $0x200] sm:$0xff]  ;;  %v3429_v24 = vld [vmem:[%s7232_s20 + $0x238] sm:$0xff]  ;;  %v4683_v61 = vpack.c.bf16 %v3441_v58, %v3439_v57  ;;  %v3456_v57 = vld [vmem:[%s7232_s20 + $0x310] sm:$0xff] }
 0xaff   :  { %v1932_v34 = vrot.slane %v1931_v27, 1  ;;  %v1949_v38 = vadd.f32 %v1948_v29, %v1947_v19  ;;  %v3424_v19 = vld [vmem:[%s7232_s20 + $0x210] sm:$0xff]  ;;  %4668 = vmatprep.subr.bf16.mxu1 %v4667_v18  ;;  %v3445_v14 = vld [vmem:[%s7232_s20 + $0x2b8] sm:$0xff]  ;;  %v3459_v58 = vld [vmem:[%s7232_s20 + $0x328] sm:$0xff] }
 0xb00   :  { %v1943_v39 = vrot.slane %v1942_v33, 1  ;;  %v1926_v45 = vadd.f32 %v1925_v30, %v1924_v20  ;;  %4666 = vmatpush1.bf16.msra.mxu0 %v6310_v1  ;;  %v3427_v20 = vld [vmem:[%s7232_s20 + $0x228] sm:$0xff]  ;;  %v3426_v30 = vld [vmem:[%s7232_s20 + $0x220] sm:$0xff]  ;;  %v4687_v18 = vpack.c.bf16 %v3445_v14, %v3443_v13  ;;  %v3460_v13 = vld [vmem:[%s7232_s20 + $0x330] sm:$0xff] }
 0xb01   :  { %v1950_v44 = vrot.slane %v1949_v38, 1  ;;  %v1933_v50 = vadd.f32 %v1932_v34, %v1931_v27  ;;  %4860 = vmatprep.subr.bf16.mxu0 %v5899_v48  ;;  %v4669_v27 = vpack.c.bf16 %v3424_v19, %v3422_v17  ;;  %v4671_v29 = vpack.c.bf16 %v3429_v24, %v3427_v20  ;;  %v3431_v34 = vld [vmem:[%s7232_s20 + $0x248] sm:$0xff]  ;;  %v3442_v19 = vld [vmem:[%s7232_s20 + $0x2a0] sm:$0xff]  ;;  %v3444_v20 = vld [vmem:[%s7232_s20 + $0x2b0] sm:$0xff] }
 0xb02   :  { %v1944_v47 = vadd.f32 %v1943_v39, %v1942_v33  ;;  %v3428_v33 = vld [vmem:[%s7232_s20 + $0x230] sm:$0xff]  ;;  %v4685_v17 = vpack.c.bf16 %v3440_v63, %v3438_v9  ;;  %v3447_v24 = vld [vmem:[%s7232_s20 + $0x2c8] sm:$0xff]  ;;  %v3458_v63 = vld [vmem:[%s7232_s20 + $0x320] sm:$0xff] }
 0xb03   :  { %v1951_v51 = vadd.f32 %v1950_v44, %v1949_v38  ;;  %v3433_v38 = vld [vmem:[%s7232_s20 + $0x258] sm:$0xff]  ;;  %v4673_v39 = vpack.c.bf16 %v3428_v33, %v3426_v30  ;;  %v3446_v33 = vld [vmem:[%s7232_s20 + $0x2c0] sm:$0xff]  ;;  %v3463_v14 = vld [vmem:[%s7232_s20 + $0x348] sm:$0xff] }
 0xb04   :  { %v1952_v12 = vsel %vm132_vm1, %v1926_v45, %v1944_v47  ;;  %v4675_v44 = vpack.c.bf16 %v3433_v38, %v3431_v34  ;;  %v3430_v45 = vld [vmem:[%s7232_s20 + $0x240] sm:$0xff]  ;;  %v3432_v47 = vld [vmem:[%s7232_s20 + $0x250] sm:$0xff]  ;;  %v3451_v38 = vld [vmem:[%s7232_s20 + $0x2e8] sm:$0xff] }
 0xb05   :  { %v1953_v26 = vsel %vm132_vm1, %v1933_v50, %v1951_v51  ;;  %v3435_v50 = vld [vmem:[%s7232_s20 + $0x268] sm:$0xff]  ;;  %v3437_v51 = vld [vmem:[%s7232_s20 + $0x278] sm:$0xff]  ;;  %v3448_v34 = vld [vmem:[%s7232_s20 + $0x2d0] sm:$0xff] }
 0xb06   :  { %2050 = vmatprep.mubr.f32.mxu1 %v1953_v26  ;;  %v4679_v26 = vpack.c.bf16 %v3437_v51, %v3435_v50  ;;  %v3452_v50 = vld [vmem:[%s7232_s20 + $0x2f0] sm:$0xff]  ;;  %v3455_v51 = vld [vmem:[%s7232_s20 + $0x308] sm:$0xff] }
 0xb07   :  { %2051 = vmatmul.mubr.f32.vlgmr.msra.gmra.mrb[8].mxu1 %v1952_v12  ;;  %v4677_v12 = vpack.c.bf16 %v3432_v47, %v3430_v45  ;;  %v3450_v47 = vld [vmem:[%s7232_s20 + $0x2e0] sm:$0xff] }
 0xb08   :  { %4670 = vmatpush1.bf16.msra.mxu1 %v4669_v27  ;;  %v3449_v27 = vld [vmem:[%s7232_s20 + $0x2d8] sm:$0xff] }
 0xb09   :  { %4672 = vmatprep.subr.bf16.mxu1 %v4671_v29  ;;  %v4689_v29 = vpack.c.bf16 %v3444_v20, %v3442_v19  ;;  %v4691_v30 = vpack.c.bf16 %v3449_v27, %v3447_v24  ;;  %v3462_v20 = vld [vmem:[%s7232_s20 + $0x340] sm:$0xff]  ;;  %v3464_v24 = vld [vmem:[%s7232_s20 + $0x350] sm:$0xff]  ;;  %v3467_v27 = vld [vmem:[%s7232_s20 + $0x368] sm:$0xff] }
 0xb0c   :  { %4674 = vmatpush1.bf16.msra.mxu1 %v4673_v39  ;;  %v3453_v39 = vld [vmem:[%s7232_s20 + $0x2f8] sm:$0xff] }
 0xb0d   :  { %4676 = vmatprep.subr.bf16.mxu1 %v4675_v44  ;;  %v4693_v44 = vpack.c.bf16 %v3448_v34, %v3446_v33  ;;  %v4695_v45 = vpack.c.bf16 %v3453_v39, %v3451_v38  ;;  %v3466_v34 = vld [vmem:[%s7232_s20 + $0x360] sm:$0xff]  ;;  %v3468_v38 = vld [vmem:[%s7232_s20 + $0x370] sm:$0xff]  ;;  %v3471_v39 = vld [vmem:[%s7232_s20 + $0x388] sm:$0xff] }
 0xb10   :  { %4678 = vmatpush1.bf16.msra.mxu1 %v4677_v12  ;;  %v3457_v12 = vld [vmem:[%s7232_s20 + $0x318] sm:$0xff] }
 0xb11   :  { %4680 = vmatprep.subr.bf16.mxu1 %v4679_v26  ;;  %v4697_v26 = vpack.c.bf16 %v3452_v50, %v3450_v47  ;;  %v4699_v55 = vpack.c.bf16 %v3457_v12, %v3455_v51  ;;  %v3470_v50 = vld [vmem:[%s7232_s20 + $0x380] sm:$0xff]  ;;  %v3472_v51 = vld [vmem:[%s7232_s20 + $0x390] sm:$0xff]  ;;  %v3475_v12 = vld [vmem:[%s7232_s20 + $0x3a8] sm:$0xff] }
 0xb14   :  { %4682 = vmatpush1.bf16.msra.mxu1 %v4681_v10  ;;  %v3461_v10 = vld [vmem:[%s7232_s20 + $0x338] sm:$0xff] }
 0xb15   :  { %4684 = vmatprep.subr.bf16.mxu1 %v4683_v61  ;;  %v4701_v61 = vpack.c.bf16 %v3456_v57, %v3454_v56  ;;  %v4703_v9 = vpack.c.bf16 %v3461_v10, %v3459_v58 }
 0xb18   :  { %4686 = vmatpush1.bf16.msra.mxu1 %v4685_v17  ;;  %v3465_v17 = vld [vmem:[%s7232_s20 + $0x358] sm:$0xff] }
 0xb19   :  { %4688 = vmatprep.subr.bf16.mxu1 %v4687_v18  ;;  %v4705_v18 = vpack.c.bf16 %v3460_v13, %v3458_v63  ;;  %v4707_v19 = vpack.c.bf16 %v3465_v17, %v3463_v14 }
 0xb1c   :  { %4690 = vmatpush1.bf16.msra.mxu1 %v4689_v29  ;;  %v3469_v29 = vld [vmem:[%s7232_s20 + $0x378] sm:$0xff] }
 0xb1d   :  { %4692 = vmatprep.subr.bf16.mxu1 %v4691_v30  ;;  %v4709_v30 = vpack.c.bf16 %v3464_v24, %v3462_v20  ;;  %v4711_v33 = vpack.c.bf16 %v3469_v29, %v3467_v27  ;;  %v2062_v20 = vld [vmem:[%s7233_s17] sm:$0x1] }
 0xb1e   :  { %v2083_v29 = vld [vmem:[%s7234_s18] sm:$0x1] }
 0xb20   :  { %4694 = vmatpush1.bf16.msra.mxu1 %v4693_v44  ;;  %v3473_v44 = vld [vmem:[%s7232_s20 + $0x398] sm:$0xff] }
 0xb21   :  { %4696 = vmatprep.subr.bf16.mxu1 %v4695_v45  ;;  %v4713_v45 = vpack.c.bf16 %v3468_v38, %v3466_v34  ;;  %v4715_v47 = vpack.c.bf16 %v3473_v44, %v3471_v39  ;;  %v3474_v39 = vld [vmem:[%s7232_s20 + $0x3a0] sm:$0xff]  ;;  %v3476_v44 = vld [vmem:[%s7232_s20 + $0x3b0] sm:$0xff] }
 0xb24   :  { %4698 = vmatpush1.bf16.msra.mxu1 %v4697_v26  ;;  %v3477_v26 = vld [vmem:[%s7232_s20 + $0x3b8] sm:$0xff] }
 0xb25   :  { %4700 = vmatprep.subr.bf16.mxu1 %v4699_v55  ;;  %v4717_v55 = vpack.c.bf16 %v3472_v51, %v3470_v50  ;;  %v4719_v56 = vpack.c.bf16 %v3477_v26, %v3475_v12  ;;  %v3481_v50 = vld [vmem:[%s7232_s20 + $0x3d8] sm:$0xff]  ;;  %v3478_v12 = vld [vmem:[%s7232_s20 + $0x3c0] sm:$0xff]  ;;  %v3480_v26 = vld [vmem:[%s7232_s20 + $0x3d0] sm:$0xff] }
 0xb28   :  { %4702 = vmatpush1.bf16.msra.mxu1 %v4701_v61 }
 0xb29   :  { %4704 = vmatprep.subr.bf16.mxu1 %v4703_v9 }
 0xb2c   :  { %4706 = vmatpush1.bf16.msra.mxu1 %v4705_v18 }
 0xb2d   :  { %4708 = vmatprep.subr.bf16.mxu1 %v4707_v19 }
 0xb30   :  { %4710 = vmatpush1.bf16.msra.mxu1 %v4709_v30 }
 0xb31   :  { %4712 = vmatprep.subr.bf16.mxu1 %v4711_v33 }
 0xb34   :  { %4714 = vmatpush1.bf16.msra.mxu1 %v4713_v45  ;;  %v4721_v45 = vpack.c.bf16 %v3476_v44, %v3474_v39 }
 0xb35   :  { %4716 = vmatprep.subr.bf16.mxu1 %v4715_v47  ;;  %v3479_v47 = vld [vmem:[%s7232_s20 + $0x3c8] sm:$0xff] }
 0xb36   :  { %v4723_v51 = vpack.c.bf16 %v3481_v50, %v3479_v47 }
 0xb38   :  { %4718 = vmatpush1.bf16.msra.mxu1 %v4717_v55  ;;  %v4725_v55 = vpack.c.bf16 %v3480_v26, %v3478_v12 }
 0xb39   :  { %4720 = vmatprep.subr.bf16.mxu1 %v4719_v56  ;;  %v3483_v56 = vld [vmem:[%s7232_s20 + $0x3e8] sm:$0xff] }
 0xb3c   :  { %4722 = vmatpush1.bf16.msra.mxu1 %v4721_v45 }
 0xb3d   :  { %4724 = vmatprep.subr.bf16.mxu1 %v4723_v51  ;;  %v2250_v51 = vld [vmem:[%s7232_s20 + $0x10] sm:$0xff] }
 0xb40   :  { %4726 = vmatpush1.bf16.msra.mxu1 %v4725_v55 }
 0xbda   :  { %v3780_v57 = vpop.f32.mrb[8].mxu1 }
 0xbdb   :  { %v3781_v58 = vpop.f32.mrb[9].mxu1 }
 0xbdc   :  { %v3782_v10 = vadd.f32 %v3781_v58, %v3780_v57  ;;  %v3485_v57 = vld [vmem:[%s7232_s20 + $0x3f8] sm:$0xff] }
 0xbdd   :  { %v4727_v58 = vpack.c.bf16 %v3485_v57, %v3483_v56  ;;  %v2252_v57 = vld [vmem:[%s7232_s20 + $0x20] sm:$0xff] }
 0xbde   :  { %v2056_v61 = vmul.f32 0.0078125, %v3782_v10  ;;  %v3482_v10 = vld [vmem:[%s7232_s20 + $0x3e0] sm:$0xff] }
 0xbdf   :  { %4728 = vmatprep.subr.bf16.mxu1 %v4727_v58 }
 0xbe0   :  { %v2057_v9 = vmul.f32 %v2056_v61, %v2056_v61 }
 0xbe2   :  { %v2059_v63 = vrot.slane %v2057_v9, 7 }
 0xbe4   :  { %v2061_v13 = vsub.f32 %v2056_v61, %v2059_v63  ;;  %v2249_v63 = vld [vmem:[%s7232_s20 + $0x8] sm:$0xff] }
 0xbe6   :  { %v2063_v14 = vadd.f32 1e-05, %v2061_v13  ;;  %v2251_v13 = vld [vmem:[%s7232_s20 + $0x18] sm:$0xff] }
 0xbe8   :  { %5007 = vrsqrt.f32 %v2063_v14  ;;  %v4731_v14 = vpack.c.bf16 %v2251_v13, %v2249_v63  ;;  %v2254_v63 = vld [vmem:[%s7232_s20 + $0x30] sm:$0xff]  ;;  %v2257_v13 = vld [vmem:[%s7232_s20 + $0x48] sm:$0xff] }
 0xbf2   :  { %v5008_v17 = vpop.eup %5007 }
 0xbf3   :  { %v2072_v18 = vrot.slane %v5008_v17, %v5311_v25 }
 0xbf5   :  { %v2073_v19 = vcombine.high %v2072_v18, %v2072_v18  ;;  %v2200_v18 = vld [vmem:[%s7235_s19] sm:$0x3] }
 0xbf6   :  { %v2213_v44 = vrot.slane %v2200_v18, %v5358_v49 }
 0xbf7   :  { %v2080_v24 = vrot.slane %v2073_v19, %v5311_v25 }
 0xbf9   :  { %v2082_v27 = vmul.f32 %v2080_v24, %v2062_v20 }
 0xbfb   :  { %v2084_v30 = vmul.f32 %v2082_v27, %v2056_v61  ;;  %v3484_v61 = vld [vmem:[%s7232_s20 + $0x3f0] sm:$0xff] }
 0xbfc   :  { %v4729_v9 = vpack.c.bf16 %v3484_v61, %v3482_v10 }
 0xbfd   :  { %v2085_v33 = vsub.f32 %v2083_v29, %v2084_v30 }
 0xbfe   :  { %4730 = vmatpush1.bf16.msra.mxu1 %v4729_v9 }
 0xbff   :  { %v2090_v34 = vrot.slane %v2085_v33, %v5322_v37  ;;  %4732 = vmatprep.subr.bf16.mxu1 %v4731_v14  ;;  %v2209_v33 = vrot.slane %v2200_v18, %v5322_v37  ;;  %v2259_v14 = vld [vmem:[%s7232_s20 + $0x58] sm:$0xff] }
 0xc01   :  { %v2092_v38 = vsel %vm132_vm1, %v2082_v27, %v2090_v34 }
 0xc02   :  { %3421 = vmatmul.mubr.msk.f32.vlgmr.msra.gmra.mrb[16].mxu0 %vm2101_vm11, %v2092_v38 }
 0xc03   :  { %4862 = vmatpush3.bf16.msra.mxu0 %v5910_v53 }
 0xc04   :  { %4864 = vmatprep.subr.bf16.mxu0 %v5912_v54 }
 0xc07   :  { %4866 = vmatpush3.bf16.msra.mxu0 %v5922_v7 }
 0xc08   :  { %4868 = vmatprep.subr.bf16.mxu0 %v6154_v62 }
 0xc0b   :  { %4870 = vmatpush3.bf16.msra.mxu0 %v6162_v2 }
 0xc0c   :  { %4872 = vmatprep.subr.bf16.mxu0 %v6172_v16 }
 0xc0f   :  { %4874 = vmatpush3.bf16.msra.mxu0 %v6180_v6 }
 0xc10   :  { %4876 = vmatprep.subr.bf16.mxu0 %v6190_v22 }
 0xc13   :  { %4878 = vmatpush3.bf16.msra.mxu0 %v6198_v28 }
 0xc14   :  { %4880 = vmatprep.subr.bf16.mxu0 %v6208_v32 }
 0xc17   :  { %4882 = vmatpush3.bf16.msra.mxu0 %v6216_v35 }
 0xc18   :  { %4884 = vmatprep.subr.bf16.mxu0 %v6226_v40 }
 0xc1b   :  { %4886 = vmatpush3.bf16.msra.mxu0 %v6234_v46 }
 0xc1c   :  { %4888 = vmatprep.subr.bf16.mxu0 %v6246_v52 }
 0xc1f   :  { %4890 = vmatpush3.bf16.msra.mxu0 %v6252_v5 }
 0xc20   :  { %4892 = vmatprep.subr.bf16.mxu0 %v6284_v0 }
 0xcd5   :  { %v2171_v17 = vpop.f32.mrb[16].mxu0 }
 0xcd6   :  { %v2179_v19 = vrot.slane %v2171_v17, %v5322_v37  ;;  %v2173_v20 = vpop.f32.mrb[17].mxu0  ;;  %v2191_v30 = vrot.slane %v2171_v17, %v5358_v49 }
 0xcd7   :  { %v2183_v24 = vrot.slane %v2173_v20, %v5322_v37  ;;  %v2195_v39 = vrot.slane %v2173_v20, %v5358_v49 }
 0xcd8   :  { %v2184_v27 = vmul.f32 %v2179_v19, %v6256_v15  ;;  %v2186_v29 = vmul.f32 %v2179_v19, %v6260_v8  ;;  %v2248_v15 = vld [vmem:[%s7232_s20] sm:$0xff] }
 0xcd9   :  { %v2185_v34 = vmul.f32 %v2183_v24, %v6258_v21  ;;  %v2187_v38 = vmul.f32 %v2183_v24, %v6268_v31  ;;  %v2253_v21 = vld [vmem:[%s7232_s20 + $0x28] sm:$0xff]  ;;  %v2255_v31 = vld [vmem:[%s7232_s20 + $0x38] sm:$0xff]  ;;  %v4733_v10 = vpack.c.bf16 %v2250_v51, %v2248_v15  ;;  %v2256_v15 = vld [vmem:[%s7232_s20 + $0x40] sm:$0xff] }
 0xcda   :  { %v2196_v45 = vadd.f32 %v2191_v30, %v2184_v27  ;;  %v2198_v47 = vadd.f32 %v2191_v30, %v2186_v29  ;;  %v4735_v61 = vpack.c.bf16 %v2255_v31, %v2253_v21 }
 0xcdb   :  { %v2197_v50 = vadd.f32 %v2195_v39, %v2185_v34  ;;  %v2199_v8 = vadd.f32 %v2195_v39, %v2187_v38  ;;  %v4737_v38 = vpack.c.bf16 %v2254_v63, %v2252_v57  ;;  %v4739_v39 = vpack.c.bf16 %v2259_v14, %v2257_v13  ;;  %v2264_v13 = vld [vmem:[%s7232_s20 + $0x80] sm:$0xff]  ;;  %v2266_v14 = vld [vmem:[%s7232_s20 + $0x90] sm:$0xff] }
 0xcdc   :  { %vm2201_vm12 = vcmp.ge.f32.partialorder %v2196_v45, 0.0  ;;  %v2216_v12 = vmul.f32 %v2209_v33, %v2196_v45  ;;  %vm2203_vm13 = vcmp.ge.f32.partialorder %v2198_v47, 0.0  ;;  %v2218_v26 = vmul.f32 %v2209_v33, %v2198_v47 }
 0xcdd   :  { %vm2202_vm14 = vcmp.ge.f32.partialorder %v2197_v50, 0.0  ;;  %v2217_v55 = vmul.f32 %v2213_v44, %v2197_v50  ;;  %vm2204_vm15 = vcmp.ge.f32.partialorder %v2199_v8, 0.0  ;;  %v2219_v56 = vmul.f32 %v2213_v44, %v2199_v8 }
 0xcde   :  { %v2220_v58 = vsel %vm2201_vm12, %v2196_v45, %v2216_v12  ;;  %v2222_v9 = vsel %vm2203_vm13, %v2198_v47, %v2218_v26  ;;  %v2261_v12 = vld [vmem:[%s7232_s20 + $0x68] sm:$0xff]  ;;  %v2263_v26 = vld [vmem:[%s7232_s20 + $0x78] sm:$0xff] }
 0xcdf   :  { %v2221_v17 = vsel %vm2202_vm14, %v2197_v50, %v2217_v55  ;;  %v2224_v18 = vrot.slane %v2220_v58, 7  ;;  %v2236_v19 = vrot.slane %v2220_v58, 1  ;;  %v2223_v20 = vsel %vm2204_vm15, %v2199_v8, %v2219_v56  ;;  %v2258_v50 = vld [vmem:[%s7232_s20 + $0x50] sm:$0xff] }
 0xce0   :  { %v2225_v24 = vrot.slane %v2221_v17, 7  ;;  %v2237_v27 = vrot.slane %v2221_v17, 1  ;;  %2441 = vmatprep.mubr.f32.mxu1 %v2221_v17  ;;  %v2227_v29 = vrot.slane %v2223_v20, 7  ;;  %v2239_v30 = vrot.slane %v2223_v20, 1  ;;  %v2269_v17 = vld [vmem:[%s7232_s20 + $0xa8] sm:$0xff] }
 0xce1   :  { %2442 = vmatmul.mubr.f32.vlgmr.msra.gmra.mrb[10].mxu1 %v2220_v58  ;;  %v2226_v33 = vrot.slane %v2222_v9, 7  ;;  %v2238_v34 = vrot.slane %v2222_v9, 1  ;;  %v4741_v56 = vpack.c.bf16 %v2258_v50, %v2256_v15  ;;  %v4743_v57 = vpack.c.bf16 %v2263_v26, %v2261_v12  ;;  %v2260_v58 = vld [vmem:[%s7232_s20 + $0x60] sm:$0xff]  ;;  %v2279_v15 = vld [vmem:[%s7232_s20 + $0xf8] sm:$0xff] }
 0xce2   :  { %4734 = vmatpush1.bf16.msra.mxu1 %v4733_v10  ;;  %2447 = vmatprep.mubr.f32.mxu1 %v2223_v20  ;;  %v2231_v44 = vsel %vm347_vm3, %v2227_v29, %v2225_v24  ;;  %v6581_v45 = vsel %vm347_vm3, %v2225_v24, %v2227_v29  ;;  %v6585_v47 = vsel %vm358_vm6, %v2237_v27, %v2239_v30  ;;  %v2262_v10 = vld [vmem:[%s7232_s20 + $0x70] sm:$0xff]  ;;  %v2268_v24 = vld [vmem:[%s7232_s20 + $0xa0] sm:$0xff]  ;;  %v2273_v29 = vld [vmem:[%s7232_s20 + $0xc8] sm:$0xff] }
 0xce3   :  { %4736 = vmatprep.subr.bf16.mxu1 %v4735_v61  ;;  %v6595_v8 = vsel %vm347_vm3, %v2226_v33, %v2224_v18  ;;  %v6599_v51 = vsel %vm347_vm3, %v2224_v18, %v2226_v33  ;;  %v6603_v21 = vsel %vm358_vm6, %v2236_v19, %v2238_v34  ;;  %v6607_v31 = vsel %vm358_vm6, %v2239_v30, %v2237_v27  ;;  %v2267_v61 = vld [vmem:[%s7232_s20 + $0x98] sm:$0xff]  ;;  %v2270_v27 = vld [vmem:[%s7232_s20 + $0xb0] sm:$0xff]  ;;  %v2276_v26 = vld [vmem:[%s7232_s20 + $0xe0] sm:$0xff] }
 0xce4   :  { %v6617_v55 = vsel %vm358_vm6, %v2238_v34, %v2236_v19  ;;  %v4747_v63 = vpack.c.bf16 %v2267_v61, %v2265_v23  ;;  %v2271_v18 = vld [vmem:[%s7232_s20 + $0xb8] sm:$0xff]  ;;  %v4749_v19 = vpack.c.bf16 %v2266_v14, %v2264_v13  ;;  %v4753_v33 = vpack.c.bf16 %v2270_v27, %v2268_v24  ;;  %v2280_v61 = vld [vmem:[%s7232_s20 + $0x100] sm:$0xff] }
 0xce5   :  { %2448 = vmatmul.mubr.f32.gmra.mrb[12].mxu1 %v2222_v9  ;;  %v4745_v9 = vpack.c.bf16 %v2262_v10, %v2260_v58  ;;  %v4751_v20 = vpack.c.bf16 %v2271_v18, %v2269_v17  ;;  %v2275_v30 = vld [vmem:[%s7232_s20 + $0xd8] sm:$0xff]  ;;  %v2284_v18 = vld [vmem:[%s7232_s20 + $0x120] sm:$0xff] }
 0xce6   :  { %4738 = vmatpush1.bf16.msra.mxu1 %v4737_v38  ;;  %3486 = vmatprep.mubr.msk.f32.mxu1 %vm5377_vm4, %v2231_v44  ;;  %v4755_v34 = vpack.c.bf16 %v2275_v30, %v2273_v29  ;;  %v2272_v38 = vld [vmem:[%s7232_s20 + $0xc0] sm:$0xff]  ;;  %v2277_v44 = vld [vmem:[%s7232_s20 + $0xe8] sm:$0xff]  ;;  %v2283_v58 = vld [vmem:[%s7232_s20 + $0x118] sm:$0xff] }
 0xce7   :  { %4740 = vmatprep.subr.bf16.mxu1 %v4739_v39  ;;  %v2274_v39 = vld [vmem:[%s7232_s20 + $0xd0] sm:$0xff]  ;;  %v4759_v12 = vpack.c.bf16 %v2279_v15, %v2277_v44  ;;  %v2287_v13 = vld [vmem:[%s7232_s20 + $0x138] sm:$0xff]  ;;  %v2288_v30 = vld [vmem:[%s7232_s20 + $0x140] sm:$0xff] }
 0xce8   :  { %v4757_v50 = vpack.c.bf16 %v2274_v39, %v2272_v38  ;;  %v2291_v24 = vld [vmem:[%s7232_s20 + $0x158] sm:$0xff]  ;;  %v2292_v15 = vld [vmem:[%s7232_s20 + $0x160] sm:$0xff] }
 0xce9   :  { %v2295_v38 = vld [vmem:[%s7232_s20 + $0x178] sm:$0xff] }
 0xcea   :  { %4742 = vmatpush1.bf16.msra.mxu1 %v4741_v56  ;;  %v2278_v56 = vld [vmem:[%s7232_s20 + $0xf0] sm:$0xff] }
 0xceb   :  { %4744 = vmatprep.subr.bf16.mxu1 %v4743_v57  ;;  %v2281_v57 = vld [vmem:[%s7232_s20 + $0x108] sm:$0xff]  ;;  %v4761_v10 = vpack.c.bf16 %v2278_v56, %v2276_v26  ;;  %v2299_v26 = vld [vmem:[%s7232_s20 + $0x198] sm:$0xff] }
 0xcec   :  { %v4763_v23 = vpack.c.bf16 %v2283_v58, %v2281_v57  ;;  %v2296_v58 = vld [vmem:[%s7232_s20 + $0x180] sm:$0xff] }
 0xcee   :  { %4746 = vmatpush1.bf16.msra.mxu1 %v4745_v9  ;;  %v2282_v9 = vld [vmem:[%s7232_s20 + $0x110] sm:$0xff] }
 0xcef   :  { %4748 = vmatprep.subr.bf16.mxu1 %v4747_v63  ;;  %v2285_v63 = vld [vmem:[%s7232_s20 + $0x128] sm:$0xff]  ;;  %v4765_v14 = vpack.c.bf16 %v2282_v9, %v2280_v61  ;;  %v2303_v61 = vld [vmem:[%s7232_s20 + $0x1b8] sm:$0xff] }
 0xcf0   :  { %v4767_v17 = vpack.c.bf16 %v2287_v13, %v2285_v63  ;;  %v2300_v13 = vld [vmem:[%s7232_s20 + $0x1a0] sm:$0xff] }
 0xcf2   :  { %4750 = vmatpush1.bf16.msra.mxu1 %v4749_v19  ;;  %v2286_v19 = vld [vmem:[%s7232_s20 + $0x130] sm:$0xff] }
 0xcf3   :  { %4752 = vmatprep.subr.bf16.mxu1 %v4751_v20  ;;  %v2289_v20 = vld [vmem:[%s7232_s20 + $0x148] sm:$0xff]  ;;  %v4769_v27 = vpack.c.bf16 %v2286_v19, %v2284_v18  ;;  %v2307_v18 = vld [vmem:[%s7232_s20 + $0x1d8] sm:$0xff] }
 0xcf4   :  { %v4771_v29 = vpack.c.bf16 %v2291_v24, %v2289_v20  ;;  %v2304_v24 = vld [vmem:[%s7232_s20 + $0x1c0] sm:$0xff] }
 0xcf6   :  { %4754 = vmatpush1.bf16.msra.mxu1 %v4753_v33  ;;  %v2290_v33 = vld [vmem:[%s7232_s20 + $0x150] sm:$0xff] }
 0xcf7   :  { %4756 = vmatprep.subr.bf16.mxu1 %v4755_v34  ;;  %v2293_v34 = vld [vmem:[%s7232_s20 + $0x168] sm:$0xff]  ;;  %v4773_v39 = vpack.c.bf16 %v2290_v33, %v2288_v30  ;;  %v2311_v30 = vld [vmem:[%s7232_s20 + $0x1f8] sm:$0xff] }
 0xcf8   :  { %v4775_v44 = vpack.c.bf16 %v2295_v38, %v2293_v34  ;;  %v2308_v38 = vld [vmem:[%s7232_s20 + $0x1e0] sm:$0xff] }
 0xcfa   :  { %4758 = vmatpush1.bf16.msra.mxu1 %v4757_v50  ;;  %v2294_v50 = vld [vmem:[%s7232_s20 + $0x170] sm:$0xff] }
 0xcfb   :  { %4760 = vmatprep.subr.bf16.mxu1 %v4759_v12  ;;  %v2297_v12 = vld [vmem:[%s7232_s20 + $0x188] sm:$0xff]  ;;  %v4777_v56 = vpack.c.bf16 %v2294_v50, %v2292_v15  ;;  %v3493_v15 = vld [vmem:[%s7232_s20 + $0x418] sm:$0xff] }
 0xcfc   :  { %v4779_v57 = vpack.c.bf16 %v2299_v26, %v2297_v12  ;;  %v3490_v26 = vld [vmem:[%s7232_s20 + $0x400] sm:$0xff] }
 0xcfe   :  { %4762 = vmatpush1.bf16.msra.mxu1 %v4761_v10  ;;  %v2298_v10 = vld [vmem:[%s7232_s20 + $0x190] sm:$0xff] }
 0xcff   :  { %4764 = vmatprep.subr.bf16.mxu1 %v4763_v23  ;;  %v2301_v23 = vld [vmem:[%s7232_s20 + $0x1a8] sm:$0xff]  ;;  %v4781_v9 = vpack.c.bf16 %v2298_v10, %v2296_v58  ;;  %v3497_v58 = vld [vmem:[%s7232_s20 + $0x438] sm:$0xff] }
 0xd00   :  { %v4783_v63 = vpack.c.bf16 %v2303_v61, %v2301_v23  ;;  %v3494_v61 = vld [vmem:[%s7232_s20 + $0x420] sm:$0xff] }
 0xd02   :  { %4766 = vmatpush1.bf16.msra.mxu1 %v4765_v14  ;;  %v2302_v14 = vld [vmem:[%s7232_s20 + $0x1b0] sm:$0xff] }
 0xd03   :  { %4768 = vmatprep.subr.bf16.mxu1 %v4767_v17  ;;  %v2305_v17 = vld [vmem:[%s7232_s20 + $0x1c8] sm:$0xff]  ;;  %v4785_v19 = vpack.c.bf16 %v2302_v14, %v2300_v13  ;;  %v3501_v13 = vld [vmem:[%s7232_s20 + $0x458] sm:$0xff] }
 0xd04   :  { %v4787_v20 = vpack.c.bf16 %v2307_v18, %v2305_v17  ;;  %v3498_v18 = vld [vmem:[%s7232_s20 + $0x440] sm:$0xff] }
 0xd06   :  { %4770 = vmatpush1.bf16.msra.mxu1 %v4769_v27  ;;  %v2306_v27 = vld [vmem:[%s7232_s20 + $0x1d0] sm:$0xff] }
 0xd07   :  { %4772 = vmatprep.subr.bf16.mxu1 %v4771_v29  ;;  %v2309_v29 = vld [vmem:[%s7232_s20 + $0x1e8] sm:$0xff]  ;;  %v4789_v33 = vpack.c.bf16 %v2306_v27, %v2304_v24  ;;  %v3502_v24 = vld [vmem:[%s7232_s20 + $0x460] sm:$0xff]  ;;  %v3504_v27 = vld [vmem:[%s7232_s20 + $0x470] sm:$0xff] }
 0xd08   :  { %v4791_v34 = vpack.c.bf16 %v2311_v30, %v2309_v29  ;;  %v3506_v30 = vld [vmem:[%s7232_s20 + $0x480] sm:$0xff] }
 0xd0a   :  { %4774 = vmatpush1.bf16.msra.mxu1 %v4773_v39  ;;  %v2310_v39 = vld [vmem:[%s7232_s20 + $0x1f0] sm:$0xff] }
 0xd0b   :  { %4776 = vmatprep.subr.bf16.mxu1 %v4775_v44  ;;  %v3491_v44 = vld [vmem:[%s7232_s20 + $0x408] sm:$0xff]  ;;  %v4793_v50 = vpack.c.bf16 %v2310_v39, %v2308_v38  ;;  %v3513_v38 = vld [vmem:[%s7232_s20 + $0x4b8] sm:$0xff] }
 0xd0c   :  { %v4795_v12 = vpack.c.bf16 %v3493_v15, %v3491_v44  ;;  %v3510_v15 = vld [vmem:[%s7232_s20 + $0x4a0] sm:$0xff] }
 0xd0e   :  { %4778 = vmatpush1.bf16.msra.mxu1 %v4777_v56  ;;  %v3492_v56 = vld [vmem:[%s7232_s20 + $0x410] sm:$0xff] }
 0xd0f   :  { %4780 = vmatprep.subr.bf16.mxu1 %v4779_v57  ;;  %v3495_v57 = vld [vmem:[%s7232_s20 + $0x428] sm:$0xff]  ;;  %v4797_v10 = vpack.c.bf16 %v3492_v56, %v3490_v26  ;;  %v3517_v26 = vld [vmem:[%s7232_s20 + $0x4d8] sm:$0xff] }
 0xd10   :  { %v4799_v23 = vpack.c.bf16 %v3497_v58, %v3495_v57  ;;  %v3514_v58 = vld [vmem:[%s7232_s20 + $0x4c0] sm:$0xff] }
 0xd12   :  { %4782 = vmatpush1.bf16.msra.mxu1 %v4781_v9  ;;  %v3496_v9 = vld [vmem:[%s7232_s20 + $0x430] sm:$0xff] }
 0xd13   :  { %4784 = vmatprep.subr.bf16.mxu1 %v4783_v63  ;;  %v3499_v63 = vld [vmem:[%s7232_s20 + $0x448] sm:$0xff]  ;;  %v4801_v14 = vpack.c.bf16 %v3496_v9, %v3494_v61  ;;  %v3521_v61 = vld [vmem:[%s7232_s20 + $0x4f8] sm:$0xff] }
 0xd14   :  { %v4803_v17 = vpack.c.bf16 %v3501_v13, %v3499_v63  ;;  %v3518_v13 = vld [vmem:[%s7232_s20 + $0x4e0] sm:$0xff] }
 0xd16   :  { %4786 = vmatpush1.bf16.msra.mxu1 %v4785_v19  ;;  %v3500_v19 = vld [vmem:[%s7232_s20 + $0x450] sm:$0xff] }
 0xd17   :  { %4788 = vmatprep.subr.bf16.mxu1 %v4787_v20 }
 0xd1a   :  { %4790 = vmatpush1.bf16.msra.mxu1 %v4789_v33  ;;  %v3508_v33 = vld [vmem:[%s7232_s20 + $0x490] sm:$0xff] }
 0xd1b   :  { %4792 = vmatprep.subr.bf16.mxu1 %v4791_v34  ;;  %v3511_v34 = vld [vmem:[%s7232_s20 + $0x4a8] sm:$0xff]  ;;  %v4813_v39 = vpack.c.bf16 %v3508_v33, %v3506_v30  ;;  %v3533_v30 = vld [vmem:[%s7232_s20 + $0x558] sm:$0xff] }
 0xd1c   :  { %v4815_v44 = vpack.c.bf16 %v3513_v38, %v3511_v34  ;;  %v3530_v38 = vld [vmem:[%s7232_s20 + $0x540] sm:$0xff] }
 0xd1e   :  { %4794 = vmatpush1.bf16.msra.mxu1 %v4793_v50  ;;  %v3512_v50 = vld [vmem:[%s7232_s20 + $0x4b0] sm:$0xff] }
 0xd1f   :  { %4796 = vmatprep.subr.bf16.mxu1 %v4795_v12  ;;  %v3515_v12 = vld [vmem:[%s7232_s20 + $0x4c8] sm:$0xff]  ;;  %v4817_v56 = vpack.c.bf16 %v3512_v50, %v3510_v15  ;;  %v3537_v15 = vld [vmem:[%s7232_s20 + $0x578] sm:$0xff] }
 0xd20   :  { %v4819_v57 = vpack.c.bf16 %v3517_v26, %v3515_v12  ;;  %v3534_v26 = vld [vmem:[%s7232_s20 + $0x560] sm:$0xff] }
 0xd21   :  { %3487 = vmatmul.mubr.msk.f32.vlgmr.msra.gmra.mrb[10].mxu1 %vm5377_vm4, %v6595_v8  ;;  %v4805_v8 = vpack.c.bf16 %v3500_v19, %v3498_v18  ;;  %v3525_v18 = vld [vmem:[%s7232_s20 + $0x518] sm:$0xff] }
 0xd22   :  { %3488 = vmatprep.mubr.msk.f32.mxu1 %vm5439_vm5, %v6581_v45  ;;  %4798 = vmatpush1.bf16.msra.mxu1 %v4797_v10  ;;  %v3505_v45 = vld [vmem:[%s7232_s20 + $0x478] sm:$0xff]  ;;  %v3516_v10 = vld [vmem:[%s7232_s20 + $0x4d0] sm:$0xff] }
 0xd23   :  { %4800 = vmatprep.subr.bf16.mxu1 %v4799_v23  ;;  %v4807_v20 = vpack.c.bf16 %v3505_v45, %v3503_v11  ;;  %v3519_v23 = vld [vmem:[%s7232_s20 + $0x4e8] sm:$0xff]  ;;  %v4821_v9 = vpack.c.bf16 %v3516_v10, %v3514_v58  ;;  %v3522_v45 = vld [vmem:[%s7232_s20 + $0x500] sm:$0xff]  ;;  %v3541_v58 = vld [vmem:[%s7232_s20 + $0x598] sm:$0xff] }
 0xd24   :  { %v4823_v63 = vpack.c.bf16 %v3521_v61, %v3519_v23  ;;  %v3538_v61 = vld [vmem:[%s7232_s20 + $0x580] sm:$0xff] }
 0xd25   :  { %3489 = vmatmul.mubr.msk.f32.gmra.mrb[12].mxu1 %vm5439_vm5, %v6599_v51  ;;  %v3509_v51 = vld [vmem:[%s7232_s20 + $0x498] sm:$0xff] }
 0xd26   :  { %4802 = vmatpush1.bf16.msra.mxu1 %v4801_v14  ;;  %3554 = vmatprep.mubr.msk.f32.mxu1 %vm5444_vm7, %v6585_v47  ;;  %v4809_v47 = vpack.c.bf16 %v3504_v27, %v3502_v24  ;;  %v4811_v29 = vpack.c.bf16 %v3509_v51, %v3507_v42  ;;  %v3520_v14 = vld [vmem:[%s7232_s20 + $0x4f0] sm:$0xff]  ;;  %v3529_v24 = vld [vmem:[%s7232_s20 + $0x538] sm:$0xff]  ;;  %v3526_v51 = vld [vmem:[%s7232_s20 + $0x520] sm:$0xff] }
 0xd27   :  { %4804 = vmatprep.subr.bf16.mxu1 %v4803_v17  ;;  %v3523_v17 = vld [vmem:[%s7232_s20 + $0x508] sm:$0xff]  ;;  %v4825_v19 = vpack.c.bf16 %v3520_v14, %v3518_v13  ;;  %v3545_v13 = vld [vmem:[%s7232_s20 + $0x5b8] sm:$0xff] }
 0xd28   :  { %v4827_v11 = vpack.c.bf16 %v3525_v18, %v3523_v17  ;;  %v3542_v18 = vld [vmem:[%s7232_s20 + $0x5a0] sm:$0xff] }
 0xd2a   :  { %4806 = vmatpush1.bf16.msra.mxu1 %v4805_v8  ;;  %v3524_v8 = vld [vmem:[%s7232_s20 + $0x510] sm:$0xff] }
 0xd2b   :  { %4808 = vmatprep.subr.bf16.mxu1 %v4807_v20  ;;  %v3527_v20 = vld [vmem:[%s7232_s20 + $0x528] sm:$0xff]  ;;  %v4829_v27 = vpack.c.bf16 %v3524_v8, %v3522_v45  ;;  %v3549_v45 = vld [vmem:[%s7232_s20 + $0x5d8] sm:$0xff] }
 0xd2c   :  { %v4831_v42 = vpack.c.bf16 %v3529_v24, %v3527_v20  ;;  %v3546_v24 = vld [vmem:[%s7232_s20 + $0x5c0] sm:$0xff] }
 0xd2e   :  { %4810 = vmatpush1.bf16.msra.mxu1 %v4809_v47  ;;  %v3528_v47 = vld [vmem:[%s7232_s20 + $0x530] sm:$0xff] }
 0xd2f   :  { %4812 = vmatprep.subr.bf16.mxu1 %v4811_v29  ;;  %v3531_v29 = vld [vmem:[%s7232_s20 + $0x548] sm:$0xff]  ;;  %v4833_v33 = vpack.c.bf16 %v3528_v47, %v3526_v51  ;;  %v3553_v51 = vld [vmem:[%s7232_s20 + $0x5f8] sm:$0xff] }
 0xd30   :  { %v4835_v34 = vpack.c.bf16 %v3533_v30, %v3531_v29  ;;  %v3550_v30 = vld [vmem:[%s7232_s20 + $0x5e0] sm:$0xff] }
 0xd32   :  { %4814 = vmatpush1.bf16.msra.mxu1 %v4813_v39  ;;  %v3532_v39 = vld [vmem:[%s7232_s20 + $0x550] sm:$0xff] }
 0xd33   :  { %4816 = vmatprep.subr.bf16.mxu1 %v4815_v44  ;;  %v3535_v44 = vld [vmem:[%s7232_s20 + $0x568] sm:$0xff]  ;;  %v4837_v50 = vpack.c.bf16 %v3532_v39, %v3530_v38 }
 0xd34   :  { %v4839_v12 = vpack.c.bf16 %v3537_v15, %v3535_v44 }
 0xd36   :  { %4818 = vmatpush1.bf16.msra.mxu1 %v4817_v56  ;;  %v3536_v56 = vld [vmem:[%s7232_s20 + $0x570] sm:$0xff] }
 0xd37   :  { %4820 = vmatprep.subr.bf16.mxu1 %v4819_v57  ;;  %v3539_v57 = vld [vmem:[%s7232_s20 + $0x588] sm:$0xff]  ;;  %v4841_v10 = vpack.c.bf16 %v3536_v56, %v3534_v26 }
 0xd38   :  { %v4843_v23 = vpack.c.bf16 %v3541_v58, %v3539_v57 }
 0xd3a   :  { %4822 = vmatpush1.bf16.msra.mxu1 %v4821_v9  ;;  %v3540_v9 = vld [vmem:[%s7232_s20 + $0x590] sm:$0xff] }
 0xd3b   :  { %4824 = vmatprep.subr.bf16.mxu1 %v4823_v63  ;;  %v3543_v63 = vld [vmem:[%s7232_s20 + $0x5a8] sm:$0xff]  ;;  %v4845_v14 = vpack.c.bf16 %v3540_v9, %v3538_v61 }
 0xd3c   :  { %v4847_v17 = vpack.c.bf16 %v3545_v13, %v3543_v63 }
 0xd3e   :  { %4826 = vmatpush1.bf16.msra.mxu1 %v4825_v19  ;;  %v3544_v19 = vld [vmem:[%s7232_s20 + $0x5b0] sm:$0xff] }
 0xd3f   :  { %4828 = vmatprep.subr.bf16.mxu1 %v4827_v11  ;;  %v3547_v11 = vld [vmem:[%s7232_s20 + $0x5c8] sm:$0xff]  ;;  %v4849_v8 = vpack.c.bf16 %v3544_v19, %v3542_v18 }
 0xd40   :  { %v4851_v20 = vpack.c.bf16 %v3549_v45, %v3547_v11 }
 0xd42   :  { %4830 = vmatpush1.bf16.msra.mxu1 %v4829_v27  ;;  %v3548_v27 = vld [vmem:[%s7232_s20 + $0x5d0] sm:$0xff] }
 0xd43   :  { %4832 = vmatprep.subr.bf16.mxu1 %v4831_v42  ;;  %v3551_v42 = vld [vmem:[%s7232_s20 + $0x5e8] sm:$0xff]  ;;  %v4853_v47 = vpack.c.bf16 %v3548_v27, %v3546_v24 }
 0xd44   :  { %v4855_v29 = vpack.c.bf16 %v3553_v51, %v3551_v42 }
 0xd46   :  { %4834 = vmatpush1.bf16.msra.mxu1 %v4833_v33  ;;  %v3552_v33 = vld [vmem:[%s7232_s20 + $0x5f0] sm:$0xff] }
 0xd47   :  { %4836 = vmatprep.subr.bf16.mxu1 %v4835_v34  ;;  %v4857_v34 = vpack.c.bf16 %v3552_v33, %v3550_v30 }
 0xd4a   :  { %4838 = vmatpush1.bf16.msra.mxu1 %v4837_v50 }
 0xd4b   :  { %4840 = vmatprep.subr.bf16.mxu1 %v4839_v12 }
 0xd4e   :  { %4842 = vmatpush1.bf16.msra.mxu1 %v4841_v10 }
 0xd4f   :  { %4844 = vmatprep.subr.bf16.mxu1 %v4843_v23 }
 0xd52   :  { %4846 = vmatpush1.bf16.msra.mxu1 %v4845_v14 }
 0xd53   :  { %4848 = vmatprep.subr.bf16.mxu1 %v4847_v17 }
 0xd56   :  { %4850 = vmatpush1.bf16.msra.mxu1 %v4849_v8 }
 0xd57   :  { %4852 = vmatprep.subr.bf16.mxu1 %v4851_v20 }
 0xd5a   :  { %4854 = vmatpush1.bf16.msra.mxu1 %v4853_v47 }
 0xd5b   :  { %4856 = vmatprep.subr.bf16.mxu1 %v4855_v29 }
 0xd5e   :  { %4858 = vmatpush1.bf16.msra.mxu1 %v4857_v34 }
 0xd61   :  { %3555 = vmatmul.mubr.msk.f32.vlgmr.msra.gmra.mrb[10].mxu1 %vm5444_vm7, %v6603_v21 }
 0xd62   :  { %3556 = vmatprep.mubr.msk.f32.mxu1 %vm5492_vm8, %v6607_v31 }
 0xd65   :  { %3557 = vmatmul.mubr.msk.f32.gmra.mrb[12].mxu1 %vm5492_vm8, %v6617_v55 }
 0xe34   :  { %v6984_v38 = vpop.f32.mrb[10].mxu1 }
 0xe35   :  { %v6986_v39 = vpop.f32.mrb[11].mxu1  ;;  %v2691_v15 = vmul.f32 %v6984_v38, %v6984_v38 }
 0xe36   :  { %v2692_v3 = vmul.f32 %v6986_v39, %v6986_v39 }
 0xe38   :  { %v6988_v44 = vpop.f32.mrb[12].mxu1 }
 0xe39   :  { %v2677_v43 = vadd.f32 %v6988_v44, %v6984_v38  ;;  %v2693_v21 = vmul.f32 %v6988_v44, %v6988_v44  ;;  %v6996_v31 = vpop.f32.mrb[13].mxu1 }
 0xe3a   :  { %v2684_v55 = vadd.f32 %v6996_v31, %v6986_v39  ;;  %v2694_v50 = vmul.f32 %v6996_v31, %v6996_v31 }
 0xe3b   :  { %v2678_v12 = vrot.slane %v2677_v43, 4  ;;  %v2695_v26 = vadd.f32 %v2693_v21, %v2691_v15  ;;  %v2917_v15 = vld [vmem:[%s7236_s23 + $0x8] sm:$0xff] }
 0xe3c   :  { %v2685_v56 = vrot.slane %v2684_v55, 4  ;;  %v2702_v57 = vadd.f32 %v2694_v50, %v2692_v3 }
 0xe3d   :  { %v2679_v58 = vadd.f32 %v2678_v12, %v2677_v43  ;;  %v2696_v10 = vrot.slane %v2695_v26, 4  ;;  %v2919_v43 = vld [vmem:[%s7236_s23 + $0x18] sm:$0xff] }
 0xe3e   :  { %v2686_v23 = vadd.f32 %v2685_v56, %v2684_v55  ;;  %v2703_v61 = vrot.slane %v2702_v57, 4  ;;  %v4899_v21 = vpack.c.bf16 %v2919_v43, %v2917_v15  ;;  %v2924_v15 = vld [vmem:[%s7236_s23 + $0x40] sm:$0xff]  ;;  %v2926_v43 = vld [vmem:[%s7236_s23 + $0x50] sm:$0xff] }
 0xe3f   :  { %v2680_v9 = vrot.slane %v2679_v58, 2  ;;  %v2697_v63 = vadd.f32 %v2696_v10, %v2695_v26 }
 0xe40   :  { %v2687_v13 = vrot.slane %v2686_v23, 2  ;;  %v2704_v14 = vadd.f32 %v2703_v61, %v2702_v57 }
 0xe41   :  { %v2681_v17 = vadd.f32 %v2680_v9, %v2679_v58  ;;  %v2698_v18 = vrot.slane %v2697_v63, 2  ;;  %v2787_v9 = vld [vmem:[%s7237_s21] sm:$0x1] }
 0xe42   :  { %v2688_v19 = vadd.f32 %v2687_v13, %v2686_v23  ;;  %v2705_v11 = vrot.slane %v2704_v14, 2 }
 0xe43   :  { %v2682_v45 = vrot.slane %v2681_v17, 1  ;;  %v2699_v8 = vadd.f32 %v2698_v18, %v2697_v63  ;;  %v2916_v18 = vld [vmem:[%s7236_s23] sm:$0xff] }
 0xe44   :  { %v2689_v20 = vrot.slane %v2688_v19, 1  ;;  %v2706_v24 = vadd.f32 %v2705_v11, %v2704_v14  ;;  %v2808_v14 = vld [vmem:[%s7238_s22] sm:$0x1] }
 0xe45   :  { %v2700_v27 = vrot.slane %v2699_v8, 1  ;;  %v2683_v51 = vadd.f32 %v2682_v45, %v2681_v17  ;;  %v2921_v45 = vld [vmem:[%s7236_s23 + $0x28] sm:$0xff] }
 0xe46   :  { %v2707_v42 = vrot.slane %v2706_v24, 1  ;;  %v2690_v29 = vadd.f32 %v2689_v20, %v2688_v19  ;;  %v2918_v19 = vld [vmem:[%s7236_s23 + $0x10] sm:$0xff] }
 0xe47   :  { %v2701_v47 = vadd.f32 %v2700_v27, %v2699_v8  ;;  %v2923_v8 = vld [vmem:[%s7236_s23 + $0x38] sm:$0xff] }
 0xe48   :  { %v2708_v30 = vadd.f32 %v2707_v42, %v2706_v24  ;;  %v4901_v24 = vpack.c.bf16 %v2918_v19, %v2916_v18  ;;  %v4903_v27 = vpack.c.bf16 %v2923_v8, %v2921_v45  ;;  %v2920_v42 = vld [vmem:[%s7236_s23 + $0x20] sm:$0xff]  ;;  %v2938_v18 = vld [vmem:[%s7236_s23 + $0xb0] sm:$0xff]  ;;  %v2941_v19 = vld [vmem:[%s7236_s23 + $0xc8] sm:$0xff] }
 0xe49   :  { %v2709_v33 = vsel %vm132_vm1, %v2683_v51, %v2701_v47  ;;  %v2922_v51 = vld [vmem:[%s7236_s23 + $0x30] sm:$0xff] }
 0xe4a   :  { %v2710_v34 = vsel %vm132_vm1, %v2690_v29, %v2708_v30  ;;  %v2925_v29 = vld [vmem:[%s7236_s23 + $0x48] sm:$0xff]  ;;  %v2927_v30 = vld [vmem:[%s7236_s23 + $0x58] sm:$0xff] }
 0xe4b   :  { %2775 = vmatprep.mubr.f32.mxu0 %v2710_v34  ;;  %v4907_v34 = vpack.c.bf16 %v2927_v30, %v2925_v29  ;;  %v2944_v29 = vld [vmem:[%s7236_s23 + $0xe0] sm:$0xff]  ;;  %v2946_v30 = vld [vmem:[%s7236_s23 + $0xf0] sm:$0xff] }
 0xe4c   :  { %2776 = vmatmul.mubr.f32.vlgmr.msra.gmra.mrb[18].mxu0 %v2709_v33  ;;  %v4905_v33 = vpack.c.bf16 %v2922_v51, %v2920_v42  ;;  %v2947_v42 = vld [vmem:[%s7236_s23 + $0xf8] sm:$0xff] }
 0xe4d   :  { %4894 = vmatpush1.bf16.msra.mxu0 %v6292_v59  ;;  %2885 = vmatprep.mubr.f32.mxu0 %v5017_v4 }
 0xe4e   :  { %4896 = vmatprep.subr.bf16.mxu0 %v6302_v60 }
 0xe51   :  { %4898 = vmatpush1.bf16.msra.mxu0 %v6310_v1 }
 0xe52   :  { %4900 = vmatprep.subr.bf16.mxu0 %v4899_v21  ;;  %v2929_v21 = vld [vmem:[%s7236_s23 + $0x68] sm:$0xff] }
 0xf1f   :  { %v3815_v3 = vpop.f32.mrb[18].mxu0 }
 0xf20   :  { %v3816_v55 = vpop.f32.mrb[19].mxu0 }
 0xf21   :  { %v3817_v50 = vadd.f32 %v3816_v55, %v3815_v3  ;;  %v2931_v3 = vld [vmem:[%s7236_s23 + $0x78] sm:$0xff]  ;;  %v4909_v55 = vpack.c.bf16 %v2926_v43, %v2924_v15 }
 0xf23   :  { %v2781_v12 = vmul.f32 0.0078125, %v3817_v50  ;;  %v4911_v50 = vpack.c.bf16 %v2931_v3, %v2929_v21 }
 0xf25   :  { %v2782_v26 = vmul.f32 %v2781_v12, %v2781_v12 }
 0xf27   :  { %v2784_v56 = vrot.slane %v2782_v26, 7  ;;  %v2930_v26 = vld [vmem:[%s7236_s23 + $0x70] sm:$0xff] }
 0xf29   :  { %v2786_v57 = vsub.f32 %v2781_v12, %v2784_v56  ;;  %v2933_v56 = vld [vmem:[%s7236_s23 + $0x88] sm:$0xff] }
 0xf2b   :  { %v2788_v58 = vadd.f32 1e-05, %v2786_v57  ;;  %v2935_v57 = vld [vmem:[%s7236_s23 + $0x98] sm:$0xff] }
 0xf2d   :  { %5009 = vrsqrt.f32 %v2788_v58 }
 0xf37   :  { %v5010_v10 = vpop.eup %5009 }
 0xf38   :  { %v2797_v23 = vrot.slane %v5010_v10, %v5311_v25  ;;  %v4915_v10 = vpack.c.bf16 %v2935_v57, %v2933_v56 }
 0xf3a   :  { %v2798_v61 = vcombine.high %v2797_v23, %v2797_v23  ;;  %v2932_v23 = vld [vmem:[%s7236_s23 + $0x80] sm:$0xff] }
 0xf3c   :  { %v2805_v63 = vrot.slane %v2798_v61, %v5311_v25  ;;  %v2934_v61 = vld [vmem:[%s7236_s23 + $0x90] sm:$0xff] }
 0xf3e   :  { %v2807_v13 = vmul.f32 %v2805_v63, %v2787_v9  ;;  %v2937_v9 = vld [vmem:[%s7236_s23 + $0xa8] sm:$0xff]  ;;  %v2939_v63 = vld [vmem:[%s7236_s23 + $0xb8] sm:$0xff] }
 0xf40   :  { %v2809_v17 = vmul.f32 %v2807_v13, %v2781_v12  ;;  %v2928_v12 = vld [vmem:[%s7236_s23 + $0x60] sm:$0xff] }
 0xf41   :  { %v4913_v58 = vpack.c.bf16 %v2930_v26, %v2928_v12 }
 0xf42   :  { %v2810_v11 = vsub.f32 %v2808_v14, %v2809_v17  ;;  %v4919_v14 = vpack.c.bf16 %v2939_v63, %v2937_v9  ;;  %v2936_v17 = vld [vmem:[%s7236_s23 + $0xa0] sm:$0xff] }
 0xf43   :  { %v4921_v45 = vpack.c.bf16 %v2938_v18, %v2936_v17 }
 0xf44   :  { %v2815_v20 = vrot.slane %v2810_v11, %v5322_v37  ;;  %v2943_v11 = vld [vmem:[%s7236_s23 + $0xd8] sm:$0xff] }
 0xf45   :  { %v4923_v8 = vpack.c.bf16 %v2943_v11, %v2941_v19 }
 0xf46   :  { %v2817_v47 = vsel %vm132_vm1, %v2807_v13, %v2815_v20  ;;  %v4917_v13 = vpack.c.bf16 %v2934_v61, %v2932_v23  ;;  %v2940_v20 = vld [vmem:[%s7236_s23 + $0xc0] sm:$0xff] }
 0xf47   :  { %3558 = vmatmul.mubr.msk.f32.vlgmr.msra.gmra.mrb[20].mxu0 %vm2101_vm11, %v2817_v47 }
 0xf48   :  { %4902 = vmatpush1.bf16.msra.mxu0 %v4901_v24  ;;  %3012 = vmatprep.mubr.f32.mxu0 %v5017_v4  ;;  %v2942_v24 = vld [vmem:[%s7236_s23 + $0xd0] sm:$0xff] }
 0xf49   :  { %4904 = vmatprep.subr.bf16.mxu0 %v4903_v27  ;;  %v2945_v27 = vld [vmem:[%s7236_s23 + $0xe8] sm:$0xff]  ;;  %v4925_v51 = vpack.c.bf16 %v2942_v24, %v2940_v20 }
 0xf4a   :  { %v4927_v47 = vpack.c.bf16 %v2947_v42, %v2945_v27 }
 0xf4c   :  { %4906 = vmatpush1.bf16.msra.mxu0 %v4905_v33  ;;  %v4929_v33 = vpack.c.bf16 %v2946_v30, %v2944_v29 }
 0xf4d   :  { %4908 = vmatprep.subr.bf16.mxu0 %v4907_v34 }
 0xf50   :  { %4910 = vmatpush1.bf16.msra.mxu0 %v4909_v55 }
 0xf51   :  { %4912 = vmatprep.subr.bf16.mxu0 %v4911_v50 }
 0xf54   :  { %4914 = vmatpush1.bf16.msra.mxu0 %v4913_v58 }
 0xf55   :  { %4916 = vmatprep.subr.bf16.mxu0 %v4915_v10 }
 0xf58   :  { %4918 = vmatpush1.bf16.msra.mxu0 %v4917_v13 }
 0xf59   :  { %4920 = vmatprep.subr.bf16.mxu0 %v4919_v14 }
 0xf5c   :  { %4922 = vmatpush1.bf16.msra.mxu0 %v4921_v45 }
 0xf5d   :  { %4924 = vmatprep.subr.bf16.mxu0 %v4923_v8 }
 0xf60   :  { %4926 = vmatpush1.bf16.msra.mxu0 %v4925_v51 }
 0xf61   :  { %4928 = vmatprep.subr.bf16.mxu0 %v4927_v47 }
 0xf64   :  { %4930 = vmatpush1.bf16.msra.mxu0 %v4929_v33 }
 0xf65   :  { %4932 = vmatprep.subr.bf16.mxu0 %v5899_v48 }
 0xf67   :  { %3013 = vmatmul.mubr.f32.vlgmr.msra.gmra.mrb[22].mxu0 %v5762_v36 }
 0xf68   :  { %3018 = vmatprep.mubr.f32.mxu0 %v5017_v4  ;;  %4934 = vmatpush3.bf16.msra.mxu0 %v5910_v53 }
 0xf69   :  { %4936 = vmatprep.subr.bf16.mxu0 %v5912_v54 }
 0xf6b   :  { %3019 = vmatmul.mubr.f32.gmra.mrb[24].mxu0 %v5767_v41 }
 0xf6c   :  { %4938 = vmatpush3.bf16.msra.mxu0 %v5922_v7 }
 0xf6d   :  { %4940 = vmatprep.subr.bf16.mxu0 %v6154_v62 }
 0xf70   :  { %4942 = vmatpush3.bf16.msra.mxu0 %v6162_v2 }
 0xf71   :  { %4944 = vmatprep.subr.bf16.mxu0 %v6172_v16 }
 0xf74   :  { %4946 = vmatpush3.bf16.msra.mxu0 %v6180_v6 }
 0xf75   :  { %4948 = vmatprep.subr.bf16.mxu0 %v6190_v22 }
 0xf78   :  { %4950 = vmatpush3.bf16.msra.mxu0 %v6198_v28 }
 0xf79   :  { %4952 = vmatprep.subr.bf16.mxu0 %v6208_v32 }
 0xf7c   :  { %4954 = vmatpush3.bf16.msra.mxu0 %v6216_v35 }
 0xf7d   :  { %4956 = vmatprep.subr.bf16.mxu0 %v6226_v40 }
 0xf80   :  { %4958 = vmatpush3.bf16.msra.mxu0 %v6234_v46 }
 0xf81   :  { %4960 = vmatprep.subr.bf16.mxu0 %v6246_v52 }
 0xf84   :  { %4962 = vmatpush3.bf16.msra.mxu0 %v6252_v5 }
 0xf85   :  { %4964 = vmatprep.subr.bf16.mxu0 %v6284_v0 }
0x101a   :  { %v2887_v36 = vpop.f32.mrb[20].mxu0 }
0x101b   :  { %v2895_v41 = vrot.slane %v2887_v36, %v5322_v37  ;;  %v2889_v48 = vpop.f32.mrb[21].mxu0  ;;  %v2907_v62 = vrot.slane %v2887_v36, %v5358_v49 }
0x101c   :  { %v2899_v53 = vrot.slane %v2889_v48, %v5322_v37  ;;  %v2911_v6 = vrot.slane %v2889_v48, %v5358_v49 }
0x101d   :  { %v2900_v54 = vmul.f32 %v2895_v41, %v6984_v38  ;;  %v2902_v7 = vmul.f32 %v2895_v41, %v6988_v44 }
0x101e   :  { %v2901_v2 = vmul.f32 %v2899_v53, %v6986_v39  ;;  %v2903_v16 = vmul.f32 %v2899_v53, %v6996_v31 }
0x101f   :  { %v7146_v22 = vadd.f32 %v2907_v62, %v2900_v54  ;;  %v7148_v28 = vadd.f32 %v2907_v62, %v2902_v7 }
0x1020   :  { %v7150_v32 = vadd.f32 %v2911_v6, %v2901_v2  ;;  %v7152_v35 = vadd.f32 %v2911_v6, %v2903_v16 }
0x103a   :  { %v7154_v40 = vpop.f32.mrb[22].mxu0 }
0x103b   :  { %v7156_v46 = vpop.f32.mrb[23].mxu0  ;;  %v3039_v5 = vmul.f32 %v7154_v40, %v7154_v40 }
0x103c   :  { %v3040_v44 = vmul.f32 %v7156_v46, %v7156_v46 }
0x103e   :  { %v7158_v52 = vpop.f32.mrb[24].mxu0 }
0x103f   :  { %v3025_v0 = vadd.f32 %v7158_v52, %v7154_v40  ;;  %v3041_v38 = vmul.f32 %v7158_v52, %v7158_v52  ;;  %v7166_v39 = vpop.f32.mrb[25].mxu0 }
0x1040   :  { %v3032_v31 = vadd.f32 %v7166_v39, %v7156_v46  ;;  %v3042_v34 = vmul.f32 %v7166_v39, %v7166_v39 }
0x1041   :  { %v3026_v15 = vrot.slane %v3025_v0, 4  ;;  %v3043_v43 = vadd.f32 %v3041_v38, %v3039_v5 }
0x1042   :  { %v3033_v21 = vrot.slane %v3032_v31, 4  ;;  %v3050_v3 = vadd.f32 %v3042_v34, %v3040_v44 }
0x1043   :  { %v3027_v55 = vadd.f32 %v3026_v15, %v3025_v0  ;;  %v3044_v50 = vrot.slane %v3043_v43, 4 }
0x1044   :  { %v3034_v12 = vadd.f32 %v3033_v21, %v3032_v31  ;;  %v3051_v26 = vrot.slane %v3050_v3, 4 }
0x1045   :  { %v3028_v56 = vrot.slane %v3027_v55, 2  ;;  %v3045_v57 = vadd.f32 %v3044_v50, %v3043_v43 }
0x1046   :  { %v3035_v58 = vrot.slane %v3034_v12, 2  ;;  %v3052_v10 = vadd.f32 %v3051_v26, %v3050_v3 }
0x1047   :  { %v3029_v23 = vadd.f32 %v3028_v56, %v3027_v55  ;;  %v3046_v61 = vrot.slane %v3045_v57, 2 }
0x1048   :  { %v3036_v9 = vadd.f32 %v3035_v58, %v3034_v12  ;;  %v3053_v63 = vrot.slane %v3052_v10, 2 }
0x1049   :  { %v3030_v13 = vrot.slane %v3029_v23, 1  ;;  %v3047_v14 = vadd.f32 %v3046_v61, %v3045_v57 }
0x104a   :  { %v3037_v17 = vrot.slane %v3036_v9, 1  ;;  %v3054_v18 = vadd.f32 %v3053_v63, %v3052_v10 }
0x104b   :  { %v3048_v19 = vrot.slane %v3047_v14, 1  ;;  %v3031_v45 = vadd.f32 %v3030_v13, %v3029_v23 }
0x104c   :  { %v3055_v11 = vrot.slane %v3054_v18, 1  ;;  %v3038_v20 = vadd.f32 %v3037_v17, %v3036_v9 }
0x104d   :  { %v3049_v8 = vadd.f32 %v3048_v19, %v3047_v14 }
0x104e   :  { %v3056_v24 = vadd.f32 %v3055_v11, %v3054_v18 }
0x104f   :  { %v3057_v27 = vsel %vm132_vm1, %v3031_v45, %v3049_v8 }
0x1050   :  { %v3058_v42 = vsel %vm132_vm1, %v3038_v20, %v3056_v24 }
0x1051   :  { %3123 = vmatprep.mubr.f32.mxu0 %v3058_v42 }
0x1052   :  { %3124 = vmatmul.mubr.f32.vlgmr.msra.gmra.mrb[26].mxu0 %v3057_v27 }
0x1053   :  { %4966 = vmatpush1.bf16.msra.mxu0 %v6292_v59  ;;  %3233 = vmatprep.mubr.f32.mxu0 %v5017_v4  ;;  %v3135_v4 = vld [vmem:[%s7239_s24] sm:$0x1] }
0x1054   :  { %4968 = vmatprep.subr.bf16.mxu0 %v6302_v60 }
0x1057   :  { %4970 = vmatpush1.bf16.msra.mxu0 %v6310_v1  ;;  %v3156_v1 = vld [vmem:[%s7240_s25] sm:$0x1] }
0x1125   :  { %v3850_v51 = vpop.f32.mrb[26].mxu0 }
0x1126   :  { %v3851_v47 = vpop.f32.mrb[27].mxu0 }
0x1127   :  { %v3852_v29 = vadd.f32 %v3851_v47, %v3850_v51 }
0x1129   :  { %v3129_v30 = vmul.f32 0.0078125, %v3852_v29 }
0x112b   :  { %v3130_v33 = vmul.f32 %v3129_v30, %v3129_v30 }
0x112d   :  { %v3132_v36 = vrot.slane %v3130_v33, 7 }
0x112f   :  { %v3134_v41 = vsub.f32 %v3129_v30, %v3132_v36 }
0x1131   :  { %v3136_v48 = vadd.f32 1e-05, %v3134_v41 }
0x1133   :  { %5011 = vrsqrt.f32 %v3136_v48 }
0x113d   :  { %v5012_v53 = vpop.eup %5011 }
0x113e   :  { %v3145_v54 = vrot.slane %v5012_v53, %v5311_v25 }
0x1140   :  { %v3146_v7 = vcombine.high %v3145_v54, %v3145_v54 }
0x1142   :  { %v3153_v59 = vrot.slane %v3146_v7, %v5311_v25 }
0x1144   :  { %v3155_v60 = vmul.f32 %v3153_v59, %v3135_v4 }
0x1146   :  { %v3157_v62 = vmul.f32 %v3155_v60, %v3129_v30 }
0x1148   :  { %v3158_v2 = vsub.f32 %v3156_v1, %v3157_v62 }
0x114a   :  { %v3163_v16 = vrot.slane %v3158_v2, %v5322_v37 }
0x114c   :  { %v3165_v6 = vsel %vm132_vm1, %v3155_v60, %v3163_v16 }
0x114d   :  { %3559 = vmatmul.mubr.msk.f32.vlgmr.msra.gmra.mrb[28].mxu0 %vm2101_vm11, %v3165_v6 }
0x1220   :  { %v3235_v5 = vpop.f32.mrb[28].mxu0 }
0x1221   :  { %v3243_v0 = vrot.slane %v3235_v5, %v5322_v37  ;;  %v3237_v38 = vpop.f32.mrb[29].mxu0  ;;  %v3255_v34 = vrot.slane %v3235_v5, %v5358_v49 }
0x1222   :  { %v3247_v44 = vrot.slane %v3237_v38, %v5322_v37  ;;  %v3259_v21 = vrot.slane %v3237_v38, %v5358_v49 }
0x1223   :  { %v3248_v25 = vmul.f32 %v3243_v0, %v7154_v40  ;;  %v3250_v31 = vmul.f32 %v3243_v0, %v7158_v52 }
0x1224   :  { %v3249_v15 = vmul.f32 %v3247_v44, %v7156_v46  ;;  %v3251_v43 = vmul.f32 %v3247_v44, %v7166_v39 }
0x1225   :  { %v3260_v3 = vadd.f32 %v3255_v34, %v3248_v25  ;;  %v3262_v55 = vadd.f32 %v3255_v34, %v3250_v31 }
0x1226   :  { %v3261_v50 = vadd.f32 %v3259_v21, %v3249_v15  ;;  %v3263_v12 = vadd.f32 %v3259_v21, %v3251_v43 }
0x1227   :  { %v3264_v26 = vadd.f32 %v3260_v3, %v7146_v22  ;;  %v3266_v37 = vadd.f32 %v3262_v55, %v7148_v28 }
0x1228   :  { %v3265_v40 = vadd.f32 %v3261_v50, %v7150_v32  ;;  %v3267_v52 = vadd.f32 %v3263_v12, %v7152_v35 }
0x1229   :  { %3268 = vst [vmem:[%s7241_s26] sm:$0xff] %v3264_v26  ;;  %3270 = vst [vmem:[%s7241_s26 + $0x10] sm:$0xff] %v3266_v37 }
0x122a   :  { %3269 = vst [vmem:[%s7241_s26 + $0x8] sm:$0xff] %v3265_v40  ;;  %3271 = vst [vmem:[%s7241_s26 + $0x18] sm:$0xff] %v3267_v52 }

</bundles_post_ra>
